<compile_context>
chip_gen: v7x
topology: tpu7x:2x2x1
jax: 0.10.0
libtpu: 0.0.40
codegen_flags: <defaults>
</compile_context>

<pallas_src>
import functools
import math

import jax
import jax.numpy as jnp
from jax.experimental import pallas as pl
from jax.experimental.pallas import tpu as pltpu


# ----------------------------------------------------------------------------
# in-kernel helpers (all f32 elementwise math — v5e-friendly, stable)
# ----------------------------------------------------------------------------
def _layer_norm(x, gamma, beta, eps=1e-5):
    mu = jnp.mean(x, axis=-1, keepdims=True)
    xc = x - mu
    var = jnp.mean(xc * xc, axis=-1, keepdims=True)
    return xc * jax.lax.rsqrt(var + eps) * gamma + beta


def _gelu_tanh(x):
    c = math.sqrt(2.0 / math.pi)
    return 0.5 * x * (1.0 + jnp.tanh(c * (x + 0.044715 * x * x * x)))


# ----------------------------------------------------------------------------
# fused encoder-layer kernel: one grid step = Bblk batch elements
# ----------------------------------------------------------------------------
def _encoder_layer_kernel(num_heads, activation, return_attw,
                          x_ref, bias_ref, bandm_ref, onesbd_ref, teye_ref,
                          g1_ref, be1_ref,
                          wqkv_ref, bqkv_ref, wo_ref, bo_ref,
                          g2_ref, be2_ref,
                          w1_ref, bf1_ref, w2_ref, bf2_ref,
                          out_ref, *attw_refs):
    f32, bf16 = jnp.float32, jnp.bfloat16
    xblk = x_ref[...]                               # [Bblk, L, D] f32
    Bblk, L, D = xblk.shape
    H = num_heads
    hd = D // H
    scale = 1.0 / math.sqrt(hd)

    x2d = xblk.reshape(Bblk * L, D)                 # fold batch into M rows
    biasblk = bias_ref[...]                         # [Bblk, 1, H*L] (pre-tiled)
    band_mask = bandm_ref[...]                      # [H*L, D]  block-diag mask
    ones_bd = onesbd_ref[...]                       # [H*L, H*L] block-diag ones
    aw_ref = attw_refs[0] if return_attw else None
    teye = teye_ref[...] if return_attw else None   # [H*L, L] tiled identity

    # ---- pre-norm + fused QKV projection (M = Bblk*L rows, bf16 MXU) -------
    xn = _layer_norm(x2d, g1_ref[...], be1_ref[...])
    qkv = jnp.dot(xn.astype(bf16), wqkv_ref[...],
                  preferred_element_type=f32) + bqkv_ref[...]    # [Bblk*L, 3D]

    # ---- attention: packed block-diagonal heads, one batch at a time -------
    ctx_list = []
    for b in range(Bblk):                           # static unroll (Bblk <= 4)
        qkv_b = qkv[b * L:(b + 1) * L, :]
        q = qkv_b[:, :D]                            # lane-aligned 128-wide slices
        k = qkv_b[:, D:2 * D]
        v = qkv_b[:, 2 * D:]
        # rows h*L+j of K_hat/V_hat hold key j of head h, zero off the band
        k_hat = (jnp.concatenate([k] * H, axis=0) * band_mask).astype(bf16)
        v_hat = (jnp.concatenate([v] * H, axis=0) * band_mask).astype(bf16)
        # packed scores: column h*L+j == (head h, key j) — one [L,D]x[D,H*L] MXU call
        s = jax.lax.dot_general(q.astype(bf16), k_hat,
                                (((1,), (1,)), ((), ())),
                                preferred_element_type=f32) * scale
        s = s + biasblk[b]                          # additive key-padding bias
        m = jnp.max(s, axis=-1, keepdims=True)      # per-row shift, valid per band
        p = jnp.exp(s - m)                          # f32 softmax numerators
        den = jnp.dot(p, ones_bd, preferred_element_type=f32)   # per-band sums
        pn = p * pl.reciprocal(den, approx=True)
        # context is already head-concatenated: [L, D]
        ctx_list.append(jnp.dot(pn.astype(bf16), v_hat, preferred_element_type=f32))
        if return_attw:
            w = jnp.dot(pn, teye, preferred_element_type=f32) * (1.0 / H)
            aw_ref[b] = w.astype(aw_ref.dtype)

    attn2d = ctx_list[0] if Bblk == 1 else jnp.concatenate(ctx_list, axis=0)
    attn_out = jnp.dot(attn2d.astype(bf16), wo_ref[...],
                       preferred_element_type=f32) + bo_ref[...]
    x1 = x2d + attn_out                             # sa_dropout == identity (eval)

    # ---- feed-forward block (pre-norm), M = Bblk*L rows ---------------------
    xn2 = _layer_norm(x1, g2_ref[...], be2_ref[...])
    h1 = jnp.dot(xn2.astype(bf16), w1_ref[...],
                 preferred_element_type=f32) + bf1_ref[...]
    if activation == "gelu":
        h1 = _gelu_tanh(h1)
    else:                                           # "relu"
        h1 = jnp.maximum(h1, 0.0)
    h2 = jnp.dot(h1.astype(bf16), w2_ref[...],
                 preferred_element_type=f32) + bf2_ref[...]

    out_ref[...] = (x1 + h2).reshape(Bblk, L, D).astype(out_ref.dtype)


# ----------------------------------------------------------------------------
# wrapper
# ----------------------------------------------------------------------------
def _pick_block_b(B, L):
    target = max(1, 128 // L)       # aim for ~128 M-rows per MXU call
    cap = max(1, B // 2)            # keep >= 2 grid steps for v7x's two TCs
    bblk = max(1, min(target, cap))
    while B % bblk:                 # must divide the batch
        bblk -= 1
    return bblk


def encoder_layer_fused(params, x, key_pad_bias, *, num_heads, activation,
                        block_b=None, return_attn_weights=True):
    """x: [B, L, D] flattened tokens; key_pad_bias: [B, 1, L] additive mask."""
    B, L, D = x.shape
    F = params["ff_w1"].shape[1]
    H = num_heads
    assert D % H == 0
    hd = D // H
    HL = H * L
    Bblk = _pick_block_b(B, L) if block_b is None else block_b
    assert B % Bblk == 0

    f32, bf16 = jnp.float32, jnp.bfloat16

    # Hoisted out of the kernel: bias tiled over heads, and the constant
    # packing masks for the block-diagonal per-head attention.
    bias_t = jnp.tile(key_pad_bias.astype(f32), (1, 1, H))          # [B,1,H*L]
    r = jnp.arange(HL)
    band_mask = (r[:, None] // L == jnp.arange(D)[None, :] // hd).astype(f32)
    ones_bd = (r[:, None] // L == r[None, :] // L).astype(f32)
    tile_eye = (r[:, None] % L == jnp.arange(L)[None, :]).astype(f32)

    kern = functools.partial(_encoder_layer_kernel, num_heads, activation,
                             return_attn_weights)

    def full(shape):                 # weight / constant block == full array
        return pl.BlockSpec(shape, lambda b: (0,) * len(shape))

    in_specs = [
        pl.BlockSpec((Bblk, L, D), lambda b: (b, 0, 0)),    # tokens
        pl.BlockSpec((Bblk, 1, HL), lambda b: (b, 0, 0)),   # head-tiled bias
        full((HL, D)), full((HL, HL)), full((HL, L)),       # packing constants
        full((1, D)), full((1, D)),                         # sa_norm γ/β
        full((D, 3 * D)), full((1, 3 * D)),                 # QKV proj (bf16 W)
        full((D, D)), full((1, D)),                         # out proj (bf16 W)
        full((1, D)), full((1, D)),                         # ff_norm γ/β
        full((D, F)), full((1, F)),                         # ff_linear1 (bf16 W)
        full((F, D)), full((1, D)),                         # ff_linear2 (bf16 W)
    ]
    args = (x, bias_t, band_mask, ones_bd, tile_eye,
            params["sa_norm_g"].reshape(1, D), params["sa_norm_b"].reshape(1, D),
            params["attn_wqkv"].astype(bf16), params["attn_bqkv"].reshape(1, 3 * D),
            params["attn_wo"].astype(bf16), params["attn_bo"].reshape(1, D),
            params["ff_norm_g"].reshape(1, D), params["ff_norm_b"].reshape(1, D),
            params["ff_w1"].astype(bf16), params["ff_b1"].reshape(1, F),
            params["ff_w2"].astype(bf16), params["ff_b2"].reshape(1, D))

    if return_attn_weights:
        out_shape = (jax.ShapeDtypeStruct((B, L, D), x.dtype),
                     jax.ShapeDtypeStruct((B, L, L), f32))
        out_specs = (pl.BlockSpec((Bblk, L, D), lambda b: (b, 0, 0)),
                     pl.BlockSpec((Bblk, L, L), lambda b: (b, 0, 0)))
    else:
        out_shape = jax.ShapeDtypeStruct((B, L, D), x.dtype)
        out_specs = pl.BlockSpec((Bblk, L, D), lambda b: (b, 0, 0))

    return pl.pallas_call(
        kern,
        out_shape=out_shape,
        grid=(B // Bblk,),
        in_specs=in_specs,
        out_specs=out_specs,
        compiler_params=pltpu.CompilerParams(
            dimension_semantics=("parallel",)),
    )(*args)


# ----------------------------------------------------------------------------
# EncoderLayer.forward (dict plumbing of flatten_apply / sum_dicts)
# ----------------------------------------------------------------------------
def encoder_layer_forward(params, src_dict, src_key_padding_mask_dict,
                          *, num_heads, activation="gelu"):
    temporal = src_dict["temporal"]            # [B, n_vars, T, D]
    static = src_dict["static"]                # [B, S, D]
    B = temporal.shape[0]
    D = temporal.shape[-1]
    t_shape = temporal.shape
    t_flat = temporal.reshape(B, -1, D)
    Lt = t_flat.shape[1]
    x = jnp.concatenate([t_flat, static], axis=1)            # [B, L, D]
    L = x.shape[1]

    t_mask = src_key_padding_mask_dict["temporal"].reshape(B, -1)
    s_mask = src_key_padding_mask_dict["static"]
    pad = jnp.concatenate([t_mask, s_mask], axis=1)          # [B, L] bool, True = pad
    bias = jnp.where(pad, -1e9, 0.0).astype(jnp.float32).reshape(B, 1, L)

    out, attw = encoder_layer_fused(params, x, bias,
                                    num_heads=num_heads, activation=activation,
                                    return_attn_weights=True)

    out_dict = {
        "temporal": out[:, :Lt, :].reshape(t_shape),
        "static": out[:, Lt:, :],
    }
    attn_weight_dict = {"flattened": attw}     # head-averaged, [B, L, L]
    return out_dict, attn_weight_dict


# ----------------------------------------------------------------------------
# parameters (torch-like default inits)
# ----------------------------------------------------------------------------
def init_params(key, d_model, d_ff):
    ks = jax.random.split(key, 4)

    def lin(k, fan_in, fan_out):
        kw, kb = jax.random.split(k)
        bound = 1.0 / math.sqrt(fan_in)
        w = jax.random.uniform(kw, (fan_in, fan_out), jnp.float32, -bound, bound)
        b = jax.random.uniform(kb, (fan_out,), jnp.float32, -bound, bound)
        return w, b

    wqkv, bqkv = lin(ks[0], d_model, 3 * d_model)
    wo, bo = lin(ks[1], d_model, d_model)
    w1, b1 = lin(ks[2], d_model, d_ff)
    w2, b2 = lin(ks[3], d_ff, d_model)
    return {
        "sa_norm_g": jnp.ones((d_model,), jnp.float32),
        "sa_norm_b": jnp.zeros((d_model,), jnp.float32),
        "attn_wqkv": wqkv, "attn_bqkv": bqkv,
        "attn_wo": wo, "attn_bo": bo,
        "ff_norm_g": jnp.ones((d_model,), jnp.float32),
        "ff_norm_b": jnp.zeros((d_model,), jnp.float32),
        "ff_w1": w1, "ff_b1": b1,
        "ff_w2": w2, "ff_b2": b2,
    }


# ----------------------------------------------------------------------------
# plain-JAX reference (f32, HIGHEST precision) for correctness checking
# ----------------------------------------------------------------------------
def _ref_forward(params, x, bias, num_heads, activation):
    B, L, D = x.shape
    H = num_heads
    hd = D // H
    prec = jax.lax.Precision.HIGHEST

    def ln(v, g, b, eps=1e-5):
        mu = v.mean(-1, keepdims=True)
        var = ((v - mu) ** 2).mean(-1, keepdims=True)
        return (v - mu) / jnp.sqrt(var + eps) * g + b

    xn = ln(x, params["sa_norm_g"], params["sa_norm_b"])
    qkv = jnp.einsum("bld,df->blf", xn, params["attn_wqkv"],
                     precision=prec) + params["attn_bqkv"]
    q, k, v = jnp.split(qkv, 3, axis=-1)
    q = q.reshape(B, L, H, hd).transpose(0, 2, 1, 3)
    k = k.reshape(B, L, H, hd).transpose(0, 2, 1, 3)
    v = v.reshape(B, L, H, hd).transpose(0, 2, 1, 3)
    s = jnp.einsum("bhqd,bhkd->bhqk", q, k, precision=prec) / math.sqrt(hd)
    s = s + bias[:, None, :, :]
    p = jax.nn.softmax(s, axis=-1)
    o = jnp.einsum("bhqk,bhkd->bhqd", p, v, precision=prec)
    o = o.transpose(0, 2, 1, 3).reshape(B, L, D)
    attn = jnp.einsum("bld,df->blf", o, params["attn_wo"],
                      precision=prec) + params["attn_bo"]
    x1 = x + attn
    xn2 = ln(x1, params["ff_norm_g"], params["ff_norm_b"])
    h1 = jnp.einsum("bld,df->blf", xn2, params["ff_w1"],
                    precision=prec) + params["ff_b1"]
    h1 = _gelu_tanh(h1) if activation == "gelu" else jnp.maximum(h1, 0.0)
    h2 = jnp.einsum("blf,fd->bld", h1, params["ff_w2"],
                    precision=prec) + params["ff_b2"]
    return x1 + h2, p.mean(axis=1)


# ----------------------------------------------------------------------------
# main
# ----------------------------------------------------------------------------
if __name__ == "__main__":
    D_MODEL, N_HEAD, D_FF = 128, 4, 256
    BATCH, N_VARS, SEQ, N_STATIC = 4, 3, 8, 8          # L = 24 + 8 = 32
    ACTIVATION = "gelu"

    key = jax.random.PRNGKey(0)
    kp, kt, ks = jax.random.split(key, 3)
    params = init_params(kp, D_MODEL, D_FF)

    temporal = jax.random.normal(kt, (BATCH, N_VARS, SEQ, D_MODEL), jnp.float32)
    static = jax.random.normal(ks, (BATCH, N_STATIC, D_MODEL), jnp.float32)
    src_dict = {"temporal": temporal, "static": static}

    t_mask = jnp.zeros((BATCH, N_VARS, SEQ), dtype=bool)
    s_mask = jnp.zeros((BATCH, N_STATIC), dtype=bool)
    s_mask = s_mask.at[1, -2:].set(True).at[3, -3:].set(True)
    src_key_padding_mask_dict = {"temporal": t_mask, "static": s_mask}

    out_dict, attw_dict = encoder_layer_forward(
        params, src_dict, src_key_padding_mask_dict,
        num_heads=N_HEAD, activation=ACTIVATION)
    out_dict = jax.block_until_ready(out_dict)
    attw_dict = jax.block_until_ready(attw_dict)

    # --- correctness check against the plain-JAX f32 reference ---------------
    # (kernel uses bf16 MXU operands, so tolerances are widened accordingly)
    Lt = N_VARS * SEQ
    x_flat = jnp.concatenate([temporal.reshape(BATCH, Lt, D_MODEL), static], axis=1)
    pad = jnp.concatenate([t_mask.reshape(BATCH, Lt), s_mask], axis=1)
    bias = jnp.where(pad, -1e9, 0.0).astype(jnp.float32).reshape(BATCH, 1, -1)
    ref_out, ref_w = _ref_forward(params, x_flat, bias, N_HEAD, ACTIVATION)

    assert jnp.allclose(out_dict["temporal"].reshape(BATCH, Lt, D_MODEL),
                        ref_out[:, :Lt], atol=2e-2, rtol=2e-2)
    assert jnp.allclose(out_dict["static"], ref_out[:, Lt:], atol=2e-2, rtol=2e-2)
    assert jnp.allclose(attw_dict["flattened"], ref_w, atol=5e-3, rtol=5e-3)
    assert out_dict["temporal"].shape == temporal.shape
    assert out_dict["static"].shape == static.shape

    print("KERNEL_OK")
</pallas_src>

<mosaic_0001>
module attributes {stable_mosaic.version = 11 : i64} {
  func.func @_encoder_layer_kernel(%arg0: i32, %arg1: memref<2x32x128xf32, #tpu.memory_space<vmem>>, %arg2: memref<2x1x128xf32, #tpu.memory_space<vmem>>, %arg3: memref<128x128xf32, #tpu.memory_space<vmem>>, %arg4: memref<128x128xf32, #tpu.memory_space<vmem>>, %arg5: memref<128x32xf32, #tpu.memory_space<vmem>>, %arg6: memref<1x128xf32, #tpu.memory_space<vmem>>, %arg7: memref<1x128xf32, #tpu.memory_space<vmem>>, %arg8: memref<128x384xbf16, #tpu.memory_space<vmem>>, %arg9: memref<1x384xf32, #tpu.memory_space<vmem>>, %arg10: memref<128x128xbf16, #tpu.memory_space<vmem>>, %arg11: memref<1x128xf32, #tpu.memory_space<vmem>>, %arg12: memref<1x128xf32, #tpu.memory_space<vmem>>, %arg13: memref<1x128xf32, #tpu.memory_space<vmem>>, %arg14: memref<128x256xbf16, #tpu.memory_space<vmem>>, %arg15: memref<1x256xf32, #tpu.memory_space<vmem>>, %arg16: memref<256x128xbf16, #tpu.memory_space<vmem>>, %arg17: memref<1x128xf32, #tpu.memory_space<vmem>>, %arg18: memref<2x32x128xf32, #tpu.memory_space<vmem>>, %arg19: memref<2x32x32xf32, #tpu.memory_space<vmem>>) attributes {dimension_semantics = [#tpu.dimension_semantics<parallel>], iteration_bounds = array<i64: 2>, scalar_prefetch = 0 : i64, scratch_operands = 0 : i64, tpu.core_type = #tpu.core_type<tc>, window_params = [{transform_indices = @transform_0, window_bounds = array<i64: 2, 32, 128>}, {transform_indices = @transform_1, window_bounds = array<i64: 2, 1, 128>}, {pipeline_mode = #tpu.pipeline_mode<synchronous>, transform_indices = @transform_2, window_bounds = array<i64: 128, 128>}, {pipeline_mode = #tpu.pipeline_mode<synchronous>, transform_indices = @transform_3, window_bounds = array<i64: 128, 128>}, {pipeline_mode = #tpu.pipeline_mode<synchronous>, transform_indices = @transform_4, window_bounds = array<i64: 128, 32>}, {pipeline_mode = #tpu.pipeline_mode<synchronous>, transform_indices = @transform_5, window_bounds = array<i64: 1, 128>}, {pipeline_mode = #tpu.pipeline_mode<synchronous>, transform_indices = @transform_6, window_bounds = array<i64: 1, 128>}, {pipeline_mode = #tpu.pipeline_mode<synchronous>, transform_indices = @transform_7, window_bounds = array<i64: 128, 384>}, {pipeline_mode = #tpu.pipeline_mode<synchronous>, transform_indices = @transform_8, window_bounds = array<i64: 1, 384>}, {pipeline_mode = #tpu.pipeline_mode<synchronous>, transform_indices = @transform_9, window_bounds = array<i64: 128, 128>}, {pipeline_mode = #tpu.pipeline_mode<synchronous>, transform_indices = @transform_10, window_bounds = array<i64: 1, 128>}, {pipeline_mode = #tpu.pipeline_mode<synchronous>, transform_indices = @transform_11, window_bounds = array<i64: 1, 128>}, {pipeline_mode = #tpu.pipeline_mode<synchronous>, transform_indices = @transform_12, window_bounds = array<i64: 1, 128>}, {pipeline_mode = #tpu.pipeline_mode<synchronous>, transform_indices = @transform_13, window_bounds = array<i64: 128, 256>}, {pipeline_mode = #tpu.pipeline_mode<synchronous>, transform_indices = @transform_14, window_bounds = array<i64: 1, 256>}, {pipeline_mode = #tpu.pipeline_mode<synchronous>, transform_indices = @transform_15, window_bounds = array<i64: 256, 128>}, {pipeline_mode = #tpu.pipeline_mode<synchronous>, transform_indices = @transform_16, window_bounds = array<i64: 1, 128>}, {transform_indices = @transform_17, window_bounds = array<i64: 2, 32, 128>}, {transform_indices = @transform_18, window_bounds = array<i64: 2, 32, 32>}]} {
    %c0 = arith.constant 0 : index
    %c0_0 = arith.constant 0 : index
    %c0_1 = arith.constant 0 : index
    %0 = vector.load %arg1[%c0, %c0_0, %c0_1] : memref<2x32x128xf32, #tpu.memory_space<vmem>>, vector<2x32x128xf32>
    %1 = vector.shape_cast %0 : vector<2x32x128xf32> to vector<64x128xf32>
    %c0_2 = arith.constant 0 : index
    %c0_3 = arith.constant 0 : index
    %c0_4 = arith.constant 0 : index
    %2 = vector.load %arg2[%c0_2, %c0_3, %c0_4] : memref<2x1x128xf32, #tpu.memory_space<vmem>>, vector<2x1x128xf32>
    %c0_5 = arith.constant 0 : index
    %c0_6 = arith.constant 0 : index
    %3 = vector.load %arg3[%c0_5, %c0_6] : memref<128x128xf32, #tpu.memory_space<vmem>>, vector<128x128xf32>
    %c0_7 = arith.constant 0 : index
    %c0_8 = arith.constant 0 : index
    %4 = vector.load %arg4[%c0_7, %c0_8] : memref<128x128xf32, #tpu.memory_space<vmem>>, vector<128x128xf32>
    %c0_9 = arith.constant 0 : index
    %c0_10 = arith.constant 0 : index
    %5 = vector.load %arg5[%c0_9, %c0_10] : memref<128x32xf32, #tpu.memory_space<vmem>>, vector<128x32xf32>
    %c0_11 = arith.constant 0 : index
    %c0_12 = arith.constant 0 : index
    %6 = vector.load %arg6[%c0_11, %c0_12] : memref<1x128xf32, #tpu.memory_space<vmem>>, vector<1x128xf32>
    %c0_13 = arith.constant 0 : index
    %c0_14 = arith.constant 0 : index
    %7 = vector.load %arg7[%c0_13, %c0_14] : memref<1x128xf32, #tpu.memory_space<vmem>>, vector<1x128xf32>
    %cst = arith.constant dense<0.000000e+00> : vector<64xf32>
    %8 = vector.multi_reduction <add>, %1, %cst [1] : vector<64x128xf32> to vector<64xf32>
    %9 = vector.shape_cast %8 : vector<64xf32> to vector<64x1xf32>
    %cst_15 = arith.constant 1.280000e+02 : f32
    %10 = vector.broadcast %cst_15 : f32 to vector<64x1xf32>
    %11 = arith.divf %9, %10 : vector<64x1xf32>
    %12 = vector.broadcast %11 : vector<64x1xf32> to vector<64x128xf32>
    %13 = arith.subf %1, %12 : vector<64x128xf32>
    %14 = arith.mulf %13, %13 : vector<64x128xf32>
    %cst_16 = arith.constant dense<0.000000e+00> : vector<64xf32>
    %15 = vector.multi_reduction <add>, %14, %cst_16 [1] : vector<64x128xf32> to vector<64xf32>
    %16 = vector.shape_cast %15 : vector<64xf32> to vector<64x1xf32>
    %cst_17 = arith.constant 1.280000e+02 : f32
    %17 = vector.broadcast %cst_17 : f32 to vector<64x1xf32>
    %18 = arith.divf %16, %17 : vector<64x1xf32>
    %cst_18 = arith.constant 9.99999974E-6 : f32
    %19 = vector.broadcast %cst_18 : f32 to vector<64x1xf32>
    %20 = arith.addf %18, %19 : vector<64x1xf32>
    %21 = math.rsqrt %20 : vector<64x1xf32>
    %22 = vector.broadcast %21 : vector<64x1xf32> to vector<64x128xf32>
    %23 = arith.mulf %13, %22 : vector<64x128xf32>
    %24 = vector.broadcast %6 : vector<1x128xf32> to vector<64x128xf32>
    %25 = arith.mulf %23, %24 : vector<64x128xf32>
    %26 = vector.broadcast %7 : vector<1x128xf32> to vector<64x128xf32>
    %27 = arith.addf %25, %26 : vector<64x128xf32>
    %28 = arith.truncf %27 : vector<64x128xf32> to vector<64x128xbf16>
    %c0_19 = arith.constant 0 : index
    %c0_20 = arith.constant 0 : index
    %29 = vector.load %arg8[%c0_19, %c0_20] : memref<128x384xbf16, #tpu.memory_space<vmem>>, vector<128x384xbf16>
    %cst_21 = arith.constant dense<0.000000e+00> : vector<64x384xf32>
    %30 = tpu.matmul %28, %29, %cst_21 {dimension_numbers = #tpu.dot_dimension_numbers<[1], [0], [0], [1], [0, 0, 1, 1], [], []>} : vector<64x128xbf16>, vector<128x384xbf16>, vector<64x384xf32> -> vector<64x384xf32>
    %c0_22 = arith.constant 0 : index
    %c0_23 = arith.constant 0 : index
    %31 = vector.load %arg9[%c0_22, %c0_23] : memref<1x384xf32, #tpu.memory_space<vmem>>, vector<1x384xf32>
    %32 = vector.broadcast %31 : vector<1x384xf32> to vector<64x384xf32>
    %33 = arith.addf %30, %32 : vector<64x384xf32>
    %34 = vector.extract_strided_slice %33 {offsets = [0, 0], sizes = [32, 384], strides = [1, 1]} : vector<64x384xf32> to vector<32x384xf32>
    %35 = vector.extract_strided_slice %34 {offsets = [0, 0], sizes = [32, 128], strides = [1, 1]} : vector<32x384xf32> to vector<32x128xf32>
    %36 = vector.extract_strided_slice %34 {offsets = [0, 128], sizes = [32, 128], strides = [1, 1]} : vector<32x384xf32> to vector<32x128xf32>
    %37 = vector.extract_strided_slice %34 {offsets = [0, 256], sizes = [32, 128], strides = [1, 1]} : vector<32x384xf32> to vector<32x128xf32>
    %38 = tpu.concatenate %36, %36, %36, %36 in 0 : vector<32x128xf32>, vector<32x128xf32>, vector<32x128xf32>, vector<32x128xf32> -> vector<128x128xf32>
    %39 = arith.mulf %38, %3 : vector<128x128xf32>
    %40 = arith.truncf %39 : vector<128x128xf32> to vector<128x128xbf16>
    %41 = tpu.concatenate %37, %37, %37, %37 in 0 : vector<32x128xf32>, vector<32x128xf32>, vector<32x128xf32>, vector<32x128xf32> -> vector<128x128xf32>
    %42 = arith.mulf %41, %3 : vector<128x128xf32>
    %43 = arith.truncf %42 : vector<128x128xf32> to vector<128x128xbf16>
    %44 = arith.truncf %35 : vector<32x128xf32> to vector<32x128xbf16>
    %cst_24 = arith.constant dense<0.000000e+00> : vector<32x128xf32>
    %45 = tpu.matmul %44, %40, %cst_24 {dimension_numbers = #tpu.dot_dimension_numbers<[1], [1], [0], [0], [0, 0, 1, 0], [], []>} : vector<32x128xbf16>, vector<128x128xbf16>, vector<32x128xf32> -> vector<32x128xf32>
    %cst_25 = arith.constant 0.176776692 : f32
    %46 = vector.broadcast %cst_25 : f32 to vector<32x128xf32>
    %47 = arith.mulf %45, %46 : vector<32x128xf32>
    %48 = vector.extract_strided_slice %2 {offsets = [0, 0, 0], sizes = [1, 1, 128], strides = [1, 1, 1]} : vector<2x1x128xf32> to vector<1x1x128xf32>
    %49 = vector.shape_cast %48 : vector<1x1x128xf32> to vector<1x128xf32>
    %50 = vector.broadcast %49 : vector<1x128xf32> to vector<32x128xf32>
    %51 = arith.addf %47, %50 : vector<32x128xf32>
    %cst_26 = arith.constant dense<0xFF800000> : vector<32xf32>
    %52 = vector.multi_reduction <maximumf>, %51, %cst_26 [1] : vector<32x128xf32> to vector<32xf32>
    %53 = vector.shape_cast %52 : vector<32xf32> to vector<32x1xf32>
    %54 = vector.broadcast %53 : vector<32x1xf32> to vector<32x128xf32>
    %55 = arith.subf %51, %54 : vector<32x128xf32>
    %56 = math.exp %55 : vector<32x128xf32>
    %cst_27 = arith.constant dense<0.000000e+00> : vector<32x128xf32>
    %57 = tpu.matmul %56, %4, %cst_27 {dimension_numbers = #tpu.dot_dimension_numbers<[1], [0], [0], [1], [0, 0, 1, 1], [], []>} : vector<32x128xf32>, vector<128x128xf32>, vector<32x128xf32> -> vector<32x128xf32>
    %58 = tpu.reciprocal %57 {approx = true} : vector<32x128xf32> -> vector<32x128xf32>
    %59 = arith.mulf %56, %58 : vector<32x128xf32>
    %60 = arith.truncf %59 : vector<32x128xf32> to vector<32x128xbf16>
    %cst_28 = arith.constant dense<0.000000e+00> : vector<32x128xf32>
    %61 = tpu.matmul %60, %43, %cst_28 {dimension_numbers = #tpu.dot_dimension_numbers<[1], [0], [0], [1], [0, 0, 1, 1], [], []>} : vector<32x128xbf16>, vector<128x128xbf16>, vector<32x128xf32> -> vector<32x128xf32>
    %cst_29 = arith.constant dense<0.000000e+00> : vector<32x32xf32>
    %62 = tpu.matmul %59, %5, %cst_29 {dimension_numbers = #tpu.dot_dimension_numbers<[1], [0], [0], [1], [0, 0, 1, 1], [], []>} : vector<32x128xf32>, vector<128x32xf32>, vector<32x32xf32> -> vector<32x32xf32>
    %cst_30 = arith.constant 2.500000e-01 : f32
    %63 = vector.broadcast %cst_30 : f32 to vector<32x32xf32>
    %64 = arith.mulf %62, %63 : vector<32x32xf32>
    %c0_31 = arith.constant 0 : index
    %c0_32 = arith.constant 0 : index
    %c0_33 = arith.constant 0 : index
    %65 = vector.load %arg19[%c0_31, %c0_32, %c0_33] : memref<2x32x32xf32, #tpu.memory_space<vmem>>, vector<1x32x32xf32>
    %66 = vector.shape_cast %65 : vector<1x32x32xf32> to vector<32x32xf32>
    %67 = vector.shape_cast %64 : vector<32x32xf32> to vector<1x32x32xf32>
    tpu.vector_store %arg19[%c0_31, %c0_32, %c0_33], %67 {strides = array<i32>} : memref<2x32x32xf32, #tpu.memory_space<vmem>>, vector<1x32x32xf32>,
    %68 = vector.extract_strided_slice %33 {offsets = [32, 0], sizes = [32, 384], strides = [1, 1]} : vector<64x384xf32> to vector<32x384xf32>
    %69 = vector.extract_strided_slice %68 {offsets = [0, 0], sizes = [32, 128], strides = [1, 1]} : vector<32x384xf32> to vector<32x128xf32>
    %70 = vector.extract_strided_slice %68 {offsets = [0, 128], sizes = [32, 128], strides = [1, 1]} : vector<32x384xf32> to vector<32x128xf32>
    %71 = vector.extract_strided_slice %68 {offsets = [0, 256], sizes = [32, 128], strides = [1, 1]} : vector<32x384xf32> to vector<32x128xf32>
    %72 = tpu.concatenate %70, %70, %70, %70 in 0 : vector<32x128xf32>, vector<32x128xf32>, vector<32x128xf32>, vector<32x128xf32> -> vector<128x128xf32>
    %73 = arith.mulf %72, %3 : vector<128x128xf32>
    %74 = arith.truncf %73 : vector<128x128xf32> to vector<128x128xbf16>
    %75 = tpu.concatenate %71, %71, %71, %71 in 0 : vector<32x128xf32>, vector<32x128xf32>, vector<32x128xf32>, vector<32x128xf32> -> vector<128x128xf32>
    %76 = arith.mulf %75, %3 : vector<128x128xf32>
    %77 = arith.truncf %76 : vector<128x128xf32> to vector<128x128xbf16>
    %78 = arith.truncf %69 : vector<32x128xf32> to vector<32x128xbf16>
    %cst_34 = arith.constant dense<0.000000e+00> : vector<32x128xf32>
    %79 = tpu.matmul %78, %74, %cst_34 {dimension_numbers = #tpu.dot_dimension_numbers<[1], [1], [0], [0], [0, 0, 1, 0], [], []>} : vector<32x128xbf16>, vector<128x128xbf16>, vector<32x128xf32> -> vector<32x128xf32>
    %cst_35 = arith.constant 0.176776692 : f32
    %80 = vector.broadcast %cst_35 : f32 to vector<32x128xf32>
    %81 = arith.mulf %79, %80 : vector<32x128xf32>
    %82 = vector.extract_strided_slice %2 {offsets = [1, 0, 0], sizes = [1, 1, 128], strides = [1, 1, 1]} : vector<2x1x128xf32> to vector<1x1x128xf32>
    %83 = vector.shape_cast %82 : vector<1x1x128xf32> to vector<1x128xf32>
    %84 = vector.broadcast %83 : vector<1x128xf32> to vector<32x128xf32>
    %85 = arith.addf %81, %84 : vector<32x128xf32>
    %cst_36 = arith.constant dense<0xFF800000> : vector<32xf32>
    %86 = vector.multi_reduction <maximumf>, %85, %cst_36 [1] : vector<32x128xf32> to vector<32xf32>
    %87 = vector.shape_cast %86 : vector<32xf32> to vector<32x1xf32>
    %88 = vector.broadcast %87 : vector<32x1xf32> to vector<32x128xf32>
    %89 = arith.subf %85, %88 : vector<32x128xf32>
    %90 = math.exp %89 : vector<32x128xf32>
    %cst_37 = arith.constant dense<0.000000e+00> : vector<32x128xf32>
    %91 = tpu.matmul %90, %4, %cst_37 {dimension_numbers = #tpu.dot_dimension_numbers<[1], [0], [0], [1], [0, 0, 1, 1], [], []>} : vector<32x128xf32>, vector<128x128xf32>, vector<32x128xf32> -> vector<32x128xf32>
    %92 = tpu.reciprocal %91 {approx = true} : vector<32x128xf32> -> vector<32x128xf32>
    %93 = arith.mulf %90, %92 : vector<32x128xf32>
    %94 = arith.truncf %93 : vector<32x128xf32> to vector<32x128xbf16>
    %cst_38 = arith.constant dense<0.000000e+00> : vector<32x128xf32>
    %95 = tpu.matmul %94, %77, %cst_38 {dimension_numbers = #tpu.dot_dimension_numbers<[1], [0], [0], [1], [0, 0, 1, 1], [], []>} : vector<32x128xbf16>, vector<128x128xbf16>, vector<32x128xf32> -> vector<32x128xf32>
    %cst_39 = arith.constant dense<0.000000e+00> : vector<32x32xf32>
    %96 = tpu.matmul %93, %5, %cst_39 {dimension_numbers = #tpu.dot_dimension_numbers<[1], [0], [0], [1], [0, 0, 1, 1], [], []>} : vector<32x128xf32>, vector<128x32xf32>, vector<32x32xf32> -> vector<32x32xf32>
    %cst_40 = arith.constant 2.500000e-01 : f32
    %97 = vector.broadcast %cst_40 : f32 to vector<32x32xf32>
    %98 = arith.mulf %96, %97 : vector<32x32xf32>
    %c1 = arith.constant 1 : index
    %c0_41 = arith.constant 0 : index
    %c0_42 = arith.constant 0 : index
    %99 = vector.load %arg19[%c1, %c0_41, %c0_42] : memref<2x32x32xf32, #tpu.memory_space<vmem>>, vector<1x32x32xf32>
    %100 = vector.shape_cast %99 : vector<1x32x32xf32> to vector<32x32xf32>
    %101 = vector.shape_cast %98 : vector<32x32xf32> to vector<1x32x32xf32>
    tpu.vector_store %arg19[%c1, %c0_41, %c0_42], %101 {strides = array<i32>} : memref<2x32x32xf32, #tpu.memory_space<vmem>>, vector<1x32x32xf32>,
    %102 = tpu.concatenate %61, %95 in 0 : vector<32x128xf32>, vector<32x128xf32> -> vector<64x128xf32>
    %103 = arith.truncf %102 : vector<64x128xf32> to vector<64x128xbf16>
    %c0_43 = arith.constant 0 : index
    %c0_44 = arith.constant 0 : index
    %104 = vector.load %arg10[%c0_43, %c0_44] : memref<128x128xbf16, #tpu.memory_space<vmem>>, vector<128x128xbf16>
    %cst_45 = arith.constant dense<0.000000e+00> : vector<64x128xf32>
    %105 = tpu.matmul %103, %104, %cst_45 {dimension_numbers = #tpu.dot_dimension_numbers<[1], [0], [0], [1], [0, 0, 1, 1], [], []>} : vector<64x128xbf16>, vector<128x128xbf16>, vector<64x128xf32> -> vector<64x128xf32>
    %c0_46 = arith.constant 0 : index
    %c0_47 = arith.constant 0 : index
    %106 = vector.load %arg11[%c0_46, %c0_47] : memref<1x128xf32, #tpu.memory_space<vmem>>, vector<1x128xf32>
    %107 = vector.broadcast %106 : vector<1x128xf32> to vector<64x128xf32>
    %108 = arith.addf %105, %107 : vector<64x128xf32>
    %109 = arith.addf %1, %108 : vector<64x128xf32>
    %c0_48 = arith.constant 0 : index
    %c0_49 = arith.constant 0 : index
    %110 = vector.load %arg12[%c0_48, %c0_49] : memref<1x128xf32, #tpu.memory_space<vmem>>, vector<1x128xf32>
    %c0_50 = arith.constant 0 : index
    %c0_51 = arith.constant 0 : index
    %111 = vector.load %arg13[%c0_50, %c0_51] : memref<1x128xf32, #tpu.memory_space<vmem>>, vector<1x128xf32>
    %cst_52 = arith.constant dense<0.000000e+00> : vector<64xf32>
    %112 = vector.multi_reduction <add>, %109, %cst_52 [1] : vector<64x128xf32> to vector<64xf32>
    %113 = vector.shape_cast %112 : vector<64xf32> to vector<64x1xf32>
    %cst_53 = arith.constant 1.280000e+02 : f32
    %114 = vector.broadcast %cst_53 : f32 to vector<64x1xf32>
    %115 = arith.divf %113, %114 : vector<64x1xf32>
    %116 = vector.broadcast %115 : vector<64x1xf32> to vector<64x128xf32>
    %117 = arith.subf %109, %116 : vector<64x128xf32>
    %118 = arith.mulf %117, %117 : vector<64x128xf32>
    %cst_54 = arith.constant dense<0.000000e+00> : vector<64xf32>
    %119 = vector.multi_reduction <add>, %118, %cst_54 [1] : vector<64x128xf32> to vector<64xf32>
    %120 = vector.shape_cast %119 : vector<64xf32> to vector<64x1xf32>
    %cst_55 = arith.constant 1.280000e+02 : f32
    %121 = vector.broadcast %cst_55 : f32 to vector<64x1xf32>
    %122 = arith.divf %120, %121 : vector<64x1xf32>
    %cst_56 = arith.constant 9.99999974E-6 : f32
    %123 = vector.broadcast %cst_56 : f32 to vector<64x1xf32>
    %124 = arith.addf %122, %123 : vector<64x1xf32>
    %125 = math.rsqrt %124 : vector<64x1xf32>
    %126 = vector.broadcast %125 : vector<64x1xf32> to vector<64x128xf32>
    %127 = arith.mulf %117, %126 : vector<64x128xf32>
    %128 = vector.broadcast %110 : vector<1x128xf32> to vector<64x128xf32>
    %129 = arith.mulf %127, %128 : vector<64x128xf32>
    %130 = vector.broadcast %111 : vector<1x128xf32> to vector<64x128xf32>
    %131 = arith.addf %129, %130 : vector<64x128xf32>
    %132 = arith.truncf %131 : vector<64x128xf32> to vector<64x128xbf16>
    %c0_57 = arith.constant 0 : index
    %c0_58 = arith.constant 0 : index
    %133 = vector.load %arg14[%c0_57, %c0_58] : memref<128x256xbf16, #tpu.memory_space<vmem>>, vector<128x256xbf16>
    %cst_59 = arith.constant dense<0.000000e+00> : vector<64x256xf32>
    %134 = tpu.matmul %132, %133, %cst_59 {dimension_numbers = #tpu.dot_dimension_numbers<[1], [0], [0], [1], [0, 0, 1, 1], [], []>} : vector<64x128xbf16>, vector<128x256xbf16>, vector<64x256xf32> -> vector<64x256xf32>
    %c0_60 = arith.constant 0 : index
    %c0_61 = arith.constant 0 : index
    %135 = vector.load %arg15[%c0_60, %c0_61] : memref<1x256xf32, #tpu.memory_space<vmem>>, vector<1x256xf32>
    %136 = vector.broadcast %135 : vector<1x256xf32> to vector<64x256xf32>
    %137 = arith.addf %134, %136 : vector<64x256xf32>
    %cst_62 = arith.constant 5.000000e-01 : f32
    %138 = vector.broadcast %cst_62 : f32 to vector<64x256xf32>
    %139 = arith.mulf %138, %137 : vector<64x256xf32>
    %cst_63 = arith.constant 4.471500e-02 : f32
    %140 = vector.broadcast %cst_63 : f32 to vector<64x256xf32>
    %141 = arith.mulf %140, %137 : vector<64x256xf32>
    %142 = arith.mulf %141, %137 : vector<64x256xf32>
    %143 = arith.mulf %142, %137 : vector<64x256xf32>
    %144 = arith.addf %137, %143 : vector<64x256xf32>
    %cst_64 = arith.constant 0.797884583 : f32
    %145 = vector.broadcast %cst_64 : f32 to vector<64x256xf32>
    %146 = arith.mulf %145, %144 : vector<64x256xf32>
    %147 = math.tanh %146 : vector<64x256xf32>
    %cst_65 = arith.constant 1.000000e+00 : f32
    %148 = vector.broadcast %cst_65 : f32 to vector<64x256xf32>
    %149 = arith.addf %148, %147 : vector<64x256xf32>
    %150 = arith.mulf %139, %149 : vector<64x256xf32>
    %151 = arith.truncf %150 : vector<64x256xf32> to vector<64x256xbf16>
    %c0_66 = arith.constant 0 : index
    %c0_67 = arith.constant 0 : index
    %152 = vector.load %arg16[%c0_66, %c0_67] : memref<256x128xbf16, #tpu.memory_space<vmem>>, vector<256x128xbf16>
    %cst_68 = arith.constant dense<0.000000e+00> : vector<64x128xf32>
    %153 = tpu.matmul %151, %152, %cst_68 {dimension_numbers = #tpu.dot_dimension_numbers<[1], [0], [0], [1], [0, 0, 1, 1], [], []>} : vector<64x256xbf16>, vector<256x128xbf16>, vector<64x128xf32> -> vector<64x128xf32>
    %c0_69 = arith.constant 0 : index
    %c0_70 = arith.constant 0 : index
    %154 = vector.load %arg17[%c0_69, %c0_70] : memref<1x128xf32, #tpu.memory_space<vmem>>, vector<1x128xf32>
    %155 = vector.broadcast %154 : vector<1x128xf32> to vector<64x128xf32>
    %156 = arith.addf %153, %155 : vector<64x128xf32>
    %157 = arith.addf %109, %156 : vector<64x128xf32>
    %158 = vector.shape_cast %157 : vector<64x128xf32> to vector<2x32x128xf32>
    %c0_71 = arith.constant 0 : index
    %c0_72 = arith.constant 0 : index
    %c0_73 = arith.constant 0 : index
    %159 = vector.load %arg18[%c0_71, %c0_72, %c0_73] : memref<2x32x128xf32, #tpu.memory_space<vmem>>, vector<2x32x128xf32>
    tpu.vector_store %arg18[%c0_71, %c0_72, %c0_73], %158 {strides = array<i32>} : memref<2x32x128xf32, #tpu.memory_space<vmem>>, vector<2x32x128xf32>,
    return
  }
  func.func @transform_0(%arg0: i32) -> (i32, i32, i32) {
    %c0_i32 = arith.constant 0 : i32
    %c0_i32_0 = arith.constant 0 : i32
    %c0_i32_1 = arith.constant 0 : i32
    return %arg0, %c0_i32, %c0_i32_0 : i32, i32, i32
  }
  func.func @transform_1(%arg0: i32) -> (i32, i32, i32) {
    %c0_i32 = arith.constant 0 : i32
    %c0_i32_0 = arith.constant 0 : i32
    %c0_i32_1 = arith.constant 0 : i32
    return %arg0, %c0_i32, %c0_i32_0 : i32, i32, i32
  }
  func.func @transform_2(%arg0: i32) -> (i32, i32) {
    %c0_i32 = arith.constant 0 : i32
    %c0_i32_0 = arith.constant 0 : i32
    %c0_i32_1 = arith.constant 0 : i32
    return %c0_i32, %c0_i32_0 : i32, i32
  }
  func.func @transform_3(%arg0: i32) -> (i32, i32) {
    %c0_i32 = arith.constant 0 : i32
    %c0_i32_0 = arith.constant 0 : i32
    %c0_i32_1 = arith.constant 0 : i32
    return %c0_i32, %c0_i32_0 : i32, i32
  }
  func.func @transform_4(%arg0: i32) -> (i32, i32) {
    %c0_i32 = arith.constant 0 : i32
    %c0_i32_0 = arith.constant 0 : i32
    %c0_i32_1 = arith.constant 0 : i32
    return %c0_i32, %c0_i32_0 : i32, i32
  }
  func.func @transform_5(%arg0: i32) -> (i32, i32) {
    %c0_i32 = arith.constant 0 : i32
    %c0_i32_0 = arith.constant 0 : i32
    %c0_i32_1 = arith.constant 0 : i32
    return %c0_i32, %c0_i32_0 : i32, i32
  }
  func.func @transform_6(%arg0: i32) -> (i32, i32) {
    %c0_i32 = arith.constant 0 : i32
    %c0_i32_0 = arith.constant 0 : i32
    %c0_i32_1 = arith.constant 0 : i32
    return %c0_i32, %c0_i32_0 : i32, i32
  }
  func.func @transform_7(%arg0: i32) -> (i32, i32) {
    %c0_i32 = arith.constant 0 : i32
    %c0_i32_0 = arith.constant 0 : i32
    %c0_i32_1 = arith.constant 0 : i32
    return %c0_i32, %c0_i32_0 : i32, i32
  }
  func.func @transform_8(%arg0: i32) -> (i32, i32) {
    %c0_i32 = arith.constant 0 : i32
    %c0_i32_0 = arith.constant 0 : i32
    %c0_i32_1 = arith.constant 0 : i32
    return %c0_i32, %c0_i32_0 : i32, i32
  }
  func.func @transform_9(%arg0: i32) -> (i32, i32) {
    %c0_i32 = arith.constant 0 : i32
    %c0_i32_0 = arith.constant 0 : i32
    %c0_i32_1 = arith.constant 0 : i32
    return %c0_i32, %c0_i32_0 : i32, i32
  }
  func.func @transform_10(%arg0: i32) -> (i32, i32) {
    %c0_i32 = arith.constant 0 : i32
    %c0_i32_0 = arith.constant 0 : i32
    %c0_i32_1 = arith.constant 0 : i32
    return %c0_i32, %c0_i32_0 : i32, i32
  }
  func.func @transform_11(%arg0: i32) -> (i32, i32) {
    %c0_i32 = arith.constant 0 : i32
    %c0_i32_0 = arith.constant 0 : i32
    %c0_i32_1 = arith.constant 0 : i32
    return %c0_i32, %c0_i32_0 : i32, i32
  }
  func.func @transform_12(%arg0: i32) -> (i32, i32) {
    %c0_i32 = arith.constant 0 : i32
    %c0_i32_0 = arith.constant 0 : i32
    %c0_i32_1 = arith.constant 0 : i32
    return %c0_i32, %c0_i32_0 : i32, i32
  }
  func.func @transform_13(%arg0: i32) -> (i32, i32) {
    %c0_i32 = arith.constant 0 : i32
    %c0_i32_0 = arith.constant 0 : i32
    %c0_i32_1 = arith.constant 0 : i32
    return %c0_i32, %c0_i32_0 : i32, i32
  }
  func.func @transform_14(%arg0: i32) -> (i32, i32) {
    %c0_i32 = arith.constant 0 : i32
    %c0_i32_0 = arith.constant 0 : i32
    %c0_i32_1 = arith.constant 0 : i32
    return %c0_i32, %c0_i32_0 : i32, i32
  }
  func.func @transform_15(%arg0: i32) -> (i32, i32) {
    %c0_i32 = arith.constant 0 : i32
    %c0_i32_0 = arith.constant 0 : i32
    %c0_i32_1 = arith.constant 0 : i32
    return %c0_i32, %c0_i32_0 : i32, i32
  }
  func.func @transform_16(%arg0: i32) -> (i32, i32) {
    %c0_i32 = arith.constant 0 : i32
    %c0_i32_0 = arith.constant 0 : i32
    %c0_i32_1 = arith.constant 0 : i32
    return %c0_i32, %c0_i32_0 : i32, i32
  }
  func.func @transform_17(%arg0: i32) -> (i32, i32, i32) {
    %c0_i32 = arith.constant 0 : i32
    %c0_i32_0 = arith.constant 0 : i32
    %c0_i32_1 = arith.constant 0 : i32
    return %arg0, %c0_i32, %c0_i32_0 : i32, i32, i32
  }
  func.func @transform_18(%arg0: i32) -> (i32, i32, i32) {
    %c0_i32 = arith.constant 0 : i32
    %c0_i32_0 = arith.constant 0 : i32
    %c0_i32_1 = arith.constant 0 : i32
    return %arg0, %c0_i32, %c0_i32_0 : i32, i32, i32
  }
}

</mosaic_0001>

<bundles_post_ra>
// kernel: tpu_custom_call.1
= control target key start
LH: loop header
LB: loop body
LE: loop exit
PB: predicated region body
PF: predicated region fallthrough
CT: control target
= control target key end

     0   :  { %s5812_s0 = inlined_call_operand.vmem [shape: f32[4,32,128], index: 0, kind: input, shape index: {}]   ;;  %s5813_s1 = inlined_call_operand.hbm [shape: f32[4,1,128], index: 1, kind: input, shape index: {}]   ;;  %s5814_s2 = inlined_call_operand.hbm [shape: f32[128,128], index: 2, kind: input, shape index: {}]   ;;  %s5815_s3 = inlined_call_operand.hbm [shape: f32[128,128], index: 3, kind: input, shape index: {}]   ;;  %s5816_s4 = inlined_call_operand.vmem [shape: f32[128,32], index: 4, kind: input, shape index: {}]   ;;  %s5817_s5 = inlined_call_operand.hbm [shape: f32[1,128], index: 5, kind: input, shape index: {}]   ;;  %s5818_s6 = inlined_call_operand.hbm [shape: f32[1,128], index: 6, kind: input, shape index: {}]   ;;  %s5819_s7 = inlined_call_operand.hbm [shape: bf16[128,384], index: 7, kind: input, shape index: {}]   ;;  %s5820_s8 = inlined_call_operand.hbm [shape: f32[1,384], index: 8, kind: input, shape index: {}]   ;;  %s5821_s9 = inlined_call_operand.vmem [shape: bf16[128,128], index: 9, kind: input, shape index: {}]   ;;  %s5822_s10 = inlined_call_operand.vmem [shape: f32[1,128], index: 10, kind: input, shape index: {}]   ;;  %s5823_s11 = inlined_call_operand.vmem [shape: f32[1,128], index: 11, kind: input, shape index: {}]   ;;  %s5824_s12 = inlined_call_operand.vmem [shape: f32[1,128], index: 12, kind: input, shape index: {}]   ;;  %s5825_s13 = inlined_call_operand.hbm [shape: bf16[128,256], index: 13, kind: input, shape index: {}]   ;;  %s5826_s14 = inlined_call_operand.vmem [shape: f32[1,256], index: 14, kind: input, shape index: {}]   ;;  %s5827_s15 = inlined_call_operand.hbm [shape: bf16[256,128], index: 15, kind: input, shape index: {}]   ;;  %s5828_s16 = inlined_call_operand.vmem [shape: f32[1,128], index: 16, kind: input, shape index: {}]   ;;  %s5829_s17 = inlined_call_operand.hbm [shape: f32[4,32,128], index: 17, kind: output, shape index: {0}]   ;;  %s5830_s18 = inlined_call_operand.hbm [shape: f32[4,32,32], index: 18, kind: output, shape index: {1}]  }
   0x1   :  { %5850 = sst [smem:[#allocation27_spill]] %s5812_s0 }
   0x2   :  { %5851 = sst [smem:[#allocation28_spill]] %s5813_s1 }
   0x3   :  { %5852 = sst [smem:[#allocation29_spill]] %s5814_s2 }
   0x4   :  { %5853 = sst [smem:[#allocation30_spill]] %s5815_s3 }
   0x5   :  { %5854 = sst [smem:[#allocation31_spill]] %s5817_s5 }
   0x6   :  { %5855 = sst [smem:[#allocation32_spill]] %s5821_s9 }
   0x7   :  { %5856 = sst [smem:[#allocation33_spill]] %s5822_s10 }
   0x8   :  { %5857 = sst [smem:[#allocation34_spill]] %s5823_s11 }
   0x9   :  { %5858 = sst [smem:[#allocation35_spill]] %s5824_s12 }
   0xa   :  { %5859 = sst [smem:[#allocation36_spill]] %s5826_s14 }
   0xb   :  { %5860 = sst [smem:[#allocation37_spill]] %s5828_s16 }
   0xc   :  { %5861 = sst [smem:[#allocation38_spill]] %s5829_s17 }
   0xd   :  { %5862 = sst [smem:[#allocation39_spill]] %s5830_s18 }
   0xe   :  { %24 = vsyncpa [#allocation3], 0 }
   0xf   :  { %26 = vsyncpa [#allocation3 + $0x1], 0 }
  0x10   :  { %27 = vsyncpa [#allocation6], 0 }
  0x11   :  { %28 = vsyncpa [#allocation9], 0 }
  0x12   :  { %29 = vsyncpa [#allocation12], 0 }
  0x13   :  { %30 = vsyncpa [#allocation15], 0 }
  0x14   :  { %31 = vsyncpa [#allocation4], 0 }
  0x15   :  { %33 = vsyncpa [#allocation4 + $0x1], 0 }
  0x16   :  { %34 = vsyncpa [#allocation19], 0 }
  0x17   :  { %36 = vsyncpa [#allocation19 + $0x1], 0  ;;  %s4574_s27 = smov 0   ;;  %s4576_s28 = smov 0  }
  0x18   :  { %s4578_s29 = smov 0   ;;  %s4580_s30 = smov 0  }
  0x19 LB: > { %s4457_s0 = smov [#allocation5]   ;;  %s4595_s1 = sadd.s32 4294967295, %s4455_s30   ;;  %s4455_s30 = sphi %s4580_s30, %s5907_s30   ;;  %s4451_s29 = sphi %s4578_s29, %s5906_s29   ;;  %s4447_s28 = sphi %s4576_s28, %s5905_s28   ;;  %s4443_s27 = sphi %s4574_s27, %s5904_s27  }
  0x1a   : > { %s478_s19 = sshll.u32 %s4457_s0, 4  ;;  %p3032_p0 = scmp.ge.s32.totalorder %s4455_s30, 1  ;;  %s4600_s19 = int_to_ptr.vmem [resolvable:$true] %s478_s19 }
  0x1b   : > { %p5841_p1 = scmp.eq.s32.totalorder %s4595_s1, 0  ;;  %p466_p2 = scmp.lt.s32.totalorder %s4455_s30, 3 }
  0x1c   : > { %s4458_s21 = smov [#allocation8]   ;;  %s4459_s23 = smov [#allocation11]  }
  0x1d   : > { %p4602_p3 = pnand %p3032_p0, %p466_p2  ;;  %s508_s22 = sshll.u32 %s4458_s21, 4  ;;  %s4615_s22 = int_to_ptr.vmem [resolvable:$true] %s508_s22 }
  0x1e   : > { %s529_s24 = sshll.u32 %s4459_s23, 4  ;;  %s5865_s0 = sld [smem:[#allocation29_spill]]  ;;  %s4617_s24 = int_to_ptr.vmem [resolvable:$true] %s529_s24 }
  0x1f   : > { %s5863_s20 = scalar_select %p4602_p3, 1, 0 }
  0x20   : > { %p3798_p5 = pneg %p4602_p3 }
  0x22   : > { %p4611_p6 = pnand %p3798_p5, %p5841_p1 }
  0x24   : > { %s4087_s17 = scalar_lea.hbm %s5865_s0, 2048  ;;  %p4627_p8 = pneg %p4611_p6 }
  0x25   : > { %p4088_p7 = scmp.ne.s32.totalorder %s5865_s0, %s4087_s17  ;;  %p4094_p11 = scmp.lt.u32.totalorder %s4087_s17, %s5865_s0 }
  0x27   : > { %p4090_p9 = pnand %p4627_p8, %p4088_p7 }
  0x29   : > { %p4091_p10 = pneg %p4090_p9 }
  0x2b   : > { %p4096_p12 = pnand %p4094_p11, %p4091_p10 }
  0x2d   : > { %4099 = shalt.err (!%p4096_p12)
}
  0x2e   : > { %s4100_s16 = scalar_lea.vmem %s4600_s19, 2048  ;;  %p4108_p5 = scmp.lt.s32.totalorder %s4600_s19, %s4600_s19 }
  0x2f   : > { %p4101_p13 = scmp.ne.s32.totalorder %s4600_s19, %s4100_s16  ;;  %p4109_p4 = scmp.lt.s32.totalorder %s4100_s16, %s4100_s16 }
  0x31   : > { %p4103_p0 = pnand %p4101_p13, %p4627_p8  ;;  %p4110_p7 = por %p4109_p4, %p4108_p5 }
  0x33   : > { %p4104_p2 = pneg %p4103_p0 }
  0x35   : > { %p4111_p9 = pnand %p4110_p7, %p4104_p2 }
  0x37   : > { %4114 = shalt.err (!%p4111_p9)
}
  0x38   : > { %s5836_s18 = smov 128   ;;  %s5838_s14 = smov 8  }
  0x39   : > { %3801 = dma.hbm_to_vmem [thread:$0]  (!%p4611_p6), %s5865_s0, 2048, %s4600_s19, [#allocation6], %s5836_s18, %s5836_s18, %s5838_s14  }
  0x3a   : > { %s5867_s5 = sld [smem:[#allocation31_spill]] }
  0x40   : > { %s4115_s16 = scalar_lea.hbm %s5867_s5, 16 }
  0x41   : > { %p4116_p4 = scmp.ne.s32.totalorder %s5867_s5, %s4115_s16  ;;  %p4122_p12 = scmp.lt.u32.totalorder %s4115_s16, %s5867_s5 }
  0x43   : > { %p4118_p10 = pnand %p4116_p4, %p4627_p8 }
  0x45   : > { %p4119_p11 = pneg %p4118_p10 }
  0x47   : > { %p4124_p13 = pnand %p4122_p12, %p4119_p11 }
  0x49   : > { %4127 = shalt.err (!%p4124_p13)
}
  0x4a   : > { %s4128_s19 = scalar_lea.vmem %s4615_s22, 16  ;;  %s4135_s11 = scalar_lea.vmem %s4615_s22, 32 }
  0x4b   : > { %p4129_p0 = scmp.ne.s32.totalorder %s4615_s22, %s4128_s19  ;;  %p4136_p7 = scmp.lt.s32.totalorder %s4615_s22, %s4615_s22 }
  0x4c   : > { %p4137_p9 = scmp.lt.s32.totalorder %s4135_s11, %s4128_s19 }
  0x4d   : > { %p4131_p2 = pnand %p4129_p0, %p4627_p8 }
  0x4e   : > { %p4138_p4 = por %p4137_p9, %p4136_p7 }
  0x4f   : > { %p4132_p5 = pneg %p4131_p2 }
  0x51   : > { %p4139_p10 = pnand %p4138_p4, %p4132_p5 }
  0x53   : > { %4142 = shalt.err (!%p4139_p10)
}
  0x54   : > { %3807 = dma.hbm_to_vmem [thread:$0]  (!%p4611_p6), %s5867_s5, 16, %s4615_s22, [#allocation9]  }
  0x55   : > { %s4143_s25 = scalar_lea.hbm %s5819_s7, 3072 }
  0x56   : > { %p4144_p11 = scmp.ne.s32.totalorder %s5819_s7, %s4143_s25  ;;  %p4150_p0 = scmp.lt.u32.totalorder %s4143_s25, %s5819_s7 }
  0x58   : > { %p4146_p12 = pnand %p4144_p11, %p4627_p8 }
  0x5a   : > { %p4147_p13 = pneg %p4146_p12 }
  0x5c   : > { %p4152_p2 = pnand %p4150_p0, %p4147_p13 }
  0x5e   : > { %4155 = shalt.err (!%p4152_p2)
}
  0x5f   : > { %s4156_s22 = scalar_lea.vmem %s4617_s24, 3072  ;;  %p4164_p4 = scmp.lt.s32.totalorder %s4617_s24, %s4617_s24 }
  0x60   : > { %p4157_p5 = scmp.ne.s32.totalorder %s4617_s24, %s4156_s22  ;;  %p4165_p10 = scmp.lt.s32.totalorder %s4156_s22, %s4156_s22 }
  0x62   : > { %p4159_p7 = pnand %p4157_p5, %p4627_p8  ;;  %p4166_p11 = por %p4165_p10, %p4164_p4 }
  0x64   : > { %p4160_p9 = pneg %p4159_p7 }
  0x66   : > { %p4167_p12 = pnand %p4166_p11, %p4160_p9 }
  0x68   : > { %4170 = shalt.err (!%p4167_p12)
}
  0x69   : > { %s4462_s11 = smov 192   ;;  %s4463_s9 = smov 12  }
  0x6a   : > { %3813 = dma.hbm_to_vmem [thread:$0]  (!%p4611_p6), %s5819_s7, 3072, %s4617_s24, [#allocation12], %s4462_s11, %s4462_s11, %s4463_s9  }
  0x6b   : > { %s4464_s17 = smov [#allocation14]   ;;  %s4465_s26 = smov [#allocation7]  }
  0x6c   : > { %s565_s25 = sshll.u32 %s4464_s17, 4  ;;  %s491_s23 = sshll.u32 %s4465_s26, 4  ;;  %s566_s25 = int_to_ptr.vmem [resolvable:$true] %s565_s25  ;;  %s492_s23 = int_to_ptr.vmem [resolvable:$true] %s491_s23 }
  0x6d   : > { %s4171_s22 = scalar_lea.hbm %s5825_s13, 2048 }
  0x6e   : > { %p4172_p13 = scmp.ne.s32.totalorder %s5825_s13, %s4171_s22  ;;  %p4178_p5 = scmp.lt.u32.totalorder %s4171_s22, %s5825_s13 }
  0x70   : > { %p4174_p0 = pnand %p4172_p13, %p4627_p8 }
  0x72   : > { %p4175_p2 = pneg %p4174_p0 }
  0x74   : > { %p4180_p7 = pnand %p4178_p5, %p4175_p2 }
  0x76   : > { %4183 = shalt.err (!%p4180_p7)
}
  0x77   : > { %s4184_s24 = scalar_lea.vmem %s566_s25, 2048  ;;  %p4192_p11 = scmp.lt.s32.totalorder %s566_s25, %s566_s25 }
  0x78   : > { %p4185_p9 = scmp.ne.s32.totalorder %s566_s25, %s4184_s24  ;;  %p4193_p12 = scmp.lt.s32.totalorder %s4184_s24, %s4184_s24 }
  0x7a   : > { %p4187_p4 = pnand %p4185_p9, %p4627_p8  ;;  %p4194_p1 = por %p4193_p12, %p4192_p11 }
  0x7c   : > { %p4188_p10 = pneg %p4187_p4 }
  0x7e   : > { %p4195_p3 = pnand %p4194_p1, %p4188_p10 }
  0x80   : > { %4198 = shalt.err (!%p4195_p3)
}
  0x81   : > { %s5868_s18 = smov 8   ;;  %s5869_s14 = smov 128  }
  0x82   : > { %3819 = dma.hbm_to_vmem [thread:$0]  (!%p4611_p6), %s5825_s13, 2048, %s566_s25, [#allocation15], %s5869_s14, %s5869_s14, %s5868_s18  }
  0x83   : > { %s5870_s3 = sld [smem:[#allocation30_spill]] }
  0x89   : > { %s4199_s10 = scalar_lea.hbm %s5870_s3, 2048 }
  0x8a   : > { %p4200_p1 = scmp.ne.s32.totalorder %s5870_s3, %s4199_s10  ;;  %p4206_p0 = scmp.lt.u32.totalorder %s4199_s10, %s5870_s3 }
  0x8c   : > { %p4202_p3 = pnand %p4200_p1, %p4627_p8 }
  0x8e   : > { %p4203_p13 = pneg %p4202_p3 }
  0x90   : > { %p4208_p2 = pnand %p4206_p0, %p4203_p13 }
  0x92   : > { %4211 = shalt.err (!%p4208_p2)
}
  0x93   : > { %s4212_s19 = scalar_lea.vmem %s492_s23, 2048  ;;  %p4220_p4 = scmp.lt.s32.totalorder %s492_s23, %s492_s23 }
  0x94   : > { %p4213_p5 = scmp.ne.s32.totalorder %s492_s23, %s4212_s19  ;;  %p4221_p10 = scmp.lt.s32.totalorder %s4212_s19, %s4212_s19 }
  0x96   : > { %p4215_p7 = pnand %p4213_p5, %p4627_p8  ;;  %p4222_p11 = por %p4221_p10, %p4220_p4 }
  0x98   : > { %p4216_p9 = pneg %p4215_p7 }
  0x9a   : > { %p4223_p12 = pnand %p4222_p11, %p4216_p9 }
  0x9c   : > { %4226 = shalt.err (!%p4223_p12)
}
  0x9d   : > { %3804 = dma.hbm_to_vmem [thread:$0]  (!%p4611_p6), %s5870_s3, 2048, %s492_s23, [#allocation6], %s5869_s14, %s5869_s14, %s5868_s18  }
  0x9e   : > { %s4466_s24 = smov [#allocation10]   ;;  %s4467_s0 = smov [#allocation13]  }
  0x9f   : > { %s519_s5 = sshll.u32 %s4466_s24, 4  ;;  %s543_s11 = sshll.u32 %s4467_s0, 4  ;;  %s520_s5 = int_to_ptr.vmem [resolvable:$true] %s519_s5  ;;  %s544_s11 = int_to_ptr.vmem [resolvable:$true] %s543_s11 }
  0xa0   : > { %s4227_s12 = scalar_lea.hbm %s5818_s6, 16 }
  0xa1   : > { %p4228_p1 = scmp.ne.s32.totalorder %s5818_s6, %s4227_s12  ;;  %p4234_p0 = scmp.lt.u32.totalorder %s4227_s12, %s5818_s6 }
  0xa3   : > { %p4230_p3 = pnand %p4228_p1, %p4627_p8 }
  0xa5   : > { %p4231_p13 = pneg %p4230_p3 }
  0xa7   : > { %p4236_p2 = pnand %p4234_p0, %p4231_p13 }
  0xa9   : > { %4239 = shalt.err (!%p4236_p2)
}
  0xaa   : > { %s4240_s23 = scalar_lea.vmem %s520_s5, 16  ;;  %s4247_s18 = scalar_lea.vmem %s520_s5, 32 }
  0xab   : > { %p4241_p5 = scmp.ne.s32.totalorder %s520_s5, %s4240_s23  ;;  %p4248_p4 = scmp.lt.s32.totalorder %s520_s5, %s520_s5 }
  0xac   : > { %p4249_p10 = scmp.lt.s32.totalorder %s4247_s18, %s4240_s23 }
  0xad   : > { %p4243_p7 = pnand %p4241_p5, %p4627_p8 }
  0xae   : > { %p4250_p11 = por %p4249_p10, %p4248_p4 }
  0xaf   : > { %p4244_p9 = pneg %p4243_p7 }
  0xb1   : > { %p4251_p12 = pnand %p4250_p11, %p4244_p9 }
  0xb3   : > { %4254 = shalt.err (!%p4251_p12)
}
  0xb4   : > { %3810 = dma.hbm_to_vmem [thread:$0]  (!%p4611_p6), %s5818_s6, 16, %s520_s5, [#allocation9]  }
  0xb5   : > { %s4255_s0 = scalar_lea.hbm %s5820_s8, 48 }
  0xb6   : > { %p4256_p1 = scmp.ne.s32.totalorder %s5820_s8, %s4255_s0  ;;  %p4262_p0 = scmp.lt.u32.totalorder %s4255_s0, %s5820_s8 }
  0xb8   : > { %p4258_p3 = pnand %p4256_p1, %p4627_p8 }
  0xba   : > { %p4259_p13 = pneg %p4258_p3 }
  0xbc   : > { %p4264_p2 = pnand %p4262_p0, %p4259_p13 }
  0xbe   : > { %4267 = shalt.err (!%p4264_p2)
}
  0xbf   : > { %s4268_s26 = scalar_lea.vmem %s544_s11, 48  ;;  %s4275_s5 = scalar_lea.vmem %s544_s11, 64 }
  0xc0   : > { %p4269_p5 = scmp.ne.s32.totalorder %s544_s11, %s4268_s26  ;;  %p4276_p4 = scmp.lt.s32.totalorder %s544_s11, %s544_s11 }
  0xc1   : > { %p4277_p10 = scmp.lt.s32.totalorder %s4275_s5, %s4268_s26 }
  0xc2   : > { %p4271_p7 = pnand %p4269_p5, %p4627_p8 }
  0xc3   : > { %p4278_p11 = por %p4277_p10, %p4276_p4 }
  0xc4   : > { %p4272_p9 = pneg %p4271_p7 }
  0xc6   : > { %p4279_p12 = pnand %p4278_p11, %p4272_p9 }
  0xc8   : > { %4282 = shalt.err (!%p4279_p12)
}
  0xc9   : > { %3816 = dma.hbm_to_vmem [thread:$0]  (!%p4611_p6), %s5820_s8, 48, %s544_s11, [#allocation12]  }
  0xca   : > { %s4468_s23 = smov [#allocation16]   ;;  %s4283_s22 = scalar_lea.hbm %s5827_s15, 2048 }
  0xcb   : > { %s581_s18 = sshll.u32 %s4468_s23, 4  ;;  %p4284_p1 = scmp.ne.s32.totalorder %s5827_s15, %s4283_s22  ;;  %s582_s18 = int_to_ptr.vmem [resolvable:$true] %s581_s18 }
  0xcc   : > { %p4290_p0 = scmp.lt.u32.totalorder %s4283_s22, %s5827_s15 }
  0xcd   : > { %p4286_p3 = pnand %p4284_p1, %p4627_p8 }
  0xcf   : > { %p4287_p13 = pneg %p4286_p3 }
  0xd1   : > { %p4292_p2 = pnand %p4290_p0, %p4287_p13 }
  0xd3   : > { %4295 = shalt.err (!%p4292_p2)
}
  0xd4   : > { %s4296_s11 = scalar_lea.vmem %s582_s18, 2048  ;;  %p4304_p4 = scmp.lt.s32.totalorder %s582_s18, %s582_s18 }
  0xd5   : > { %p4297_p5 = scmp.ne.s32.totalorder %s582_s18, %s4296_s11  ;;  %p4305_p10 = scmp.lt.s32.totalorder %s4296_s11, %s4296_s11 }
  0xd7   : > { %p4299_p7 = pnand %p4297_p5, %p4627_p8  ;;  %p4306_p11 = por %p4305_p10, %p4304_p4 }
  0xd9   : > { %p4300_p9 = pneg %p4299_p7 }
  0xdb   : > { %p4307_p12 = pnand %p4306_p11, %p4300_p9 }
  0xdd   : > { %4310 = shalt.err (!%p4307_p12)
}
  0xde   : > { %s4469_s12 = smov 64   ;;  %s4470_s21 = smov 4  }
  0xdf   : > { %3822 = dma.hbm_to_vmem [thread:$0]  (!%p4611_p6), %s5827_s15, 2048, %s582_s18, [#allocation15], %s4469_s12, %s4469_s12, %s4470_s21  }
  0xe0   : > { %s3031_s5 = sadd.s32 4294967294, %s4455_s30   ;;  %s4796_s16 = sadd.s32 1, %s4455_s30  }
  0xe1   : > { %s72_s19 = ssub.s32 %s4455_s30, %s4796_s16  ;;  %s75_s23 = sadd.s32 1, %s4451_s29 }
  0xe2   : > { %p73_p8 = scmp.eq.s32.totalorder %s72_s19, 0  ;;  %p82_p1 = scmp.ne.s32.totalorder %s4451_s29, %s4447_s28 }
  0xe3   : > { %p83_p3 = scmp.eq.s32.totalorder %s4455_s30, 0  ;;  %p88_p13 = scmp.ne.s32.totalorder %s4447_s28, %s4443_s27 }
  0xe4   : > { %s4807_s14 = scalar_select %p73_p8, %s4451_s29, %s75_s23  }
  0xe5   : > { %p4809_p0 = por %p83_p3, %p82_p1  ;;  %p5872_p2 = scmp.eq.s32.totalorder %s4595_s1, 0 }
  0xe6   : > { %p427_p5 = scmp.eq.s32.totalorder %s4595_s1, 1  ;;  %p433_p7 = scmp.eq.s32.totalorder %s3031_s5, 1 }
  0xe7   : > { %p4815_p6 = por %p5872_p2, %p88_p13  ;;  %p3842_p9 = scmp.lt.s32.totalorder %s4455_s30, 2 }
  0xe8   : > { %s608_s25 = sand.u32 1, %s4451_s29   ;;  %p4822_p4 = por %p427_p5, %p82_p1 }
  0xe9   : > { %p4826_p10 = por %p433_p7, %p88_p13  ;;  %s3042_s0 = sshll.u32 %s608_s25, 1 }
  0xea   : > { %s5874_s22 = scalar_select %p4822_p4, 1, 0 }
  0xeb   : > { %s5875_s24 = scalar_select %p4826_p10, 1, 0 }
  0xec   : > { %s3146_s9 = sshll.u32 %s4455_s30, 5  ;;  %s5876_s12 = sld [smem:[#allocation28_spill]] }
  0xed   : > { %s612_s17 = scalar_lea.vmem [#allocation2], %s3042_s0  ;;  %p4840_p11 = pnand %p3842_p9, %p4809_p0 }
  0xee   : > { %s619_s26 = sshll.u32 %s612_s17, 4  ;;  %s4844_s19 = scalar_lea.sflag [#allocation3], %s608_s25  ;;  %s4836_s26 = int_to_ptr.vmem [resolvable:$true] %s619_s26 }
  0xef   : > { %p4313_p8 = pneg %p4840_p11 }
  0xf2   : > { %s4834_s21 = scalar_lea.hbm %s5876_s12, %s3146_s9  ;;  %s4316_s2 = scalar_lea.hbm %s5876_s12, 64 }
  0xf3   : > { %s4311_s23 = scalar_lea.hbm %s4834_s21, 32  ;;  %p4317_p13 = scmp.lt.u32.totalorder %s4834_s21, %s5876_s12 }
  0xf4   : > { %p4312_p12 = scmp.ne.s32.totalorder %s4834_s21, %s4311_s23  ;;  %p4318_p0 = scmp.lt.u32.totalorder %s4316_s2, %s4311_s23 }
  0xf5   : > { %p4320_p5 = scmp.lt.u32.totalorder %s4311_s23, %s4834_s21 }
  0xf6   : > { %p4314_p1 = pnand %p4313_p8, %p4312_p12  ;;  %p4319_p2 = por %p4318_p0, %p4317_p13 }
  0xf8   : > { %p4315_p3 = pneg %p4314_p1  ;;  %p4321_p7 = por %p4320_p5, %p4319_p2 }
  0xfa   : > { %p4322_p9 = pnand %p4321_p7, %p4315_p3 }
  0xfc   : > { %4325 = shalt.err (!%p4322_p9)
}
  0xfd   : > { %s4326_s25 = scalar_lea.vmem %s4836_s26, 32  ;;  %s4471_s17 = smov [#allocation2]  }
  0xfe   : > { %p4327_p12 = scmp.ne.s32.totalorder %s4836_s26, %s4326_s25  ;;  %s4331_s0 = sshll.u32 %s4471_s17, 4  ;;  %s4332_s0 = int_to_ptr.vmem [resolvable:$false] %s4331_s0 }
  0xff   : > { %s4333_s9 = scalar_lea.vmem %s4332_s0, 64  ;;  %p4334_p4 = scmp.lt.s32.totalorder %s4836_s26, %s4332_s0 }
 0x100   : > { %p4329_p1 = pnand %p4327_p12, %p4313_p8  ;;  %p4335_p13 = scmp.lt.s32.totalorder %s4333_s9, %s4326_s25 }
 0x102   : > { %p4330_p10 = pneg %p4329_p1  ;;  %p4336_p0 = por %p4335_p13, %p4334_p4 }
 0x104   : > { %p4337_p2 = pnand %p4336_p0, %p4330_p10 }
 0x106   : > { %4340 = shalt.err (!%p4337_p2)
}
 0x107   : > { %s4472_s23 = smov 16   ;;  %s4473_s2 = smov 1  }
 0x108   : > { %3826 = dma.hbm_to_vmem [thread:$0]  (!%p4840_p11), %s4834_s21, 32, %s4836_s26, %s4844_s19, %s4472_s23, %s4472_s23, %s4473_s2  }
 0x109   : > { %p5878_p8 = scmp.ne.s32.totalorder %s5863_s20, 0 }
 0x10a   : > { %s4875_s10 = sand.u32 (!%p5878_p8), 1, %s4447_s28  }
 0x10b   : > { %631 = sbr.rel (%p5878_p8) target bundleno = 3417 (0xd59), region = 88  ;;  %s3046_s11 = sshll.u32 (!%p5878_p8), %s4875_s10, 1 }
 0x10c   : > { %s634_s25 = scalar_lea.sflag (!%p5878_p8), [#allocation3], %s4875_s10  ;;  %s4879_s17 = scalar_lea.vmem (!%p5878_p8), [#allocation2], %s3046_s11 }
 0x112   : > { %4414 = dma.done.wait (%p4815_p6), %s634_s25, 32  }
 0x113   : > { %4416 = vsyncadd (%p4815_p6), %s634_s25, 4294967264  ;;  %p5879_p4 = scmp.eq.s32.totalorder %s4595_s1, 0 }
 0x115   : > { %4418 = dma.done.wait (%p5879_p4), [#allocation6], 4096   ;;  %p5880_p10 = pmov %p5879_p4 }
 0x116   : > { %p5881_p11 = pmov %p5879_p4 }
 0x117   : > { %4420 = vsyncadd (%p5880_p10), [#allocation6], 4294963200 }
 0x118   : > { %4422 = dma.done.wait (%p5881_p11), [#allocation9], 32   ;;  %p5882_p3 = pmov %p5879_p4 }
 0x11a   : > { %4424 = vsyncadd (%p5882_p3), [#allocation9], 4294967264  ;;  %p5883_p5 = pmov %p5882_p3 }
 0x11b   : > { %p5884_p7 = pmov %p5882_p3 }
 0x11c   : > { %4426 = dma.done.wait (%p5883_p5), [#allocation12], 3120  }
 0x11d   : > { %4428 = vsyncadd (%p5884_p7), [#allocation12], 4294964176  ;;  %p5885_p6 = pmov %p5882_p3 }
 0x11e   : > { %p5886_p9 = pmov %p5882_p3 }
 0x11f   : > { %4430 = dma.done.wait (%p5885_p6), [#allocation15], 4096  }
 0x120   : > { %4432 = vsyncadd (%p5886_p9), [#allocation15], 4294963200  ;;  %s3057_s20 = sshll.u32 %s4595_s1, 1  ;;  %s5887_s5 = sld [smem:[#allocation27_spill]]  ;;  %v3903_v4 = vld [vmem:[#allocation11 + $0x4] ss:$12 sps:$4 sm:$0xff]  }
 0x121   : > { %p734_p12 = scmp.lt.s32.totalorder %s3057_s20, 3  ;;  %v3905_v5 = vld [vmem:[#allocation11] ss:$12 sps:$4 sm:$0xff]   ;;  %v3906_v6 = vld [vmem:[#allocation11 + $0x1c] ss:$12 sps:$4 sm:$0xff]   ;;  %1102 = vmatprep.subr.bf16.mxu0 %v3903_v4  ;;  %v5846_v47 = vmov 0  }
 0x122   : > { %v3908_v7 = vld [vmem:[#allocation11 + $0x8] ss:$12 sps:$4 sm:$0xff]   ;;  %1103 = vmatpush1.bf16.msra.mxu0 %v3905_v5  ;;  %v3909_v27 = vld [vmem:[#allocation11 + $0x18] ss:$12 sps:$4 sm:$0xff]   ;;  %v3912_v30 = vld [vmem:[#allocation11 + $0x20] ss:$12 sps:$4 sm:$0xff]   ;;  %1134 = vmatprep.mubr.bf16.mxu0 %v5846_v47 }
 0x123   : > { %s5909_s20 = smov (!%p734_p12, %s3057_s20), 3  ;;  %3336 = vmatprep.subr.bf16.mxu1 %v3908_v7  ;;  %1104 = vmatprep.subr.bf16.mxu0 %v3906_v6  ;;  %v3910_v29 = vld [vmem:[#allocation11 + $0x34] ss:$12 sps:$4 sm:$0xff]   ;;  %v3913_v31 = vld [vmem:[#allocation11 + $0x30] ss:$12 sps:$4 sm:$0xff]   ;;  %vm1606_vm0 = vcmask 261120  }
 0x124   : > { %s3147_s18 = sshll.u32 %s5909_s20, 5  ;;  %3337 = vmatpush3.bf16.msra.mxu1 %v3908_v7  ;;  %v3914_v32 = vld [vmem:[#allocation11 + $0x4c] ss:$12 sps:$4 sm:$0xff]   ;;  %v3917_v34 = vld [vmem:[#allocation11 + $0x48] ss:$12 sps:$4 sm:$0xff]   ;;  %s5888_s23 = sld [smem:[#allocation32_spill]] }
 0x125   : > { %3338 = vmatprep.subr.bf16.mxu1 %v3912_v30  ;;  %v3916_v33 = vld [vmem:[#allocation11 + $0x38] ss:$12 sps:$4 sm:$0xff]   ;;  %v3920_v36 = vld [vmem:[#allocation11 + $0x50] ss:$12 sps:$4 sm:$0xff]   ;;  %v3921_v37 = vld [vmem:[#allocation11 + $0x60] ss:$12 sps:$4 sm:$0xff]  }
 0x126   : > { %s4905_s19 = scalar_lea.vmem %s5887_s5, %s3147_s18  ;;  %1105 = vmatpush1.bf16.msra.mxu0 %v3909_v27  ;;  %v3918_v35 = vld [vmem:[#allocation11 + $0x64] ss:$12 sps:$4 sm:$0xff]   ;;  %v3922_v38 = vld [vmem:[#allocation11 + $0x7c] ss:$12 sps:$4 sm:$0xff]   ;;  %v3926_v41 = vld [vmem:[#allocation11 + $0x94] ss:$12 sps:$4 sm:$0xff]  }
 0x127   : > { %v744_v0 = vld [vmem:[%s4905_s19] sm:$0xff]  ;;  %v746_v1 = vld [vmem:[%s4905_s19 + $0x10] sm:$0xff]  ;;  %v745_v2 = vld [vmem:[%s4905_s19 + $0x8] sm:$0xff]  ;;  %1106 = vmatprep.subr.bf16.mxu0 %v3910_v29  ;;  %s3055_s5 = sshll.u32 %s4875_s10, 6  ;;  %s5891_s2 = sld [smem:[#allocation34_spill]] }
 0x128   : > { %804 = vadd.xlane.f32.xlu0 %v744_v0  ;;  %808 = vadd.xlane.f32.xlu1 %v746_v1  ;;  %v747_v3 = vld [vmem:[%s4905_s19 + $0x18] sm:$0xff]  ;;  %v4928_v24 = vld [vmem:[%s4905_s19 + $0x20] sm:$0xff]  ;;  %v4932_v25 = vld [vmem:[%s4905_s19 + $0x30] sm:$0xff]  ;;  %s5386_s0 = scalar_lea.vmem [#allocation18], %s3055_s5  ;;  %s5892_s20 = sld [smem:[#allocation35_spill]] }
 0x129   : > { %v4935_v26 = vld [vmem:[%s4905_s19 + $0x28] sm:$0xff]  ;;  %v4940_v28 = vld [vmem:[%s4905_s19 + $0x38] sm:$0xff]  ;;  %3339 = vmatpush3.bf16.msra.mxu1 %v3912_v30  ;;  %v3930_v44 = vld [vmem:[#allocation11 + $0xac] ss:$12 sps:$4 sm:$0xff]   ;;  %s5893_s26 = sld [smem:[#allocation36_spill]]  ;;  %s5896_s9 = sld [smem:[#allocation37_spill]] }
 0x12a   : > { %1107 = vmatpush1.bf16.msra.mxu0 %v3913_v31  ;;  %3340 = vmatprep.subr.bf16.mxu1 %v3916_v33  ;;  %v3924_v39 = vld [vmem:[#allocation11 + $0x68] ss:$12 sps:$4 sm:$0xff]   ;;  %v3925_v40 = vld [vmem:[#allocation11 + $0x78] ss:$12 sps:$4 sm:$0xff]   ;;  %v3928_v42 = vld [vmem:[#allocation11 + $0x80] ss:$12 sps:$4 sm:$0xff]  }
 0x12b   : > { %1108 = vmatprep.subr.bf16.mxu0 %v3914_v32  ;;  %v3929_v43 = vld [vmem:[#allocation11 + $0x90] ss:$12 sps:$4 sm:$0xff]   ;;  %v3932_v45 = vld [vmem:[#allocation11 + $0x98] ss:$12 sps:$4 sm:$0xff]   ;;  %v3933_v46 = vld [vmem:[#allocation11 + $0xa8] ss:$12 sps:$4 sm:$0xff]  }
 0x12c   : > { %806 = vadd.xlane.f32.xlu0 %v745_v2  ;;  %810 = vadd.xlane.f32.xlu1 %v747_v3  ;;  %v3934_v48 = vld [vmem:[#allocation11 + $0xb0] ss:$12 sps:$4 sm:$0xff]   ;;  %s2838_s21 = sshll.u32 %s5386_s0, 4  ;;  %p5898_p13 = scmp.ne.s32.totalorder %s5874_s22, 0  ;;  %s5716_s21 = int_to_ptr.vmem [resolvable:$true] %s2838_s21 }
 0x12d   : > { %3341 = vmatpush3.bf16.msra.mxu1 %v3916_v33 }
 0x12e   : > { %1109 = vmatpush1.bf16.msra.mxu0 %v3917_v34  ;;  %3342 = vmatprep.subr.bf16.mxu1 %v3920_v36  ;;  %v770_v34 = vld [vmem:[#allocation7] sm:$0xff] }
 0x12f   : > { %1110 = vmatprep.subr.bf16.mxu0 %v3918_v35  ;;  %v772_v35 = vld [vmem:[#allocation7 + $0x10] sm:$0xff] }
 0x131   : > { %3343 = vmatpush3.bf16.msra.mxu1 %v3920_v36 }
 0x132   : > { %1111 = vmatpush1.bf16.msra.mxu0 %v3921_v37  ;;  %3344 = vmatprep.subr.bf16.mxu1 %v3924_v39  ;;  %v773_v37 = vld [vmem:[#allocation7 + $0x18] sm:$0xff] }
 0x133   : > { %1112 = vmatprep.subr.bf16.mxu0 %v3922_v38  ;;  %v4984_v38 = vpack.c.bf16 %v773_v37, %v772_v35  ;;  %v5042_v35 = vld [vmem:[#allocation5] sm:$0xff] }
 0x134   : > { %v5044_v37 = vld [vmem:[#allocation5 + $0x20] sm:$0xff] }
 0x135   : > { %3345 = vmatpush3.bf16.msra.mxu1 %v3924_v39  ;;  %v774_v39 = vld [vmem:[#allocation7 + $0x20] sm:$0xff] }
 0x136   : > { %1113 = vmatpush1.bf16.msra.mxu0 %v3925_v40  ;;  %3346 = vmatprep.subr.bf16.mxu1 %v3928_v42  ;;  %v775_v40 = vld [vmem:[#allocation7 + $0x28] sm:$0xff] }
 0x137   : > { %1114 = vmatprep.subr.bf16.mxu0 %v3926_v41  ;;  %v4989_v41 = vpack.c.bf16 %v775_v40, %v774_v39 }
 0x139   : > { %3347 = vmatpush3.bf16.msra.mxu1 %v3928_v42  ;;  %v776_v42 = vld [vmem:[#allocation7 + $0x30] sm:$0xff] }
 0x13a   : > { %1115 = vmatpush1.bf16.msra.mxu0 %v3929_v43  ;;  %3348 = vmatprep.subr.bf16.mxu1 %v3932_v45  ;;  %v777_v43 = vld [vmem:[#allocation7 + $0x38] sm:$0xff] }
 0x13b   : > { %1116 = vmatprep.subr.bf16.mxu0 %v3930_v44  ;;  %v4993_v44 = vpack.c.bf16 %v777_v43, %v776_v42  ;;  %v5047_v42 = vld [vmem:[#allocation5 + $0x40] sm:$0xff] }
 0x13c   : > { %v5049_v43 = vld [vmem:[#allocation5 + $0x60] sm:$0xff] }
 0x13d   : > { %3349 = vmatpush3.bf16.msra.mxu1 %v3932_v45  ;;  %v778_v45 = vld [vmem:[#allocation7 + $0x40] sm:$0xff] }
 0x13e   : > { %1117 = vmatpush1.bf16.msra.mxu0 %v3933_v46  ;;  %3350 = vmatprep.subr.bf16.mxu1 %v3934_v48  ;;  %v779_v46 = vld [vmem:[#allocation7 + $0x48] sm:$0xff] }
 0x141   : > { %3351 = vmatpush3.bf16.msra.mxu1 %v3934_v48  ;;  %v4998_v48 = vpack.c.bf16 %v779_v46, %v778_v45 }
 0x1b5   : > { %v805_v8 = vpop.xlane.xlu0 %804  ;;  %v809_v9 = vpop.xlane.xlu1 %808 }
 0x1b6   : > { %v821_v10 = vmul.f32 0.0078125, %v805_v8  ;;  %v823_v11 = vmul.f32 0.0078125, %v809_v9 }
 0x1b8   : > { %v4911_v12 = vsub.f32 %v744_v0, %v821_v10  ;;  %v4913_v13 = vsub.f32 %v746_v1, %v823_v11 }
 0x1b9   : > { %v807_v14 = vpop.xlane.xlu0 %806  ;;  %v811_v15 = vpop.xlane.xlu1 %810 }
 0x1ba   : > { %v822_v16 = vmul.f32 0.0078125, %v807_v14  ;;  %v837_v17 = vmul.f32 %v4911_v12, %v4911_v12  ;;  %v824_v18 = vmul.f32 0.0078125, %v811_v15  ;;  %v839_v21 = vmul.f32 %v4913_v13, %v4913_v13  ;;  %v4960_v15 = vld [vmem:[#allocation8] ss:$0 sm:$0xff] }
 0x1bc   : > { %v4917_v19 = vsub.f32 %v745_v2, %v822_v16  ;;  %845 = vadd.xlane.f32.xlu0 %v837_v17  ;;  %v4919_v20 = vsub.f32 %v747_v3, %v824_v18 }
 0x1be   : > { %v838_v22 = vmul.f32 %v4917_v19, %v4917_v19  ;;  %v840_v23 = vmul.f32 %v4919_v20, %v4919_v20 }
 0x1c0   : > { %849 = vadd.xlane.f32.xlu0 %v839_v21  ;;  %847 = vadd.xlane.f32.xlu1 %v838_v22 }
 0x1c4   : > { %812 = vadd.xlane.f32.xlu0 %v4928_v24  ;;  %851 = vadd.xlane.f32.xlu1 %v840_v23  ;;  %v4969_v23 = vld [vmem:[#allocation10] ss:$0 sm:$0xff] }
 0x1c8   : > { %816 = vadd.xlane.f32.xlu0 %v4932_v25  ;;  %814 = vadd.xlane.f32.xlu1 %v4935_v26 }
 0x1cc   : > { %818 = vadd.xlane.f32.xlu1 %v4940_v28 }
 0x249   : > { %v846_v49 = vpop.xlane.xlu0 %845 }
 0x24a   : > { %v861_v50 = vmul.f32 0.0078125, %v846_v49  ;;  %v780_v49 = vld [vmem:[#allocation7 + $0x50] sm:$0xff] }
 0x24c   : > { %v869_v51 = vadd.f32 1e-05, %v861_v50  ;;  %v781_v50 = vld [vmem:[#allocation7 + $0x58] sm:$0xff] }
 0x24d   : > { %v848_v52 = vpop.xlane.xlu1 %847  ;;  %v850_v53 = vpop.xlane.xlu0 %849 }
 0x24e   : > { %3983 = vrsqrt.f32 %v869_v51  ;;  %v862_v54 = vmul.f32 0.0078125, %v848_v52  ;;  %v863_v55 = vmul.f32 0.0078125, %v850_v53  ;;  %v5002_v51 = vpack.c.bf16 %v781_v50, %v780_v49  ;;  %v782_v52 = vld [vmem:[#allocation7 + $0x60] sm:$0xff]  ;;  %v783_v53 = vld [vmem:[#allocation7 + $0x68] sm:$0xff] }
 0x24f   : > { %v5053_v50 = vld [vmem:[#allocation5 + $0x8] sm:$0xff] }
 0x250   : > { %v870_v56 = vadd.f32 1e-05, %v862_v54  ;;  %v871_v57 = vadd.f32 1e-05, %v863_v55  ;;  %v5006_v54 = vpack.c.bf16 %v783_v53, %v782_v52  ;;  %v784_v55 = vld [vmem:[#allocation7 + $0x70] sm:$0xff]  ;;  %v5055_v52 = vld [vmem:[#allocation5 + $0x28] sm:$0xff] }
 0x251   : > { %v852_v58 = vpop.xlane.xlu1 %851  ;;  %v813_v59 = vpop.xlane.xlu0 %812  ;;  %v5057_v53 = vld [vmem:[#allocation5 + $0x48] sm:$0xff] }
 0x252   : > { %3985 = vrsqrt.f32 %v870_v56  ;;  %v864_v60 = vmul.f32 0.0078125, %v852_v58  ;;  %v825_v61 = vmul.f32 0.0078125, %v813_v59  ;;  %v785_v56 = vld [vmem:[#allocation7 + $0x78] sm:$0xff] }
 0x253   : > { %3987 = vrsqrt.f32 %v871_v57  ;;  %v5010_v57 = vpack.c.bf16 %v785_v56, %v784_v55 }
 0x254   : > { %v872_v62 = vadd.f32 1e-05, %v864_v60  ;;  %v4945_v63 = vsub.f32 %v4928_v24, %v825_v61 }
 0x255   : > { %v815_v0 = vpop.xlane.xlu1 %814  ;;  %v817_v1 = vpop.xlane.xlu0 %816 }
 0x256   : > { %3989 = vrsqrt.f32 %v872_v62  ;;  %v826_v2 = vmul.f32 0.0078125, %v815_v0  ;;  %v827_v3 = vmul.f32 0.0078125, %v817_v1  ;;  %v841_v4 = vmul.f32 %v4945_v63, %v4945_v63 }
 0x258   : > { %v3984_v5 = vpop.eup %3983  ;;  %v4950_v6 = vsub.f32 %v4935_v26, %v826_v2  ;;  %v4953_v7 = vsub.f32 %v4932_v25, %v827_v3  ;;  %853 = vadd.xlane.f32.xlu0 %v841_v4 }
 0x259   : > { %v819_v8 = vpop.xlane.xlu1 %818  ;;  %v885_v9 = vmul.f32 %v3984_v5, %v4911_v12 }
 0x25a   : > { %v828_v10 = vmul.f32 0.0078125, %v819_v8  ;;  %v842_v11 = vmul.f32 %v4950_v6, %v4950_v6  ;;  %v843_v14 = vmul.f32 %v4953_v7, %v4953_v7 }
 0x25b   : > { %v899_v12 = vmul.f32 %v4960_v15, %v885_v9 }
 0x25c   : > { %v3986_v16 = vpop.eup %3985  ;;  %v4963_v17 = vsub.f32 %v4940_v28, %v828_v10  ;;  %855 = vadd.xlane.f32.xlu1 %v842_v11  ;;  %857 = vadd.xlane.f32.xlu0 %v843_v14 }
 0x25d   : > { %v3988_v18 = vpop.eup %3987  ;;  %v886_v21 = vmul.f32 %v3986_v16, %v4917_v19  ;;  %v913_v27 = vadd.f32 %v4969_v23, %v899_v12 }
 0x25e   : > { %v844_v22 = vmul.f32 %v4963_v17, %v4963_v17  ;;  %v887_v24 = vmul.f32 %v3988_v18, %v4913_v13 }
 0x25f   : > { %v900_v25 = vmul.f32 %v4960_v15, %v886_v21 }
 0x260   : > { %v3990_v26 = vpop.eup %3989  ;;  %859 = vadd.xlane.f32.xlu1 %v844_v22  ;;  %v901_v19 = vmul.f32 %v4960_v15, %v887_v24 }
 0x261   : > { %v914_v28 = vadd.f32 %v4969_v23, %v900_v25  ;;  %v888_v29 = vmul.f32 %v3990_v26, %v4919_v20  ;;  %v771_v20 = vld [vmem:[#allocation7 + $0x8] sm:$0xff] }
 0x262   : > { %v915_v32 = vadd.f32 %v4969_v23, %v901_v19  ;;  %v4982_v36 = vpack.c.bf16 %v771_v20, %v770_v34  ;;  %v959_v19 = vlaneseq }
 0x263   : > { %v921_v30 = vpack.c.bf16 %v914_v28, %v913_v27  ;;  %v902_v31 = vmul.f32 %v4960_v15, %v888_v29 }
 0x264   : > { %3617 = vmatprep.subr.bf16.mxu1 %v4982_v36 }
 0x265   : > { %1135 = vmatmul.mubr.bf16.vlgmr.msra.gmra.mrb[0].mxu0 %v921_v30  ;;  %3352 = vmatprep.mubr.bf16.mxu1 %v921_v30  ;;  %v916_v13 = vadd.f32 %v4969_v23, %v902_v31  ;;  %v5027_v30 = vshrl.u32 %v959_v19, 7  ;;  %v957_v31 = vld [vmem:[#allocation13] sm:$0x7] }
 0x266   : > { %1144 = vmatprep.mubr.bf16.mxu0 %v5846_v47 }
 0x267   : > { %v922_v33 = vpack.c.bf16 %v916_v13, %v915_v32  ;;  %v5845_v32 = vsub.s32 0, %v5027_v30 }
 0x269   : > { %3353 = vmatmul.mubr.bf16.vlgmr.msra.gmra.mrb[0].mxu1 %v922_v33 }
 0x26a   : > { %3619 = vmatpush3.bf16.msra.mxu1 %v4982_v36 }
 0x26b   : > { %3621 = vmatprep.subr.bf16.mxu1 %v4984_v38 }
 0x26d   : > { %1145 = vmatmul.mubr.bf16.gmra.mrb[4].mxu0 %v922_v33 }
 0x26e   : > { %1154 = vmatprep.mubr.bf16.mxu0 %v5846_v47  ;;  %3623 = vmatpush3.bf16.msra.mxu1 %v4984_v38 }
 0x26f   : > { %3625 = vmatprep.subr.bf16.mxu1 %v4989_v41 }
 0x272   : > { %3627 = vmatpush3.bf16.msra.mxu1 %v4989_v41 }
 0x273   : > { %3629 = vmatprep.subr.bf16.mxu1 %v4993_v44 }
 0x276   : > { %3631 = vmatpush3.bf16.msra.mxu1 %v4993_v44 }
 0x277   : > { %3633 = vmatprep.subr.bf16.mxu1 %v4998_v48 }
 0x27a   : > { %3635 = vmatpush3.bf16.msra.mxu1 %v4998_v48 }
 0x27b   : > { %3637 = vmatprep.subr.bf16.mxu1 %v5002_v51 }
 0x27e   : > { %3639 = vmatpush3.bf16.msra.mxu1 %v5002_v51 }
 0x27f   : > { %3641 = vmatprep.subr.bf16.mxu1 %v5006_v54 }
 0x282   : > { %3643 = vmatpush3.bf16.msra.mxu1 %v5006_v54 }
 0x283   : > { %3645 = vmatprep.subr.bf16.mxu1 %v5010_v57 }
 0x286   : > { %3647 = vmatpush3.bf16.msra.mxu1 %v5010_v57 }
 0x2e5   : > { %v854_v58 = vpop.xlane.xlu0 %853 }
 0x2e6   : > { %v865_v59 = vmul.f32 0.0078125, %v854_v58 }
 0x2e8   : > { %v873_v60 = vadd.f32 1e-05, %v865_v59  ;;  %v5061_v59 = vld [vmem:[#allocation5 + $0x10] sm:$0xff] }
 0x2e9   : > { %v856_v61 = vpop.xlane.xlu1 %855  ;;  %v858_v62 = vpop.xlane.xlu0 %857 }
 0x2ea   : > { %3991 = vrsqrt.f32 %v873_v60  ;;  %v866_v0 = vmul.f32 0.0078125, %v856_v61  ;;  %v867_v1 = vmul.f32 0.0078125, %v858_v62  ;;  %v5064_v61 = vld [vmem:[#allocation5 + $0x30] sm:$0xff]  ;;  %v5066_v62 = vld [vmem:[#allocation5 + $0x68] sm:$0xff] }
 0x2ec   : > { %v874_v2 = vadd.f32 1e-05, %v866_v0  ;;  %v875_v3 = vadd.f32 1e-05, %v867_v1 }
 0x2ed   : > { %v860_v4 = vpop.xlane.xlu1 %859 }
 0x2ee   : > { %3993 = vrsqrt.f32 %v874_v2  ;;  %v868_v5 = vmul.f32 0.0078125, %v860_v4 }
 0x2ef   : > { %3995 = vrsqrt.f32 %v875_v3 }
 0x2f0   : > { %v876_v8 = vadd.f32 1e-05, %v868_v5 }
 0x2f2   : > { %3997 = vrsqrt.f32 %v876_v8 }
 0x2f4   : > { %v3992_v9 = vpop.eup %3991 }
 0x2f5   : > { %v889_v10 = vmul.f32 %v3992_v9, %v4945_v63 }
 0x2f7   : > { %v903_v18 = vmul.f32 %v4960_v15, %v889_v10  ;;  %v5075_v10 = vld [vmem:[#allocation5 + $0x18] sm:$0xff] }
 0x2f8   : > { %v3994_v11 = vpop.eup %3993 }
 0x2f9   : > { %v3996_v14 = vpop.eup %3995  ;;  %v890_v16 = vmul.f32 %v3994_v11, %v4950_v6  ;;  %v917_v24 = vadd.f32 %v4969_v23, %v903_v18 }
 0x2fa   : > { %v891_v21 = vmul.f32 %v3996_v14, %v4953_v7 }
 0x2fb   : > { %v904_v12 = vmul.f32 %v4960_v15, %v890_v16 }
 0x2fc   : > { %v3998_v22 = vpop.eup %3997  ;;  %v905_v27 = vmul.f32 %v4960_v15, %v891_v21 }
 0x2fd   : > { %v918_v25 = vadd.f32 %v4969_v23, %v904_v12  ;;  %v892_v26 = vmul.f32 %v3998_v22, %v4963_v17  ;;  %v5844_v17 = vsub.s32 1, %v5027_v30 }
 0x2fe   : > { %v919_v6 = vadd.f32 %v4969_v23, %v905_v27 }
 0x2ff   : > { %v923_v63 = vpack.c.bf16 %v918_v25, %v917_v24  ;;  %v906_v28 = vmul.f32 %v4960_v15, %v892_v26  ;;  %v969_v15 = vsub.s32 2, %v5027_v30  ;;  %v5034_v13 = vrot.slane %v957_v31, %v5844_v17 }
 0x301   : > { %1155 = vmatmul.mubr.bf16.gmra.mrb[8].mxu0 %v923_v63  ;;  %3356 = vmatprep.mubr.bf16.mxu1 %v923_v63  ;;  %v920_v7 = vadd.f32 %v4969_v23, %v906_v28  ;;  %v5038_v23 = vrot.slane %v957_v31, %v5845_v32  ;;  %v5040_v20 = vrot.slane %v957_v31, %v969_v15  ;;  %v5087_v28 = vld [vmem:[#allocation5 + $0x38] sm:$0xff] }
 0x302   : > { %1164 = vmatprep.mubr.bf16.mxu0 %v5846_v47 }
 0x303   : > { %v924_v29 = vpack.c.bf16 %v920_v7, %v919_v6 }
 0x305   : > { %3357 = vmatmul.mubr.bf16.gmra.mrb[4].mxu1 %v924_v29 }
 0x309   : > { %1165 = vmatmul.mubr.bf16.gmra.mrb[12].mxu0 %v924_v29 }
 0x338   : > { %v1136_v33 = vpop.f32.mrb[0].mxu0 }
 0x339   : > { %v1138_v34 = vpop.f32.mrb[1].mxu0  ;;  %v1137_v45 = vadd.f32 %v1136_v33, %v5038_v23 }
 0x33a   : > { %v1139_v39 = vadd.f32 %v1138_v34, %v5034_v13  ;;  %v1140_v40 = vpop.f32.mrb[2].mxu0 }
 0x33b   : > { %v1141_v46 = vadd.f32 %v1140_v40, %v5038_v23  ;;  %v1142_v49 = vpop.f32.mrb[3].mxu0 }
 0x33c   : > { %v1143_v55 = vadd.f32 %v1142_v49, %v5034_v13  ;;  %v3354_v56 = vpop.f32.mrb[0].mxu1  ;;  %v1240_v58 = vmul.f32 %v1139_v39, %v5042_v35  ;;  %v1244_v60 = vmul.f32 %v1139_v39, %v5044_v37  ;;  %v1248_v3 = vmul.f32 %v1139_v39, %v5047_v42 }
 0x33d   : > { %v1288_v0 = vpack.c.bf16 %v1141_v46, %v1137_v45  ;;  %v5069_v1 = vadd.f32 %v3354_v56, %v5040_v20  ;;  %v1209_v2 = vpop.f32.mrb[1].mxu1  ;;  %v1252_v4 = vmul.f32 %v1139_v39, %v5049_v43 }
 0x33e   : > { %v1210_v5 = vadd.f32 %v1209_v2, %v5040_v20  ;;  %v3355_v8 = vpop.f32.mrb[2].mxu1  ;;  %v1241_v9 = vmul.f32 %v1143_v55, %v5053_v50  ;;  %v1245_v11 = vmul.f32 %v1143_v55, %v5055_v52  ;;  %v1249_v14 = vmul.f32 %v1143_v55, %v5057_v53 }
 0x33f   : > { %v1221_v16 = vadd.f32 %v3355_v8, %v5040_v20  ;;  %v1212_v18 = vpop.f32.mrb[3].mxu1  ;;  %3376 = vmatprep.mubr.bf16.mxu0 %v1288_v0  ;;  %v1253_v21 = vmul.f32 %v1143_v55, %v5066_v62  ;;  %v1266_v12 = vmul.f32 %v5069_v1, %v5061_v59  ;;  %v1270_v22 = vmul.f32 %v5069_v1, %v5064_v61  ;;  %v5111_v8 = vld [vmem:[#allocation5 + $0x70] sm:$0xff] }
 0x340   : > { %v1213_v24 = vadd.f32 %v1212_v18, %v5040_v20  ;;  %v1146_v25 = vpop.f32.mrb[4].mxu0  ;;  %v1256_v26 = vpack.c.bf16 %v1241_v9, %v1240_v58  ;;  %v1264_v27 = vmul.f32 %v1210_v5, %v5042_v35  ;;  %v1258_v63 = vpack.c.bf16 %v1245_v11, %v1244_v60 }
 0x341   : > { %v5090_v6 = vadd.f32 %v1146_v25, %v5038_v23  ;;  %v1148_v7 = vpop.f32.mrb[5].mxu0  ;;  %v1260_v29 = vpack.c.bf16 %v1249_v14, %v1248_v3  ;;  %v1262_v19 = vpack.c.bf16 %v1253_v21, %v1252_v4  ;;  %v1267_v31 = vmul.f32 %v1221_v16, %v5075_v10  ;;  %v5107_v3 = vld [vmem:[#allocation5 + $0x50] sm:$0xff]  ;;  %v5109_v4 = vld [vmem:[#allocation5 + $0x58] sm:$0xff] }
 0x342   : > { %v1149_v15 = vadd.f32 %v1148_v7, %v5034_v13  ;;  %v1150_v33 = vpop.f32.mrb[6].mxu0  ;;  %3360 = vmatprep.subr.bf16.mxu0 %v1256_v26  ;;  %v1265_v34 = vmul.f32 %v1213_v24, %v5053_v50  ;;  %v1268_v39 = vmul.f32 %v1210_v5, %v5044_v37  ;;  %v1269_v40 = vmul.f32 %v1213_v24, %v5055_v52  ;;  %v5115_v14 = vld [vmem:[#allocation5 + $0x78] sm:$0xff] }
 0x343   : > { %v1151_v45 = vadd.f32 %v1150_v33, %v5038_v23  ;;  %v1152_v46 = vpop.f32.mrb[7].mxu0  ;;  %3361 = vmatpush3.bf16.xpose.msra.mxu0 %v1256_v26  ;;  %v5098_v49 = vpack.c.bf16 %v1267_v31, %v1266_v12  ;;  %v1271_v55 = vmul.f32 %v1221_v16, %v5087_v28  ;;  %v1272_v56 = vmul.f32 %v1210_v5, %v5047_v42 }
 0x344   : > { %v1153_v58 = vadd.f32 %v1152_v46, %v5034_v13  ;;  %v5103_v60 = vpack.c.bf16 %v1265_v34, %v1264_v27  ;;  %v1242_v0 = vmul.f32 %v1149_v15, %v5061_v59  ;;  %v1246_v2 = vmul.f32 %v1149_v15, %v5064_v61 }
 0x345   : > { %v1289_v9 = vpack.c.bf16 %v1151_v45, %v5090_v6  ;;  %v1250_v11 = vmul.f32 %v1149_v15, %v5107_v3  ;;  %v1254_v18 = vmul.f32 %v1149_v15, %v5111_v8  ;;  %v5118_v21 = vpack.c.bf16 %v1269_v40, %v1268_v39 }
 0x346   : > { %3418 = vmatprep.subr.bf16.mxu1 %v5103_v60  ;;  %v1243_v12 = vmul.f32 %v1153_v58, %v5075_v10  ;;  %v1247_v25 = vmul.f32 %v1153_v58, %v5087_v28  ;;  %v1251_v26 = vmul.f32 %v1153_v58, %v5109_v4  ;;  %v1255_v27 = vmul.f32 %v1153_v58, %v5115_v14 }
 0x347   : > { %v5125_v7 = vpack.c.bf16 %v1271_v55, %v1270_v22  ;;  %v1273_v6 = vmul.f32 %v1213_v24, %v5057_v53  ;;  %v1274_v31 = vmul.f32 %v5069_v1, %v5107_v3  ;;  %v1275_v15 = vmul.f32 %v1221_v16, %v5109_v4 }
 0x348   : > { %v1257_v33 = vpack.c.bf16 %v1243_v12, %v1242_v0  ;;  %v1259_v34 = vpack.c.bf16 %v1247_v25, %v1246_v2  ;;  %v1261_v39 = vpack.c.bf16 %v1251_v26, %v1250_v11  ;;  %v1263_v40 = vpack.c.bf16 %v1255_v27, %v1254_v18 }
 0x349   : > { %v5131_v45 = vpack.c.bf16 %v1273_v6, %v1272_v56  ;;  %v5133_v46 = vpack.c.bf16 %v1275_v15, %v1274_v31  ;;  %v1276_v17 = vmul.f32 %v1210_v5, %v5049_v43  ;;  %v1277_v22 = vmul.f32 %v1213_v24, %v5066_v62 }
 0x34a   : > { %3362 = vmatprep.subr.bf16.mxu0 %v1257_v33  ;;  %v1278_v55 = vmul.f32 %v5069_v1, %v5111_v8  ;;  %v1279_v58 = vmul.f32 %v1221_v16, %v5115_v14 }
 0x34b   : > { %3363 = vmatpush3.bf16.xpose.msra.mxu0 %v1257_v33  ;;  %v5140_v32 = vpack.c.bf16 %v1277_v22, %v1276_v17 }
 0x34c   : > { %3364 = vmatprep.subr.bf16.mxu0 %v1258_v63  ;;  %v5142_v0 = vpack.c.bf16 %v1279_v58, %v1278_v55 }
 0x353   : > { %3365 = vmatpush3.bf16.xpose.msra.mxu0 %v1258_v63 }
 0x354   : > { %3366 = vmatprep.subr.bf16.mxu0 %v1259_v34 }
 0x35b   : > { %3367 = vmatpush3.bf16.xpose.msra.mxu0 %v1259_v34 }
 0x35c   : > { %3368 = vmatprep.subr.bf16.mxu0 %v1260_v29 }
 0x363   : > { %3369 = vmatpush3.bf16.xpose.msra.mxu0 %v1260_v29 }
 0x364   : > { %3370 = vmatprep.subr.bf16.mxu0 %v1261_v39 }
 0x36b   : > { %3371 = vmatpush3.bf16.xpose.msra.mxu0 %v1261_v39 }
 0x36c   : > { %3372 = vmatprep.subr.bf16.mxu0 %v1262_v19 }
 0x373   : > { %3373 = vmatpush3.bf16.xpose.msra.mxu0 %v1262_v19 }
 0x374   : > { %3374 = vmatprep.subr.bf16.mxu0 %v1263_v40 }
 0x37b   : > { %3375 = vmatpush3.bf16.xpose.msra.mxu0 %v1263_v40 }
 0x382   : > { %3377 = vmatmul.mubr.bf16.vlgmr.msra.gmra.mrb[16].mxu0 %v1289_v9 }
 0x3d4   : > { %v1156_v1 = vpop.f32.mrb[8].mxu0 }
 0x3d5   : > { %v1158_v5 = vpop.f32.mrb[9].mxu0  ;;  %v5146_v24 = vadd.f32 %v1156_v1, %v5038_v23 }
 0x3d6   : > { %v1159_v17 = vadd.f32 %v1158_v5, %v5034_v13  ;;  %v1160_v16 = vpop.f32.mrb[10].mxu0 }
 0x3d7   : > { %v5149_v63 = vadd.f32 %v1160_v16, %v5038_v23  ;;  %v1162_v56 = vpop.f32.mrb[11].mxu0 }
 0x3d8   : > { %v1163_v29 = vadd.f32 %v1162_v56, %v5034_v13  ;;  %v3358_v2 = vpop.f32.mrb[4].mxu1  ;;  %v1611_v19 = vmul.f32 %v1159_v17, %v5042_v35  ;;  %v1615_v11 = vmul.f32 %v1159_v17, %v5044_v37  ;;  %v1619_v25 = vmul.f32 %v1159_v17, %v5047_v42 }
 0x3d9   : > { %v1659_v9 = vpack.c.bf16 %v5149_v63, %v5146_v24  ;;  %v1234_v18 = vadd.f32 %v3358_v2, %v5040_v20  ;;  %v1225_v12 = vpop.f32.mrb[5].mxu1  ;;  %v1623_v26 = vmul.f32 %v1159_v17, %v5049_v43 }
 0x3da   : > { %v1226_v27 = vadd.f32 %v1225_v12, %v5040_v20  ;;  %v3359_v6 = vpop.f32.mrb[6].mxu1  ;;  %v1612_v31 = vmul.f32 %v1163_v29, %v5053_v50  ;;  %v1616_v15 = vmul.f32 %v1163_v29, %v5055_v52  ;;  %v1620_v33 = vmul.f32 %v1163_v29, %v5057_v53 }
 0x3db   : > { %v1237_v34 = vadd.f32 %v3359_v6, %v5040_v20  ;;  %v1228_v39 = vpop.f32.mrb[7].mxu1  ;;  %v1624_v40 = vmul.f32 %v1163_v29, %v5066_v62  ;;  %v1637_v22 = vmul.f32 %v1234_v18, %v5061_v59  ;;  %v1641_v55 = vmul.f32 %v1234_v18, %v5064_v61 }
 0x3dc   : > { %v1229_v58 = vadd.f32 %v1228_v39, %v5040_v20  ;;  %v1166_v1 = vpop.f32.mrb[12].mxu0  ;;  %v5168_v5 = vpack.c.bf16 %v1612_v31, %v1611_v19  ;;  %v5170_v17 = vpack.c.bf16 %v1616_v15, %v1615_v11  ;;  %v1635_v16 = vmul.f32 %v1226_v27, %v5042_v35 }
 0x3dd   : > { %v5174_v56 = vadd.f32 %v1166_v1, %v5038_v23  ;;  %v1168_v2 = vpop.f32.mrb[13].mxu0  ;;  %v5176_v12 = vpack.c.bf16 %v1620_v33, %v1619_v25  ;;  %v5178_v29 = vpack.c.bf16 %v1624_v40, %v1623_v26  ;;  %v1638_v6 = vmul.f32 %v1237_v34, %v5075_v10 }
 0x3de   : > { %v1169_v47 = vadd.f32 %v1168_v2, %v5034_v13  ;;  %v1170_v20 = vpop.f32.mrb[14].mxu0  ;;  %v1636_v19 = vmul.f32 %v1229_v58, %v5053_v50  ;;  %v1639_v11 = vmul.f32 %v1226_v27, %v5044_v37  ;;  %v1640_v31 = vmul.f32 %v1229_v58, %v5055_v52 }
 0x3df   : > { %v5186_v35 = vadd.f32 %v1170_v20, %v5038_v23  ;;  %v1172_v15 = vpop.f32.mrb[15].mxu0  ;;  %v5188_v39 = vpack.c.bf16 %v1638_v6, %v1637_v22  ;;  %v1642_v25 = vmul.f32 %v1237_v34, %v5087_v28  ;;  %v1643_v26 = vmul.f32 %v1226_v27, %v5047_v42 }
 0x3e0   : > { %v1173_v33 = vadd.f32 %v1172_v15, %v5034_v13  ;;  %v1613_v40 = vmul.f32 %v1169_v47, %v5061_v59  ;;  %v1617_v50 = vmul.f32 %v1169_v47, %v5064_v61  ;;  %v5195_v1 = vpack.c.bf16 %v1636_v19, %v1635_v16 }
 0x3e1   : > { %v1660_v37 = vpack.c.bf16 %v5186_v35, %v5174_v56  ;;  %v1621_v23 = vmul.f32 %v1169_v47, %v5107_v3  ;;  %v1625_v52 = vmul.f32 %v1169_v47, %v5111_v8  ;;  %v5201_v22 = vpack.c.bf16 %v1640_v31, %v1639_v11  ;;  %v3087_v35 = vld [vmem:[%s4879_s17 + $0x1] ss:$0 sm:$0xff] }
 0x3e2   : > { %v1614_v2 = vmul.f32 %v1173_v33, %v5075_v10  ;;  %v1618_v42 = vmul.f32 %v1173_v33, %v5087_v28  ;;  %v1622_v13 = vmul.f32 %v1173_v33, %v5109_v4  ;;  %v1626_v59 = vmul.f32 %v1173_v33, %v5115_v14 }
 0x3e3   : > { %v5207_v61 = vpack.c.bf16 %v1642_v25, %v1641_v55  ;;  %v1644_v16 = vmul.f32 %v1229_v58, %v5057_v53  ;;  %v1645_v6 = vmul.f32 %v1234_v18, %v5107_v3  ;;  %v1646_v20 = vmul.f32 %v1237_v34, %v5109_v4 }
 0x3e4   : > { %v5212_v47 = vpack.c.bf16 %v1614_v2, %v1613_v40  ;;  %v5214_v19 = vpack.c.bf16 %v1618_v42, %v1617_v50  ;;  %v5216_v10 = vpack.c.bf16 %v1622_v13, %v1621_v23  ;;  %v5218_v28 = vpack.c.bf16 %v1626_v59, %v1625_v52  ;;  %v3086_v50 = vld [vmem:[%s4879_s17] ss:$0 sm:$0xff]  ;;  %v789_v59 = vld [vmem:[%s5816_s4 + $0x18] sm:$0xff]  ;;  %s5890_s17 = sld [smem:[#allocation33_spill]] }
 0x3e5   : > { %v5220_v11 = vpack.c.bf16 %v1644_v16, %v1643_v26  ;;  %v5222_v31 = vpack.c.bf16 %v1646_v20, %v1645_v6  ;;  %v1647_v55 = vmul.f32 %v1226_v27, %v5049_v43  ;;  %v1648_v53 = vmul.f32 %v1229_v58, %v5066_v62  ;;  %v787_v27 = vld [vmem:[%s5816_s4 + $0x8] sm:$0xff]  ;;  %v790_v6 = vld [vmem:[%s5816_s4 + $0x20] sm:$0xff] }
 0x3e6   : > { %v1649_v3 = vmul.f32 %v1234_v18, %v5111_v8  ;;  %v1650_v4 = vmul.f32 %v1237_v34, %v5115_v14  ;;  %v786_v18 = vld [vmem:[%s5816_s4] sm:$0xff]  ;;  %v788_v34 = vld [vmem:[%s5816_s4 + $0x10] sm:$0xff]  ;;  %v791_v20 = vld [vmem:[%s5816_s4 + $0x28] sm:$0xff] }
 0x3e7   : > { %v5228_v15 = vpack.c.bf16 %v1648_v53, %v1647_v55  ;;  %v5242_v58 = vpack.c.bf16 %v787_v27, %v786_v18  ;;  %v5247_v16 = vpack.c.bf16 %v789_v59, %v788_v34  ;;  %v5258_v55 = vpack.c.bf16 %v791_v20, %v790_v6  ;;  %v792_v53 = vld [vmem:[%s5816_s4 + $0x30] sm:$0xff] }
 0x3e8   : > { %v5230_v25 = vpack.c.bf16 %v1650_v4, %v1649_v3  ;;  %v793_v3 = vld [vmem:[%s5816_s4 + $0x38] sm:$0xff] }
 0x3e9   : > { %3649 = vmatprep.subr.bf16.mxu0 %v5242_v58  ;;  %v5268_v4 = vpack.c.bf16 %v793_v3, %v792_v53 }
 0x3ea   : > { %3651 = vmatpush3.bf16.msra.mxu0 %v5242_v58 }
 0x3eb   : > { %3653 = vmatprep.subr.bf16.mxu0 %v5247_v16 }
 0x3ee   : > { %3655 = vmatpush3.bf16.msra.mxu0 %v5247_v16 }
 0x3ef   : > { %3657 = vmatprep.subr.bf16.mxu0 %v5258_v55 }
 0x3f2   : > { %3659 = vmatpush3.bf16.msra.mxu0 %v5258_v55 }
 0x3f3   : > { %3661 = vmatprep.subr.bf16.mxu0 %v5268_v4 }
 0x3f6   : > { %3663 = vmatpush3.bf16.msra.mxu0 %v5268_v4 }
 0x455   : > { %v3378_v33 = vpop.f32.mrb[16].mxu0 }
 0x456   : > { %v1324_v40 = vpop.f32.mrb[17].mxu0  ;;  %v1341_v2 = vmul.f32 0.17677669, %v3378_v33  ;;  %v794_v33 = vld [vmem:[%s5816_s4 + $0x40] sm:$0xff] }
 0x457   : > { %v1339_v23 = vmul.f32 0.17677669, %v1324_v40  ;;  %v3379_v26 = vpop.f32.mrb[18].mxu0  ;;  %v795_v40 = vld [vmem:[%s5816_s4 + $0x48] sm:$0xff] }
 0x458   : > { %v1327_v52 = vpop.f32.mrb[19].mxu0  ;;  %v1342_v43 = vmul.f32 0.17677669, %v3379_v26  ;;  %v1351_v8 = vadd.f32 %v3086_v50, %v1341_v2 }
 0x459   : > { %v1340_v42 = vmul.f32 0.17677669, %v1327_v52  ;;  %v1349_v13 = vadd.f32 %v3086_v50, %v1339_v23 }
 0x45a   : > { %v1352_v14 = vadd.f32 %v3086_v50, %v1342_v43 }
 0x45b   : > { %1353 = vmax.xlane.f32.xlu0 %v1349_v13  ;;  %v1350_v62 = vadd.f32 %v3086_v50, %v1340_v42  ;;  %v5278_v50 = vpack.c.bf16 %v795_v40, %v794_v33 }
 0x45d   : > { %1355 = vmax.xlane.f32.xlu1 %v1350_v62  ;;  %3665 = vmatprep.subr.bf16.mxu0 %v5278_v50 }
 0x45e   : > { %3667 = vmatpush3.bf16.msra.mxu0 %v5278_v50 }
 0x45f   : > { %1357 = vmax.xlane.f32.xlu0 %v1351_v8 }
 0x461   : > { %1359 = vmax.xlane.f32.xlu1 %v1352_v14 }
 0x4e8   : > { %v1354_v23 = vpop.xlane.xlu0 %1353 }
 0x4e9   : > { %v1361_v26 = vsub.f32 %v1349_v13, %v1354_v23 }
 0x4ea   : > { %v1356_v52 = vpop.xlane.xlu1 %1355 }
 0x4eb   : > { %v1365_v2 = vmul.f32 1.442695, %v1361_v26  ;;  %v1362_v42 = vsub.f32 %v1350_v62, %v1356_v52 }
 0x4ec   : > { %v1358_v43 = vpop.xlane.xlu0 %1357 }
 0x4ed   : > { %3999 = vpow2.f32 %v1365_v2  ;;  %v1367_v18 = vmul.f32 1.442695, %v1362_v42  ;;  %v1363_v27 = vsub.f32 %v1351_v8, %v1358_v43 }
 0x4ee   : > { %v1360_v34 = vpop.xlane.xlu1 %1359 }
 0x4ef   : > { %4001 = vpow2.f32 %v1367_v18  ;;  %v1369_v59 = vmul.f32 1.442695, %v1363_v27  ;;  %v1364_v6 = vsub.f32 %v1352_v14, %v1360_v34 }
 0x4f1   : > { %4003 = vpow2.f32 %v1369_v59  ;;  %v1371_v20 = vmul.f32 1.442695, %v1364_v6 }
 0x4f3   : > { %4005 = vpow2.f32 %v1371_v20 }
 0x4f7   : > { %v4000_v53 = vpop.eup %3999 }
 0x4f8   : > { %3412 = vmatprep.mubr.f32.mxu1 %v4000_v53 }
 0x4f9   : > { %v4002_v3 = vpop.eup %4001 }
 0x4fa   : > { %3413 = vmatmul.mubr.f32.vlgmr.msra.gmra.mrb[8].mxu1 %v4002_v3 }
 0x4fb   : > { %v4004_v33 = vpop.eup %4003  ;;  %3419 = vmatpush3.bf16.msra.mxu1 %v5103_v60  ;;  %v797_v60 = vld [vmem:[%s5816_s4 + $0x58] sm:$0xff] }
 0x4fc   : > { %3420 = vmatprep.subr.bf16.mxu1 %v5098_v49  ;;  %3415 = vmatprep.mubr.f32.mxu1 %v4004_v33 }
 0x4fd   : > { %v4006_v13 = vpop.eup %4005 }
 0x4fe   : > { %3416 = vmatmul.mubr.f32.gmra.mrb[10].mxu1 %v4006_v13 }
 0x4ff   : > { %3421 = vmatpush3.bf16.msra.mxu1 %v5098_v49  ;;  %v796_v49 = vld [vmem:[%s5816_s4 + $0x50] sm:$0xff] }
 0x500   : > { %3422 = vmatprep.subr.bf16.mxu1 %v5118_v21 }
 0x503   : > { %3423 = vmatpush3.bf16.msra.mxu1 %v5118_v21  ;;  %v5305_v21 = vpack.c.bf16 %v797_v60, %v796_v49 }
 0x504   : > { %3424 = vmatprep.subr.bf16.mxu1 %v5125_v7 }
 0x505   : > { %3669 = vmatprep.subr.bf16.mxu0 %v5305_v21 }
 0x506   : > { %3671 = vmatpush3.bf16.msra.mxu0 %v5305_v21 }
 0x507   : > { %3425 = vmatpush3.bf16.msra.mxu1 %v5125_v7  ;;  %v799_v7 = vld [vmem:[%s5816_s4 + $0x68] sm:$0xff] }
 0x508   : > { %3426 = vmatprep.subr.bf16.mxu1 %v5131_v45 }
 0x50b   : > { %3427 = vmatpush3.bf16.msra.mxu1 %v5131_v45  ;;  %v800_v45 = vld [vmem:[%s5816_s4 + $0x70] sm:$0xff] }
 0x50c   : > { %3428 = vmatprep.subr.bf16.mxu1 %v5133_v46 }
 0x50f   : > { %3429 = vmatpush3.bf16.msra.mxu1 %v5133_v46 }
 0x510   : > { %3430 = vmatprep.subr.bf16.mxu1 %v5140_v32 }
 0x513   : > { %3431 = vmatpush3.bf16.msra.mxu1 %v5140_v32  ;;  %v798_v32 = vld [vmem:[%s5816_s4 + $0x60] sm:$0xff] }
 0x514   : > { %3432 = vmatprep.subr.bf16.mxu1 %v5142_v0  ;;  %v5318_v46 = vpack.c.bf16 %v799_v7, %v798_v32 }
 0x516   : > { %3673 = vmatprep.subr.bf16.mxu0 %v5318_v46 }
 0x517   : > { %3433 = vmatpush3.bf16.msra.mxu1 %v5142_v0  ;;  %v801_v0 = vld [vmem:[%s5816_s4 + $0x78] sm:$0xff]  ;;  %3675 = vmatpush3.bf16.msra.mxu0 %v5318_v46 }
 0x518   : > { %3476 = vmatprep.subr.bf16.mxu1 %v5168_v5  ;;  %v5323_v62 = vpack.c.bf16 %v801_v0, %v800_v45 }
 0x51a   : > { %3677 = vmatprep.subr.bf16.mxu0 %v5323_v62 }
 0x51b   : > { %3679 = vmatpush3.bf16.msra.mxu0 %v5323_v62 }
 0x51c   : > { %3681 = vmatprep.subr.bf16.mxu0 %v4982_v36 }
 0x5cd   : > { %v3414_v8 = vpop.f32.mrb[8].mxu1 }
 0x5ce   : > { %4007 = vrcp.f32 %v3414_v8  ;;  %v1439_v14 = vpop.f32.mrb[9].mxu1 }
 0x5cf   : > { %4009 = vrcp.f32 %v1439_v14 }
 0x5d1   : > { %v3417_v40 = vpop.f32.mrb[10].mxu1 }
 0x5d2   : > { %4011 = vrcp.f32 %v3417_v40  ;;  %v1449_v23 = vpop.f32.mrb[11].mxu1 }
 0x5d3   : > { %4013 = vrcp.f32 %v1449_v23 }
 0x5d8   : > { %v4008_v26 = vpop.eup %4007 }
 0x5d9   : > { %v4010_v52 = vpop.eup %4009  ;;  %v1463_v2 = vmul.f32 %v4008_v26, %v4002_v3 }
 0x5da   : > { %v1462_v42 = vmul.f32 %v4010_v52, %v4000_v53 }
 0x5dc   : > { %v4012_v43 = vpop.eup %4011  ;;  %3470 = vmatprep.mubr.f32.mxu0 %v1462_v42  ;;  %v1466_v18 = vpack.c.bf16 %v1463_v2, %v1462_v42 }
 0x5dd   : > { %v4014_v27 = vpop.eup %4013  ;;  %3471 = vmatmul.mubr.f32.vlgmr.msra.gmra.mrb[20].mxu0 %v1463_v2  ;;  %v1465_v34 = vmul.f32 %v4012_v43, %v4006_v13 }
 0x5de   : > { %3683 = vmatpush3.bf16.msra.mxu0 %v4982_v36  ;;  %3434 = vmatprep.mubr.bf16.mxu1 %v1466_v18  ;;  %v1464_v59 = vmul.f32 %v4014_v27, %v4004_v33  ;;  %v3936_v18 = vld [vmem:[%s5888_s23 + $0x8] sm:$0xff]   ;;  %v5889_v27 = vmov 0  }
 0x5df   : > { %3685 = vmatprep.subr.bf16.mxu0 %v4984_v38 }
 0x5e0   : > { %3473 = vmatprep.mubr.f32.mxu0 %v1464_v59  ;;  %v1467_v6 = vpack.c.bf16 %v1465_v34, %v1464_v59  ;;  %v3938_v59 = vld [vmem:[%s5888_s23 + $0x18] sm:$0xff]  }
 0x5e1   : > { %3474 = vmatmul.mubr.f32.gmra.mrb[22].mxu0 %v1465_v34  ;;  %v3937_v34 = vld [vmem:[%s5888_s23 + $0x10] sm:$0xff]  }
 0x5e2   : > { %3687 = vmatpush3.bf16.msra.mxu0 %v4984_v38  ;;  %3435 = vmatmul.mubr.bf16.vlgmr.msra.gmra.mrb[12].mxu1 %v1467_v6  ;;  %v3939_v6 = vld [vmem:[%s5888_s23 + $0x20] sm:$0xff]  }
 0x5e3   : > { %3477 = vmatpush3.bf16.xpose.msra.mxu1 %v5168_v5  ;;  %3492 = vmatprep.mubr.bf16.mxu1 %v1659_v9 }
 0x5e4   : > { %3478 = vmatprep.subr.bf16.mxu1 %v5212_v47  ;;  %3689 = vmatprep.subr.bf16.mxu0 %v4989_v41 }
 0x5e6   : > { %3691 = vmatpush3.bf16.msra.mxu0 %v4989_v41 }
 0x5e7   : > { %3693 = vmatprep.subr.bf16.mxu0 %v4993_v44 }
 0x5ea   : > { %3695 = vmatpush3.bf16.msra.mxu0 %v4993_v44 }
 0x5eb   : > { %3479 = vmatpush3.bf16.xpose.msra.mxu1 %v5212_v47  ;;  %3697 = vmatprep.subr.bf16.mxu0 %v4998_v48 }
 0x5ec   : > { %3480 = vmatprep.subr.bf16.mxu1 %v5170_v17 }
 0x5ee   : > { %3699 = vmatpush3.bf16.msra.mxu0 %v4998_v48 }
 0x5ef   : > { %3701 = vmatprep.subr.bf16.mxu0 %v5002_v51 }
 0x5f2   : > { %3703 = vmatpush3.bf16.msra.mxu0 %v5002_v51 }
 0x5f3   : > { %3481 = vmatpush3.bf16.xpose.msra.mxu1 %v5170_v17  ;;  %3705 = vmatprep.subr.bf16.mxu0 %v5006_v54 }
 0x5f4   : > { %3482 = vmatprep.subr.bf16.mxu1 %v5214_v19 }
 0x5f6   : > { %3707 = vmatpush3.bf16.msra.mxu0 %v5006_v54 }
 0x5f7   : > { %3709 = vmatprep.subr.bf16.mxu0 %v5010_v57 }
 0x5fa   : > { %3711 = vmatpush3.bf16.msra.mxu0 %v5010_v57 }
 0x5fb   : > { %3483 = vmatpush3.bf16.xpose.msra.mxu1 %v5214_v19  ;;  %3534 = vmatprep.subr.bf16.mxu0 %v5195_v1 }
 0x5fc   : > { %3484 = vmatprep.subr.bf16.mxu1 %v5176_v12 }
 0x603   : > { %3485 = vmatpush3.bf16.xpose.msra.mxu1 %v5176_v12 }
 0x604   : > { %3486 = vmatprep.subr.bf16.mxu1 %v5216_v10 }
 0x60b   : > { %3487 = vmatpush3.bf16.xpose.msra.mxu1 %v5216_v10 }
 0x60c   : > { %3488 = vmatprep.subr.bf16.mxu1 %v5178_v29 }
 0x613   : > { %3489 = vmatpush3.bf16.xpose.msra.mxu1 %v5178_v29 }
 0x614   : > { %3490 = vmatprep.subr.bf16.mxu1 %v5218_v28 }
 0x61b   : > { %3491 = vmatpush3.bf16.xpose.msra.mxu1 %v5218_v28 }
 0x61c   : > { %3713 = vmatprep.subr.bf16.mxu1 %v5242_v58 }
 0x622   : > { %3493 = vmatmul.mubr.bf16.vlgmr.msra.gmra.mrb[16].mxu1 %v1660_v37 }
 0x623   : > { %3715 = vmatpush3.bf16.msra.mxu1 %v5242_v58 }
 0x624   : > { %3717 = vmatprep.subr.bf16.mxu1 %v5247_v16 }
 0x627   : > { %3719 = vmatpush3.bf16.msra.mxu1 %v5247_v16 }
 0x628   : > { %3721 = vmatprep.subr.bf16.mxu1 %v5258_v55 }
 0x62b   : > { %3723 = vmatpush3.bf16.msra.mxu1 %v5258_v55 }
 0x62c   : > { %3725 = vmatprep.subr.bf16.mxu1 %v5268_v4 }
 0x62f   : > { %3727 = vmatpush3.bf16.msra.mxu1 %v5268_v4 }
 0x630   : > { %3729 = vmatprep.subr.bf16.mxu1 %v5278_v50 }
 0x633   : > { %3731 = vmatpush3.bf16.msra.mxu1 %v5278_v50 }
 0x634   : > { %3733 = vmatprep.subr.bf16.mxu1 %v5305_v21 }
 0x637   : > { %3735 = vmatpush3.bf16.msra.mxu1 %v5305_v21 }
 0x638   : > { %3737 = vmatprep.subr.bf16.mxu1 %v5318_v46 }
 0x63b   : > { %3739 = vmatpush3.bf16.msra.mxu1 %v5318_v46 }
 0x63c   : > { %3741 = vmatprep.subr.bf16.mxu1 %v5323_v62 }
 0x63f   : > { %3743 = vmatpush3.bf16.msra.mxu1 %v5323_v62 }
 0x6b0   : > { %v3472_v36 = vpop.f32.mrb[20].mxu0 }
 0x6b1   : > { %v1603_v38 = vmul.f32 0.25, %v3472_v36  ;;  %v1583_v41 = vpop.f32.mrb[21].mxu0  ;;  %v3940_v36 = vld [vmem:[%s5888_s23 + $0x28] sm:$0xff]  }
 0x6b2   : > { %v1602_v44 = vmul.f32 0.25, %v1583_v41  ;;  %v3942_v41 = vld [vmem:[%s5888_s23 + $0x38] sm:$0xff]  }
 0x6b3   : > { %1608 = vst.msk [vmem:[%s5386_s0 + $0x8] sm:$0xff] %vm1606_vm0, %v1603_v38  ;;  %v3941_v38 = vld [vmem:[%s5888_s23 + $0x30] sm:$0xff]  }
 0x6b4   : > { %1607 = vst.msk [vmem:[%s5386_s0] sm:$0xff] %vm1606_vm0, %v1602_v44  ;;  %v3475_v48 = vpop.f32.mrb[22].mxu0 }
 0x6b5   : > { %v1605_v51 = vmul.f32 0.25, %v3475_v48  ;;  %v5392_v54 = vpop.f32.mrb[12].mxu1  ;;  %v1593_v57 = vpop.f32.mrb[23].mxu0 }
 0x6b6   : > { %v1604_v24 = vmul.f32 0.25, %v1593_v57  ;;  %v5394_v63 = vpop.f32.mrb[13].mxu1 }
 0x6b7   : > { %1610 = vst.msk [vmem:[%s5386_s0 + $0x18] sm:$0xff] %vm1606_vm0, %v1605_v51  ;;  %v5398_v9 = vpop.f32.mrb[14].mxu1 }
 0x6b8   : > { %1609 = vst.msk [vmem:[%s5386_s0 + $0x10] sm:$0xff] %vm1606_vm0, %v1604_v24  ;;  %v1983_v5 = vpack.c.bf16 %v5398_v9, %v5392_v54  ;;  %v5404_v17 = vpop.f32.mrb[15].mxu1 }
 0x6b9   : > { %v1982_v56 = vpack.c.bf16 %v5404_v17, %v5394_v63 }
 0x6f5   : > { %v3494_v12 = vpop.f32.mrb[16].mxu1 }
 0x6f6   : > { %v1695_v29 = vpop.f32.mrb[17].mxu1  ;;  %v1712_v10 = vmul.f32 0.17677669, %v3494_v12 }
 0x6f7   : > { %v1710_v37 = vmul.f32 0.17677669, %v1695_v29  ;;  %v3495_v47 = vpop.f32.mrb[18].mxu1 }
 0x6f8   : > { %v1698_v19 = vpop.f32.mrb[19].mxu1  ;;  %v1713_v16 = vmul.f32 0.17677669, %v3495_v47  ;;  %v1722_v4 = vadd.f32 %v3087_v35, %v1712_v10 }
 0x6f9   : > { %v1711_v28 = vmul.f32 0.17677669, %v1698_v19  ;;  %v1720_v58 = vadd.f32 %v3087_v35, %v1710_v37  ;;  %v3092_v37 = vld [vmem:[%s5890_s17] ss:$0 sm:$0xff]  ;;  %s4341_s17 = scalar_lea.vmem %s5716_s21, 1024 }
 0x6fa   : > { %v1723_v50 = vadd.f32 %v3087_v35, %v1713_v16  ;;  %p4342_p1 = scmp.ne.s32.totalorder %s5716_s21, %s4341_s17 }
 0x6fb   : > { %1724 = vmax.xlane.f32.xlu0 %v1720_v58  ;;  %v1721_v55 = vadd.f32 %v3087_v35, %v1711_v28 }
 0x6fc   : > { %p4343_p0 = pnand %p4342_p1, %p5898_p13 }
 0x6fd   : > { %1726 = vmax.xlane.f32.xlu1 %v1721_v55 }
 0x6fe   : > { %p4344_p2 = pneg %p4343_p0 }
 0x6ff   : > { %1728 = vmax.xlane.f32.xlu0 %v1722_v4 }
 0x701   : > { %1730 = vmax.xlane.f32.xlu1 %v1723_v50 }
 0x788   : > { %v1725_v20 = vpop.xlane.xlu0 %1724 }
 0x789   : > { %v1732_v53 = vsub.f32 %v1720_v58, %v1725_v20 }
 0x78a   : > { %v1727_v3 = vpop.xlane.xlu1 %1726 }
 0x78b   : > { %v1736_v33 = vmul.f32 1.442695, %v1732_v53  ;;  %v1733_v13 = vsub.f32 %v1721_v55, %v1727_v3  ;;  %v4079_v55 = vld [vmem:[%s4905_s19] sm:$0xff]  ;;  %v4080_v53 = vld [vmem:[%s4905_s19 + $0x8] sm:$0xff] }
 0x78c   : > { %v1729_v49 = vpop.xlane.xlu0 %1728 }
 0x78d   : > { %4015 = vpow2.f32 %v1736_v33  ;;  %v1738_v60 = vmul.f32 1.442695, %v1733_v13  ;;  %v1734_v21 = vsub.f32 %v1722_v4, %v1729_v49  ;;  %v4081_v33 = vld [vmem:[%s4905_s19 + $0x10] sm:$0xff]  ;;  %v4082_v49 = vld [vmem:[%s4905_s19 + $0x18] sm:$0xff] }
 0x78e   : > { %v1731_v32 = vpop.xlane.xlu1 %1730 }
 0x78f   : > { %4017 = vpow2.f32 %v1738_v60  ;;  %v1740_v7 = vmul.f32 1.442695, %v1734_v21  ;;  %v1735_v45 = vsub.f32 %v1723_v50, %v1731_v32 }
 0x791   : > { %4019 = vpow2.f32 %v1740_v7  ;;  %v1742_v46 = vmul.f32 1.442695, %v1735_v45 }
 0x793   : > { %4021 = vpow2.f32 %v1742_v46 }
 0x797   : > { %v4016_v0 = vpop.eup %4015 }
 0x798   : > { %3528 = vmatprep.mubr.f32.mxu0 %v4016_v0 }
 0x799   : > { %v4018_v62 = vpop.eup %4017 }
 0x79a   : > { %3529 = vmatmul.mubr.f32.vlgmr.msra.gmra.mrb[24].mxu0 %v4018_v62 }
 0x79b   : > { %v4020_v8 = vpop.eup %4019  ;;  %3535 = vmatpush3.bf16.msra.mxu0 %v5195_v1 }
 0x79c   : > { %3536 = vmatprep.subr.bf16.mxu0 %v5188_v39  ;;  %3531 = vmatprep.mubr.f32.mxu0 %v4020_v8 }
 0x79d   : > { %v4022_v14 = vpop.eup %4021 }
 0x79e   : > { %3532 = vmatmul.mubr.f32.gmra.mrb[26].mxu0 %v4022_v14 }
 0x79f   : > { %3537 = vmatpush3.bf16.msra.mxu0 %v5188_v39  ;;  %v3935_v39 = vld [vmem:[%s5888_s23] sm:$0xff]  }
 0x7a0   : > { %3538 = vmatprep.subr.bf16.mxu0 %v5201_v22 }
 0x7a3   : > { %3539 = vmatpush3.bf16.msra.mxu0 %v5201_v22 }
 0x7a4   : > { %3540 = vmatprep.subr.bf16.mxu0 %v5207_v61 }
 0x7a7   : > { %3541 = vmatpush3.bf16.msra.mxu0 %v5207_v61 }
 0x7a8   : > { %3542 = vmatprep.subr.bf16.mxu0 %v5220_v11 }
 0x7ab   : > { %3543 = vmatpush3.bf16.msra.mxu0 %v5220_v11 }
 0x7ac   : > { %3544 = vmatprep.subr.bf16.mxu0 %v5222_v31 }
 0x7af   : > { %3545 = vmatpush3.bf16.msra.mxu0 %v5222_v31 }
 0x7b0   : > { %3546 = vmatprep.subr.bf16.mxu0 %v5228_v15 }
 0x7b3   : > { %3547 = vmatpush3.bf16.msra.mxu0 %v5228_v15 }
 0x7b4   : > { %3548 = vmatprep.subr.bf16.mxu0 %v5230_v25 }
 0x7b7   : > { %3549 = vmatpush3.bf16.msra.mxu0 %v5230_v25 }
 0x7b8   : > { %3592 = vmatprep.subr.bf16.mxu0 %v3935_v39 }
 0x86d   : > { %v3530_v1 = vpop.f32.mrb[24].mxu0 }
 0x86e   : > { %4023 = vrcp.f32 %v3530_v1  ;;  %v1810_v22 = vpop.f32.mrb[25].mxu0 }
 0x86f   : > { %4025 = vrcp.f32 %v1810_v22 }
 0x871   : > { %v3533_v61 = vpop.f32.mrb[26].mxu0 }
 0x872   : > { %4027 = vrcp.f32 %v3533_v61  ;;  %v1820_v11 = vpop.f32.mrb[27].mxu0 }
 0x873   : > { %4029 = vrcp.f32 %v1820_v11 }
 0x878   : > { %v4024_v31 = vpop.eup %4023 }
 0x879   : > { %v4026_v40 = vpop.eup %4025  ;;  %v1834_v15 = vmul.f32 %v4024_v31, %v4018_v62 }
 0x87a   : > { %v1833_v23 = vmul.f32 %v4026_v40, %v4016_v0  ;;  %v4084_v40 = vld [vmem:[%s4905_s19 + $0x28] sm:$0xff] }
 0x87c   : > { %v4028_v26 = vpop.eup %4027  ;;  %3586 = vmatprep.mubr.f32.mxu1 %v1833_v23  ;;  %v1837_v25 = vpack.c.bf16 %v1834_v15, %v1833_v23 }
 0x87d   : > { %v4030_v52 = vpop.eup %4029  ;;  %3587 = vmatmul.mubr.f32.vlgmr.msra.gmra.mrb[20].mxu1 %v1834_v15  ;;  %v1836_v2 = vmul.f32 %v4028_v26, %v4022_v14 }
 0x87e   : > { %3550 = vmatprep.mubr.bf16.mxu0 %v1837_v25  ;;  %v1835_v42 = vmul.f32 %v4030_v52, %v4020_v8  ;;  %v4085_v52 = vld [vmem:[%s4905_s19 + $0x30] sm:$0xff] }
 0x880   : > { %3589 = vmatprep.mubr.f32.mxu1 %v1835_v42  ;;  %v1838_v43 = vpack.c.bf16 %v1836_v2, %v1835_v42 }
 0x881   : > { %3590 = vmatmul.mubr.f32.gmra.mrb[22].mxu1 %v1836_v2 }
 0x882   : > { %3551 = vmatmul.mubr.bf16.vlgmr.msra.gmra.mrb[28].mxu0 %v1838_v43  ;;  %2392 = vmatprep.mubr.bf16.mxu1 %v5889_v27 }
 0x883   : > { %3593 = vmatpush3.bf16.msra.mxu0 %v3935_v39  ;;  %3608 = vmatprep.mubr.bf16.mxu0 %v1982_v56  ;;  %v4083_v39 = vld [vmem:[%s4905_s19 + $0x20] sm:$0xff] }
 0x884   : > { %3594 = vmatprep.subr.bf16.mxu0 %v3936_v18 }
 0x887   : > { %3595 = vmatpush3.bf16.msra.mxu0 %v3936_v18  ;;  %v4086_v18 = vld [vmem:[%s4905_s19 + $0x38] sm:$0xff]  ;;  %s4475_s19 = smov [#allocation18]  }
 0x888   : > { %3596 = vmatprep.subr.bf16.mxu0 %v3937_v34 }
 0x88b   : > { %3597 = vmatpush3.bf16.msra.mxu0 %v3937_v34 }
 0x88c   : > { %3598 = vmatprep.subr.bf16.mxu0 %v3938_v59 }
 0x88f   : > { %3599 = vmatpush3.bf16.msra.mxu0 %v3938_v59 }
 0x890   : > { %3600 = vmatprep.subr.bf16.mxu0 %v3939_v6 }
 0x893   : > { %3601 = vmatpush3.bf16.msra.mxu0 %v3939_v6 }
 0x894   : > { %3602 = vmatprep.subr.bf16.mxu0 %v3940_v36 }
 0x897   : > { %3603 = vmatpush3.bf16.msra.mxu0 %v3940_v36 }
 0x898   : > { %3604 = vmatprep.subr.bf16.mxu0 %v3941_v38 }
 0x89b   : > { %3605 = vmatpush3.bf16.msra.mxu0 %v3941_v38 }
 0x89c   : > { %3606 = vmatprep.subr.bf16.mxu0 %v3942_v41 }
 0x89f   : > { %3607 = vmatpush3.bf16.msra.mxu0 %v3942_v41 }
 0x8a2   : > { %3609 = vmatmul.mubr.bf16.vlgmr.msra.gmra.mrb[32].mxu0 %v1983_v5 }
 0x950   : > { %v3588_v44 = vpop.f32.mrb[20].mxu1 }
 0x951   : > { %v1974_v48 = vmul.f32 0.25, %v3588_v44  ;;  %v1954_v51 = vpop.f32.mrb[21].mxu1 }
 0x952   : > { %v1973_v57 = vmul.f32 0.25, %v1954_v51  ;;  %v3945_v51 = vld [vmem:[#allocation14 + $0x4] ss:$8 sps:$4 sm:$0xff]  }
 0x953   : > { %3089 = vst.msk [vmem:[%s5386_s0 + $0x28] sm:$0xff] %vm1606_vm0, %v1974_v48  ;;  %v3943_v48 = vld [vmem:[#allocation14] ss:$8 sps:$4 sm:$0xff]   ;;  %2360 = vmatprep.subr.bf16.mxu1 %v3945_v51  ;;  %v5549_v51 = vld [vmem:[%s5892_s20] ss:$0 sm:$0xff]  ;;  %s5897_s20 = sld [smem:[#allocation39_spill]] }
 0x954   : > { %3088 = vst.msk [vmem:[%s5386_s0 + $0x20] sm:$0xff] %vm1606_vm0, %v1973_v57  ;;  %v3591_v24 = vpop.f32.mrb[22].mxu1  ;;  %2361 = vmatpush1.bf16.msra.mxu1 %v3943_v48  ;;  %v3946_v57 = vld [vmem:[#allocation14 + $0x10] ss:$8 sps:$4 sm:$0xff]  }
 0x955   : > { %v1976_v63 = vmul.f32 0.25, %v3591_v24  ;;  %v3552_v17 = vpop.f32.mrb[28].mxu0  ;;  %v1964_v56 = vpop.f32.mrb[23].mxu1  ;;  %v3948_v24 = vld [vmem:[#allocation14 + $0x14] ss:$8 sps:$4 sm:$0xff]  }
 0x956   : > { %v1975_v12 = vmul.f32 0.25, %v1964_v56  ;;  %v1873_v29 = vpop.f32.mrb[29].mxu0  ;;  %2362 = vmatprep.subr.bf16.mxu1 %v3948_v24  ;;  %v3954_v56 = vld [vmem:[#allocation14 + $0x34] ss:$8 sps:$4 sm:$0xff]  }
 0x957   : > { %3091 = vst.msk [vmem:[%s5386_s0 + $0x38] sm:$0xff] %vm1606_vm0, %v1976_v63  ;;  %v3553_v54 = vpop.f32.mrb[30].mxu0  ;;  %v3951_v63 = vld [vmem:[#allocation14 + $0x24] ss:$8 sps:$4 sm:$0xff]  }
 0x958   : > { %3090 = vst.msk [vmem:[%s5386_s0 + $0x30] sm:$0xff] %vm1606_vm0, %v1975_v12  ;;  %v1985_v9 = vpack.c.bf16 %v3553_v54, %v3552_v17  ;;  %v1876_v5 = vpop.f32.mrb[31].mxu0  ;;  %2363 = vmatpush1.bf16.msra.mxu1 %v3946_v57  ;;  %v3949_v17 = vld [vmem:[#allocation14 + $0x20] ss:$8 sps:$4 sm:$0xff]   ;;  %v3952_v12 = vld [vmem:[#allocation14 + $0x30] ss:$8 sps:$4 sm:$0xff]  }
 0x959   : > { %v1984_v35 = vpack.c.bf16 %v1876_v5, %v1873_v29  ;;  %2364 = vmatprep.subr.bf16.mxu1 %v3951_v63  ;;  %v3957_v29 = vld [vmem:[#allocation14 + $0x44] ss:$8 sps:$4 sm:$0xff]   ;;  %v3955_v54 = vld [vmem:[#allocation14 + $0x40] ss:$8 sps:$4 sm:$0xff]   ;;  %v3958_v5 = vld [vmem:[#allocation14 + $0x50] ss:$8 sps:$4 sm:$0xff]  }
 0x95b   : > { %3612 = vmatprep.mubr.bf16.mxu0 %v1984_v35  ;;  %v3963_v35 = vld [vmem:[#allocation14 + $0x64] ss:$8 sps:$4 sm:$0xff]  }
 0x95c   : > { %3613 = vmatmul.mubr.bf16.gmra.mrb[36].mxu0 %v1985_v9  ;;  %2365 = vmatpush1.bf16.msra.mxu1 %v3949_v17  ;;  %v3960_v9 = vld [vmem:[#allocation14 + $0x54] ss:$8 sps:$4 sm:$0xff]  }
 0x95d   : > { %2366 = vmatprep.subr.bf16.mxu1 %v3954_v56 }
 0x960   : > { %2367 = vmatpush1.bf16.msra.mxu1 %v3952_v12 }
 0x961   : > { %2368 = vmatprep.subr.bf16.mxu1 %v3957_v29 }
 0x964   : > { %2369 = vmatpush1.bf16.msra.mxu1 %v3955_v54 }
 0x965   : > { %2370 = vmatprep.subr.bf16.mxu1 %v3960_v9 }
 0x968   : > { %2371 = vmatpush1.bf16.msra.mxu1 %v3958_v5 }
 0x969   : > { %2372 = vmatprep.subr.bf16.mxu1 %v3963_v35  ;;  %v3967_v35 = vld [vmem:[#allocation16 + $0x40] sm:$0xff]  }
 0x96a   : > { %3296 = vmatprep.subr.bf16.mxu0 %v3967_v35 }
 0x975   : > { %v3610_v47 = vpop.f32.mrb[32].mxu0 }
 0x976   : > { %v2091_v19 = vpop.f32.mrb[33].mxu0  ;;  %v2100_v16 = vadd.f32 %v3610_v47, %v3092_v37  ;;  %v3966_v47 = vld [vmem:[#allocation14 + $0x74] ss:$8 sps:$4 sm:$0xff]  }
 0x977   : > { %v2092_v10 = vadd.f32 %v3092_v37, %v2091_v19  ;;  %v3611_v28 = vpop.f32.mrb[34].mxu0  ;;  %v3964_v19 = vld [vmem:[#allocation14 + $0x70] ss:$8 sps:$4 sm:$0xff]  }
 0x978   : > { %v2094_v58 = vpop.f32.mrb[35].mxu0  ;;  %v2103_v20 = vadd.f32 %v3611_v28, %v3092_v37  ;;  %v5474_v13 = vadd.f32 %v4081_v33, %v2100_v16 }
 0x979   : > { %v5467_v4 = vadd.f32 %v4079_v55, %v2092_v10  ;;  %v2095_v50 = vadd.f32 %v3092_v37, %v2094_v58 }
 0x97a   : > { %v5478_v60 = vadd.f32 %v4082_v49, %v2103_v20 }
 0x97b   : > { %v5470_v3 = vadd.f32 %v4080_v53, %v2095_v50  ;;  %2132 = vadd.xlane.f32.xlu0 %v5467_v4 }
 0x97d   : > { %2134 = vadd.xlane.f32.xlu1 %v5470_v3 }
 0x97f   : > { %2136 = vadd.xlane.f32.xlu0 %v5474_v13 }
 0x981   : > { %2138 = vadd.xlane.f32.xlu1 %v5478_v60 }
 0xa08   : > { %v2133_v21 = vpop.xlane.xlu0 %2132 }
 0xa09   : > { %v2148_v8 = vmul.f32 0.0078125, %v2133_v21 }
 0xa0a   : > { %v2135_v7 = vpop.xlane.xlu1 %2134 }
 0xa0b   : > { %v2149_v11 = vmul.f32 0.0078125, %v2135_v7  ;;  %v5490_v26 = vsub.f32 %v5467_v4, %v2148_v8 }
 0xa0c   : > { %v2137_v61 = vpop.xlane.xlu0 %2136 }
 0xa0d   : > { %v2150_v25 = vmul.f32 0.0078125, %v2137_v61  ;;  %v5497_v42 = vsub.f32 %v5470_v3, %v2149_v11  ;;  %v2164_v6 = vmul.f32 %v5490_v26, %v5490_v26 }
 0xa0e   : > { %v2139_v23 = vpop.xlane.xlu1 %2138 }
 0xa0f   : > { %v2151_v43 = vmul.f32 0.0078125, %v2139_v23  ;;  %v5504_v59 = vsub.f32 %v5474_v13, %v2150_v25  ;;  %v2165_v38 = vmul.f32 %v5497_v42, %v5497_v42 }
 0xa11   : > { %v5510_v36 = vsub.f32 %v5478_v60, %v2151_v43  ;;  %v2166_v41 = vmul.f32 %v5504_v59, %v5504_v59 }
 0xa13   : > { %v2167_v44 = vmul.f32 %v5510_v36, %v5510_v36 }
 0xa2f   : > { %v3614_v32 = vpop.f32.mrb[36].mxu0 }
 0xa30   : > { %v2107_v45 = vpop.f32.mrb[37].mxu0  ;;  %v2116_v14 = vadd.f32 %v3614_v32, %v3092_v37 }
 0xa31   : > { %v2108_v46 = vadd.f32 %v3092_v37, %v2107_v45  ;;  %v3615_v0 = vpop.f32.mrb[38].mxu0 }
 0xa32   : > { %v2110_v62 = vpop.f32.mrb[39].mxu0  ;;  %v2119_v31 = vadd.f32 %v3615_v0, %v3092_v37  ;;  %v5493_v2 = vadd.f32 %v4085_v52, %v2116_v14 }
 0xa33   : > { %v5483_v1 = vadd.f32 %v4083_v39, %v2108_v46  ;;  %v2111_v22 = vadd.f32 %v3092_v37, %v2110_v62  ;;  %v3961_v37 = vld [vmem:[#allocation14 + $0x60] ss:$8 sps:$4 sm:$0xff]  }
 0xa34   : > { %v5500_v34 = vadd.f32 %v4086_v18, %v2119_v31  ;;  %2373 = vmatpush1.bf16.msra.mxu1 %v3961_v37  ;;  %v5541_v18 = vld [vmem:[%s5891_s2] ss:$0 sm:$0xff]  ;;  %v3970_v37 = vld [vmem:[#allocation16 + $0x8] sm:$0xff]   ;;  %s5696_s2 = scalar_lea.vmem [#allocation17], %s3055_s5  ;;  %s5848_s5 = sshll.u32 %s4595_s1, 10 }
 0xa35   : > { %v5486_v15 = vadd.f32 %v4084_v40, %v2111_v22  ;;  %2140 = vadd.xlane.f32.xlu0 %v5483_v1  ;;  %2374 = vmatprep.subr.bf16.mxu1 %v3966_v47  ;;  %v3971_v47 = vld [vmem:[#allocation16 + $0x50] sm:$0xff]   ;;  %s5713_s18 = scalar_lea.hbm %s5897_s20, %s5848_s5 }
 0xa37   : > { %2142 = vadd.xlane.f32.xlu1 %v5486_v15 }
 0xa38   : > { %2375 = vmatpush1.bf16.msra.mxu1 %v3964_v19  ;;  %v3972_v19 = vld [vmem:[#allocation16 + $0x10] sm:$0xff]  }
 0xa39   : > { %2144 = vadd.xlane.f32.xlu0 %v5493_v2  ;;  %3744 = vmatprep.subr.bf16.mxu1 %v3967_v35 }
 0xa3b   : > { %2146 = vadd.xlane.f32.xlu1 %v5500_v34 }
 0xa3d   : > { %2172 = vadd.xlane.f32.xlu0 %v2164_v6 }
 0xa3f   : > { %2174 = vadd.xlane.f32.xlu1 %v2165_v38 }
 0xa41   : > { %2176 = vadd.xlane.f32.xlu0 %v2166_v41 }
 0xa43   : > { %2178 = vadd.xlane.f32.xlu1 %v2167_v44 }
 0xac2   : > { %v2141_v10 = vpop.xlane.xlu0 %2140 }
 0xac3   : > { %v2152_v28 = vmul.f32 0.0078125, %v2141_v10  ;;  %v3973_v10 = vld [vmem:[#allocation16 + $0x58] sm:$0xff]  }
 0xac4   : > { %v2143_v58 = vpop.xlane.xlu1 %2142 }
 0xac5   : > { %v5519_v16 = vsub.f32 %v5483_v1, %v2152_v28  ;;  %v2153_v55 = vmul.f32 0.0078125, %v2143_v58  ;;  %v3974_v28 = vld [vmem:[#allocation16 + $0x18] sm:$0xff]   ;;  %v3975_v58 = vld [vmem:[#allocation16 + $0x60] sm:$0xff]  }
 0xac6   : > { %v2145_v50 = vpop.xlane.xlu0 %2144 }
 0xac7   : > { %v5522_v20 = vsub.f32 %v5486_v15, %v2153_v55  ;;  %v2154_v53 = vmul.f32 0.0078125, %v2145_v50  ;;  %v2168_v33 = vmul.f32 %v5519_v16, %v5519_v16  ;;  %v3976_v55 = vld [vmem:[#allocation16 + $0x20] sm:$0xff]   ;;  %v3977_v50 = vld [vmem:[#allocation16 + $0x68] sm:$0xff]  }
 0xac8   : > { %v2147_v49 = vpop.xlane.xlu1 %2146 }
 0xac9   : > { %v5527_v21 = vsub.f32 %v5493_v2, %v2154_v53  ;;  %v2155_v32 = vmul.f32 0.0078125, %v2147_v49  ;;  %2180 = vadd.xlane.f32.xlu0 %v2168_v33  ;;  %v2169_v7 = vmul.f32 %v5522_v20, %v5522_v20  ;;  %v3978_v53 = vld [vmem:[#allocation16 + $0x28] sm:$0xff]   ;;  %v3979_v33 = vld [vmem:[#allocation16 + $0x70] sm:$0xff]  }
 0xaca   : > { %v2173_v45 = vpop.xlane.xlu0 %2172 }
 0xacb   : > { %v5532_v46 = vsub.f32 %v5500_v34, %v2155_v32  ;;  %v2188_v0 = vmul.f32 0.0078125, %v2173_v45  ;;  %2182 = vadd.xlane.f32.xlu1 %v2169_v7  ;;  %v2170_v62 = vmul.f32 %v5527_v21, %v5527_v21  ;;  %v3980_v45 = vld [vmem:[#allocation16 + $0x30] sm:$0xff]  }
 0xacc   : > { %v2175_v8 = vpop.xlane.xlu1 %2174 }
 0xacd   : > { %v2196_v14 = vadd.f32 1e-05, %v2188_v0  ;;  %v2189_v39 = vmul.f32 0.0078125, %v2175_v8  ;;  %2184 = vadd.xlane.f32.xlu0 %v2170_v62  ;;  %v2171_v22 = vmul.f32 %v5532_v46, %v5532_v46  ;;  %v3981_v8 = vld [vmem:[#allocation16 + $0x78] sm:$0xff]  }
 0xace   : > { %v2177_v61 = vpop.xlane.xlu0 %2176 }
 0xacf   : > { %4031 = vrsqrt.f32 %v2196_v14  ;;  %v2197_v11 = vadd.f32 1e-05, %v2189_v39  ;;  %v2190_v31 = vmul.f32 0.0078125, %v2177_v61  ;;  %2186 = vadd.xlane.f32.xlu1 %v2171_v22 }
 0xad0   : > { %v2179_v40 = vpop.xlane.xlu1 %2178 }
 0xad1   : > { %4033 = vrsqrt.f32 %v2197_v11  ;;  %v2198_v23 = vadd.f32 1e-05, %v2190_v31  ;;  %v2191_v25 = vmul.f32 0.0078125, %v2179_v40  ;;  %v3982_v11 = vld [vmem:[#allocation16 + $0x38] sm:$0xff]  }
 0xad3   : > { %4035 = vrsqrt.f32 %v2198_v23  ;;  %v2199_v52 = vadd.f32 1e-05, %v2191_v25 }
 0xad5   : > { %4037 = vrsqrt.f32 %v2199_v52 }
 0xad9   : > { %v4032_v43 = vpop.eup %4031 }
 0xada   : > { %v2212_v6 = vmul.f32 %v4032_v43, %v5490_v26 }
 0xadb   : > { %v4034_v38 = vpop.eup %4033 }
 0xadc   : > { %v2226_v41 = vmul.f32 %v5541_v18, %v2212_v6  ;;  %v2213_v44 = vmul.f32 %v4034_v38, %v5497_v42 }
 0xadd   : > { %v4036_v48 = vpop.eup %4035 }
 0xade   : > { %v2227_v57 = vmul.f32 %v5541_v18, %v2213_v44  ;;  %v2240_v63 = vadd.f32 %v5549_v51, %v2226_v41  ;;  %v2214_v26 = vmul.f32 %v4036_v48, %v5504_v59  ;;  %v3968_v59 = vld [vmem:[#allocation16] sm:$0xff]  }
 0xadf   : > { %v4038_v24 = vpop.eup %4037  ;;  %3297 = vmatpush3.bf16.msra.mxu0 %v3968_v59 }
 0xae0   : > { %v2241_v17 = vadd.f32 %v5549_v51, %v2227_v57  ;;  %v2215_v56 = vmul.f32 %v4038_v24, %v5510_v36  ;;  %v2228_v29 = vmul.f32 %v5541_v18, %v2214_v26  ;;  %v3969_v36 = vld [vmem:[#allocation16 + $0x48] sm:$0xff]  }
 0xae1   : > { %3298 = vmatprep.subr.bf16.mxu0 %v3969_v36 }
 0xae2   : > { %v2248_v12 = vpack.c.bf16 %v2241_v17, %v2240_v63  ;;  %v2229_v42 = vmul.f32 %v5541_v18, %v2215_v56  ;;  %v2242_v9 = vadd.f32 %v5549_v51, %v2228_v29 }
 0xae3   : > { %3299 = vmatpush3.bf16.msra.mxu0 %v3970_v37 }
 0xae4   : > { %2393 = vmatmul.mubr.bf16.vlgmr.msra.gmra.mrb[24].mxu1 %v2248_v12  ;;  %v2243_v54 = vadd.f32 %v5549_v51, %v2229_v42  ;;  %3300 = vmatprep.subr.bf16.mxu0 %v3971_v47 }
 0xae5   : > { %2402 = vmatprep.mubr.bf16.mxu1 %v5889_v27  ;;  %3752 = vmatpush3.bf16.msra.mxu1 %v3968_v59 }
 0xae6   : > { %v2249_v5 = vpack.c.bf16 %v2243_v54, %v2242_v9  ;;  %3745 = vmatprep.subr.bf16.mxu1 %v3969_v36  ;;  %v5895_v54 = vsub.s32 1, %v5027_v30 }
 0xae7   : > { %3301 = vmatpush3.bf16.msra.mxu0 %v3972_v19 }
 0xae8   : > { %3302 = vmatprep.subr.bf16.mxu0 %v3973_v10 }
 0xae9   : > { %3753 = vmatpush3.bf16.msra.mxu1 %v3970_v37 }
 0xaea   : > { %3746 = vmatprep.subr.bf16.mxu1 %v3971_v47 }
 0xaeb   : > { %3303 = vmatpush3.bf16.msra.mxu0 %v3974_v28 }
 0xaec   : > { %2403 = vmatmul.mubr.bf16.gmra.mrb[28].mxu1 %v2249_v5  ;;  %3304 = vmatprep.subr.bf16.mxu0 %v3975_v58 }
 0xaed   : > { %2412 = vmatprep.mubr.bf16.mxu1 %v5889_v27  ;;  %3754 = vmatpush3.bf16.msra.mxu1 %v3972_v19 }
 0xaee   : > { %3747 = vmatprep.subr.bf16.mxu1 %v3973_v10 }
 0xaef   : > { %3305 = vmatpush3.bf16.msra.mxu0 %v3976_v55 }
 0xaf0   : > { %3306 = vmatprep.subr.bf16.mxu0 %v3977_v50 }
 0xaf1   : > { %3755 = vmatpush3.bf16.msra.mxu1 %v3974_v28 }
 0xaf2   : > { %3748 = vmatprep.subr.bf16.mxu1 %v3975_v58 }
 0xaf3   : > { %3307 = vmatpush3.bf16.msra.mxu0 %v3978_v53 }
 0xaf4   : > { %3308 = vmatprep.subr.bf16.mxu0 %v3979_v33 }
 0xaf5   : > { %3756 = vmatpush3.bf16.msra.mxu1 %v3976_v55 }
 0xaf6   : > { %3749 = vmatprep.subr.bf16.mxu1 %v3977_v50 }
 0xaf7   : > { %3309 = vmatpush3.bf16.msra.mxu0 %v3980_v45 }
 0xaf8   : > { %3310 = vmatprep.subr.bf16.mxu0 %v3981_v8 }
 0xaf9   : > { %3757 = vmatpush3.bf16.msra.mxu1 %v3978_v53 }
 0xafa   : > { %3750 = vmatprep.subr.bf16.mxu1 %v3979_v33 }
 0xafb   : > { %3311 = vmatpush3.bf16.msra.mxu0 %v3982_v11 }
 0xafd   : > { %3758 = vmatpush3.bf16.msra.mxu1 %v3980_v45 }
 0xafe   : > { %3751 = vmatprep.subr.bf16.mxu1 %v3981_v8 }
 0xb01   : > { %3759 = vmatpush3.bf16.msra.mxu1 %v3982_v11 }
 0xb56   : > { %v2181_v49 = vpop.xlane.xlu0 %2180 }
 0xb57   : > { %v2192_v32 = vmul.f32 0.0078125, %v2181_v49 }
 0xb58   : > { %v2183_v7 = vpop.xlane.xlu1 %2182 }
 0xb59   : > { %v2200_v0 = vadd.f32 1e-05, %v2192_v32  ;;  %v2193_v62 = vmul.f32 0.0078125, %v2183_v7 }
 0xb5a   : > { %v2185_v14 = vpop.xlane.xlu0 %2184 }
 0xb5b   : > { %4039 = vrsqrt.f32 %v2200_v0  ;;  %v2201_v39 = vadd.f32 1e-05, %v2193_v62  ;;  %v2194_v22 = vmul.f32 0.0078125, %v2185_v14 }
 0xb5c   : > { %v2187_v61 = vpop.xlane.xlu1 %2186 }
 0xb5d   : > { %4041 = vrsqrt.f32 %v2201_v39  ;;  %v2202_v31 = vadd.f32 1e-05, %v2194_v22  ;;  %v2195_v40 = vmul.f32 0.0078125, %v2187_v61 }
 0xb5f   : > { %4043 = vrsqrt.f32 %v2202_v31  ;;  %v2203_v23 = vadd.f32 1e-05, %v2195_v40 }
 0xb61   : > { %4045 = vrsqrt.f32 %v2203_v23 }
 0xb65   : > { %v4040_v25 = vpop.eup %4039 }
 0xb66   : > { %v2216_v52 = vmul.f32 %v4040_v25, %v5519_v16 }
 0xb67   : > { %v4042_v43 = vpop.eup %4041 }
 0xb68   : > { %v2217_v6 = vmul.f32 %v4042_v43, %v5522_v20  ;;  %v2230_v38 = vmul.f32 %v5541_v18, %v2216_v52 }
 0xb69   : > { %v4044_v41 = vpop.eup %4043 }
 0xb6a   : > { %v2231_v44 = vmul.f32 %v5541_v18, %v2217_v6  ;;  %v2244_v57 = vadd.f32 %v5549_v51, %v2230_v38  ;;  %v2218_v63 = vmul.f32 %v4044_v41, %v5527_v21  ;;  %v2268_v21 = vld [vmem:[%s5893_s26] sm:$0x3]  ;;  %s2807_s26 = scalar_lea.sflag [#allocation19], %s4875_s10 }
 0xb6b   : > { %v4046_v48 = vpop.eup %4045  ;;  %v5584_v9 = vrot.slane %v2268_v21, %v5895_v54 }
 0xb6c   : > { %v2245_v24 = vadd.f32 %v5549_v51, %v2231_v44  ;;  %v2219_v17 = vmul.f32 %v4046_v48, %v5532_v46  ;;  %v2232_v20 = vmul.f32 %v5541_v18, %v2218_v63  ;;  %v5894_v46 = vsub.s32 0, %v5027_v30 }
 0xb6e   : > { %v2250_v26 = vpack.c.bf16 %v2245_v24, %v2244_v57  ;;  %v2233_v16 = vmul.f32 %v5541_v18, %v2219_v17  ;;  %v2246_v12 = vadd.f32 %v5549_v51, %v2232_v20  ;;  %v5580_v29 = vrot.slane %v2268_v21, %v5894_v46 }
 0xb70   : > { %2413 = vmatmul.mubr.bf16.gmra.mrb[32].mxu1 %v2250_v26  ;;  %v2247_v56 = vadd.f32 %v5549_v51, %v2233_v16 }
 0xb71   : > { %2422 = vmatprep.mubr.bf16.mxu1 %v5889_v27 }
 0xb72   : > { %v2251_v42 = vpack.c.bf16 %v2247_v56, %v2246_v12 }
 0xb78   : > { %2423 = vmatmul.mubr.bf16.gmra.mrb[36].mxu1 %v2251_v42 }
 0xbb7   : > { %v2394_v18 = vpop.f32.mrb[24].mxu1 }
 0xbb8   : > { %v5587_v27 = vadd.f32 %v2394_v18, %v5580_v29  ;;  %v2396_v5 = vpop.f32.mrb[25].mxu1 }
 0xbb9   : > { %v5590_v51 = vadd.f32 %v2396_v5, %v5584_v9  ;;  %v2398_v35 = vpop.f32.mrb[26].mxu1 }
 0xbba   : > { %v2449_v59 = vmul.f32 0.044715, %v5587_v27  ;;  %v5594_v36 = vadd.f32 %v2398_v35, %v5580_v29  ;;  %v2400_v37 = vpop.f32.mrb[27].mxu1 }
 0xbbb   : > { %v2450_v47 = vmul.f32 0.044715, %v5590_v51  ;;  %v5598_v30 = vadd.f32 %v2400_v37, %v5584_v9 }
 0xbbc   : > { %v2465_v19 = vmul.f32 %v2449_v59, %v5587_v27  ;;  %v2451_v10 = vmul.f32 0.044715, %v5594_v36 }
 0xbbd   : > { %v2466_v28 = vmul.f32 %v2450_v47, %v5590_v51  ;;  %v2452_v58 = vmul.f32 0.044715, %v5598_v30 }
 0xbbe   : > { %v2481_v55 = vmul.f32 %v2465_v19, %v5587_v27  ;;  %v2467_v50 = vmul.f32 %v2451_v10, %v5594_v36 }
 0xbbf   : > { %v2482_v53 = vmul.f32 %v2466_v28, %v5590_v51  ;;  %v2468_v33 = vmul.f32 %v2452_v58, %v5598_v30  ;;  %v2404_v49 = vpop.f32.mrb[28].mxu1  ;;  %v2433_v28 = vmul.f32 0.5, %v5587_v27  ;;  %v2435_v58 = vmul.f32 0.5, %v5594_v36 }
 0xbc0   : > { %v2497_v32 = vadd.f32 %v2481_v55, %v5587_v27  ;;  %v2483_v7 = vmul.f32 %v2467_v50, %v5594_v36  ;;  %v5611_v45 = vadd.f32 %v2404_v49, %v5580_v29  ;;  %v2406_v0 = vpop.f32.mrb[29].mxu1  ;;  %v2434_v50 = vmul.f32 0.5, %v5590_v51 }
 0xbc1   : > { %v2484_v62 = vmul.f32 %v2468_v33, %v5598_v30  ;;  %v5615_v8 = vadd.f32 %v2406_v0, %v5584_v9  ;;  %v2408_v14 = vpop.f32.mrb[30].mxu1  ;;  %v2498_v39 = vadd.f32 %v2482_v53, %v5590_v51  ;;  %v2436_v53 = vmul.f32 0.5, %v5598_v30 }
 0xbc2   : > { %v2513_v22 = vmul.f32 0.7978846, %v2497_v32  ;;  %v2499_v61 = vadd.f32 %v2483_v7, %v5594_v36  ;;  %v2453_v11 = vmul.f32 0.044715, %v5611_v45  ;;  %v2409_v31 = vadd.f32 %v2408_v14, %v5580_v29  ;;  %v2410_v40 = vpop.f32.mrb[31].mxu1 }
 0xbc3   : > { %v2454_v23 = vmul.f32 0.044715, %v5615_v8  ;;  %v2411_v25 = vadd.f32 %v2410_v40, %v5584_v9  ;;  %v2500_v52 = vadd.f32 %v2484_v62, %v5598_v30  ;;  %v2514_v43 = vmul.f32 0.7978846, %v2498_v39 }
 0xbc4   : > { %4047 = vtanh.f32 %v2513_v22  ;;  %v2515_v6 = vmul.f32 0.7978846, %v2499_v61  ;;  %v2469_v38 = vmul.f32 %v2453_v11, %v5611_v45  ;;  %v2455_v41 = vmul.f32 0.044715, %v2409_v31 }
 0xbc5   : > { %v2470_v44 = vmul.f32 %v2454_v23, %v5615_v8  ;;  %v2456_v48 = vmul.f32 0.044715, %v2411_v25  ;;  %v2516_v57 = vmul.f32 0.7978846, %v2500_v52  ;;  %4049 = vtanh.f32 %v2514_v43 }
 0xbc6   : > { %4051 = vtanh.f32 %v2515_v6  ;;  %v2485_v24 = vmul.f32 %v2469_v38, %v5611_v45  ;;  %v2471_v63 = vmul.f32 %v2455_v41, %v2409_v31  ;;  %v2437_v36 = vmul.f32 0.5, %v5611_v45 }
 0xbc7   : > { %v2486_v17 = vmul.f32 %v2470_v44, %v5615_v8  ;;  %v2472_v26 = vmul.f32 %v2456_v48, %v2411_v25  ;;  %4053 = vtanh.f32 %v2516_v57  ;;  %v2439_v51 = vmul.f32 0.5, %v2409_v31 }
 0xbc8   : > { %v2487_v16 = vmul.f32 %v2471_v63, %v2409_v31  ;;  %v2501_v20 = vadd.f32 %v2485_v24, %v5611_v45  ;;  %v2438_v30 = vmul.f32 0.5, %v5615_v8  ;;  %v2440_v52 = vmul.f32 0.5, %v2411_v25 }
 0xbc9   : > { %v2488_v56 = vmul.f32 %v2472_v26, %v2411_v25  ;;  %v2502_v12 = vadd.f32 %v2486_v17, %v5615_v8 }
 0xbca   : > { %v2503_v42 = vadd.f32 %v2487_v16, %v2409_v31  ;;  %v2517_v21 = vmul.f32 0.7978846, %v2501_v20 }
 0xbcb   : > { %v2504_v46 = vadd.f32 %v2488_v56, %v2411_v25  ;;  %v2518_v54 = vmul.f32 0.7978846, %v2502_v12 }
 0xbcc   : > { %v2519_v18 = vmul.f32 0.7978846, %v2503_v42  ;;  %4055 = vtanh.f32 %v2517_v21 }
 0xbcd   : > { %v2520_v5 = vmul.f32 0.7978846, %v2504_v46  ;;  %4057 = vtanh.f32 %v2518_v54 }
 0xbce   : > { %v4048_v35 = vpop.eup %4047  ;;  %4059 = vtanh.f32 %v2519_v18 }
 0xbcf   : > { %v4050_v59 = vpop.eup %4049  ;;  %v2545_v37 = vadd.f32 1.0, %v4048_v35  ;;  %4061 = vtanh.f32 %v2520_v5 }
 0xbd0   : > { %v4052_v47 = vpop.eup %4051  ;;  %v2546_v19 = vadd.f32 1.0, %v4050_v59 }
 0xbd1   : > { %v4054_v10 = vpop.eup %4053  ;;  %v2547_v55 = vadd.f32 1.0, %v4052_v47  ;;  %v2561_v49 = vmul.f32 %v2545_v37, %v2433_v28 }
 0xbd2   : > { %v2548_v33 = vadd.f32 1.0, %v4054_v10  ;;  %v2562_v7 = vmul.f32 %v2546_v19, %v2434_v50 }
 0xbd3   : > { %v2563_v32 = vmul.f32 %v2547_v55, %v2435_v58 }
 0xbd4   : > { %v2564_v0 = vmul.f32 %v2548_v33, %v2436_v53 }
 0xbd5   : > { %v2577_v62 = vpack.c.bf16 %v2563_v32, %v2561_v49 }
 0xbd6   : > { %v4056_v14 = vpop.eup %4055  ;;  %v2578_v39 = vpack.c.bf16 %v2564_v0, %v2562_v7 }
 0xbd7   : > { %v4058_v22 = vpop.eup %4057  ;;  %v2549_v61 = vadd.f32 1.0, %v4056_v14 }
 0xbd8   : > { %v4060_v11 = vpop.eup %4059  ;;  %2752 = vmatprep.mubr.bf16.mxu0 %v2578_v39  ;;  %v2550_v27 = vadd.f32 1.0, %v4058_v22 }
 0xbd9   : > { %v4062_v40 = vpop.eup %4061  ;;  %2753 = vmatmul.mubr.bf16.vlgmr.msra.gmra.mrb[40].mxu0 %v2577_v62  ;;  %v2551_v23 = vadd.f32 1.0, %v4060_v11  ;;  %v2565_v6 = vmul.f32 %v2549_v61, %v2437_v36 }
 0xbda   : > { %v2552_v43 = vadd.f32 1.0, %v4062_v40  ;;  %v2566_v41 = vmul.f32 %v2550_v27, %v2438_v30 }
 0xbdb   : > { %v2567_v38 = vmul.f32 %v2551_v23, %v2439_v51 }
 0xbdc   : > { %v2568_v44 = vmul.f32 %v2552_v43, %v2440_v52 }
 0xbdd   : > { %v2579_v48 = vpack.c.bf16 %v2567_v38, %v2565_v6 }
 0xbde   : > { %v2580_v57 = vpack.c.bf16 %v2568_v44, %v2566_v41 }
 0xbe0   : > { %2760 = vmatprep.mubr.bf16.mxu0 %v2580_v57 }
 0xbe1   : > { %2761 = vmatmul.mubr.bf16.gmra.mrb[44].mxu0 %v2579_v48 }
 0xc43   : > { %v2414_v24 = vpop.f32.mrb[32].mxu1 }
 0xc44   : > { %v5637_v63 = vadd.f32 %v2414_v24, %v5580_v29  ;;  %v2416_v17 = vpop.f32.mrb[33].mxu1 }
 0xc45   : > { %v5640_v45 = vadd.f32 %v2416_v17, %v5584_v9  ;;  %v2418_v31 = vpop.f32.mrb[34].mxu1 }
 0xc46   : > { %v2457_v8 = vmul.f32 0.044715, %v5637_v63  ;;  %v5644_v25 = vadd.f32 %v2418_v31, %v5580_v29  ;;  %v2420_v26 = vpop.f32.mrb[35].mxu1 }
 0xc47   : > { %v2458_v16 = vmul.f32 0.044715, %v5640_v45  ;;  %v5648_v20 = vadd.f32 %v2420_v26, %v5584_v9 }
 0xc48   : > { %v2473_v56 = vmul.f32 %v2457_v8, %v5637_v63  ;;  %v2459_v12 = vmul.f32 0.044715, %v5644_v25 }
 0xc49   : > { %v2474_v42 = vmul.f32 %v2458_v16, %v5640_v45  ;;  %v2460_v21 = vmul.f32 0.044715, %v5648_v20 }
 0xc4a   : > { %v2489_v46 = vmul.f32 %v2473_v56, %v5637_v63  ;;  %v2475_v54 = vmul.f32 %v2459_v12, %v5644_v25  ;;  %v2441_v56 = vmul.f32 0.5, %v5637_v63  ;;  %v2443_v12 = vmul.f32 0.5, %v5644_v25 }
 0xc4b   : > { %v2490_v18 = vmul.f32 %v2474_v42, %v5640_v45  ;;  %v2476_v5 = vmul.f32 %v2460_v21, %v5648_v20  ;;  %v2424_v35 = vpop.f32.mrb[36].mxu1  ;;  %v2442_v21 = vmul.f32 0.5, %v5640_v45 }
 0xc4c   : > { %v2505_v59 = vadd.f32 %v2489_v46, %v5637_v63  ;;  %v2491_v37 = vmul.f32 %v2475_v54, %v5644_v25  ;;  %v5661_v47 = vadd.f32 %v2424_v35, %v5580_v29  ;;  %v2426_v19 = vpop.f32.mrb[37].mxu1  ;;  %v2444_v46 = vmul.f32 0.5, %v5648_v20 }
 0xc4d   : > { %v2492_v10 = vmul.f32 %v2476_v5, %v5648_v20  ;;  %v5665_v28 = vadd.f32 %v2426_v19, %v5584_v9  ;;  %v2428_v58 = vpop.f32.mrb[38].mxu1  ;;  %v2506_v55 = vadd.f32 %v2490_v18, %v5640_v45 }
 0xc4e   : > { %v2521_v50 = vmul.f32 0.7978846, %v2505_v59  ;;  %v2507_v53 = vadd.f32 %v2491_v37, %v5644_v25  ;;  %v2461_v33 = vmul.f32 0.044715, %v5661_v47  ;;  %v2429_v49 = vadd.f32 %v2428_v58, %v5580_v29  ;;  %v2430_v32 = vpop.f32.mrb[39].mxu1 }
 0xc4f   : > { %v2462_v7 = vmul.f32 0.044715, %v5665_v28  ;;  %v2431_v0 = vadd.f32 %v2430_v32, %v5584_v9  ;;  %v2508_v62 = vadd.f32 %v2492_v10, %v5648_v20  ;;  %v2522_v14 = vmul.f32 0.7978846, %v2506_v55 }
 0xc50   : > { %4063 = vtanh.f32 %v2521_v50  ;;  %v2523_v39 = vmul.f32 0.7978846, %v2507_v53  ;;  %v2477_v22 = vmul.f32 %v2461_v33, %v5661_v47  ;;  %v2463_v61 = vmul.f32 0.044715, %v2429_v49 }
 0xc51   : > { %v2478_v11 = vmul.f32 %v2462_v7, %v5665_v28  ;;  %v2464_v27 = vmul.f32 0.044715, %v2431_v0  ;;  %v2524_v40 = vmul.f32 0.7978846, %v2508_v62  ;;  %4065 = vtanh.f32 %v2522_v14 }
 0xc52   : > { %4067 = vtanh.f32 %v2523_v39  ;;  %v2493_v29 = vmul.f32 %v2477_v22, %v5661_v47  ;;  %v2479_v36 = vmul.f32 %v2463_v61, %v2429_v49  ;;  %v2445_v25 = vmul.f32 0.5, %v5661_v47 }
 0xc53   : > { %v2494_v51 = vmul.f32 %v2478_v11, %v5665_v28  ;;  %v2480_v9 = vmul.f32 %v2464_v27, %v2431_v0  ;;  %4069 = vtanh.f32 %v2524_v40  ;;  %v2447_v45 = vmul.f32 0.5, %v2429_v49 }
 0xc54   : > { %v2495_v23 = vmul.f32 %v2479_v36, %v2429_v49  ;;  %v2509_v30 = vadd.f32 %v2493_v29, %v5661_v47  ;;  %v2446_v20 = vmul.f32 0.5, %v5665_v28  ;;  %v2448_v32 = vmul.f32 0.5, %v2431_v0  ;;  %v5689_v47 = vld [vmem:[%s5896_s9] ss:$0 sm:$0xff]  ;;  %s4345_s9 = sshll.u32 %s4475_s19, 4  ;;  %s4346_s9 = int_to_ptr.vmem [resolvable:$false] %s4345_s9 }
 0xc55   : > { %v2496_v52 = vmul.f32 %v2480_v9, %v2431_v0  ;;  %v2510_v43 = vadd.f32 %v2494_v51, %v5665_v28  ;;  %s4347_s3 = scalar_lea.vmem %s4346_s9, 2048  ;;  %p4348_p8 = scmp.lt.s32.totalorder %s5716_s21, %s4346_s9 }
 0xc56   : > { %v2511_v6 = vadd.f32 %v2495_v23, %v2429_v49  ;;  %v2525_v38 = vmul.f32 0.7978846, %v2509_v30  ;;  %p4349_p4 = scmp.lt.s32.totalorder %s4347_s3, %s4341_s17 }
 0xc57   : > { %v2512_v41 = vadd.f32 %v2496_v52, %v2431_v0  ;;  %v2526_v44 = vmul.f32 0.7978846, %v2510_v43 }
 0xc58   : > { %v2527_v48 = vmul.f32 0.7978846, %v2511_v6  ;;  %4071 = vtanh.f32 %v2525_v38  ;;  %p4350_p10 = por %p4349_p4, %p4348_p8 }
 0xc59   : > { %v2528_v57 = vmul.f32 0.7978846, %v2512_v41  ;;  %4073 = vtanh.f32 %v2526_v44 }
 0xc5a   : > { %v4064_v24 = vpop.eup %4063  ;;  %4075 = vtanh.f32 %v2527_v48  ;;  %p4351_p11 = pnand %p4350_p10, %p4344_p2 }
 0xc5b   : > { %v4066_v17 = vpop.eup %4065  ;;  %v2553_v31 = vadd.f32 1.0, %v4064_v24  ;;  %4077 = vtanh.f32 %v2528_v57 }
 0xc5c   : > { %v4068_v8 = vpop.eup %4067  ;;  %v2554_v26 = vadd.f32 1.0, %v4066_v17 }
 0xc5d   : > { %v4070_v16 = vpop.eup %4069  ;;  %v2555_v42 = vadd.f32 1.0, %v4068_v8  ;;  %v2569_v18 = vmul.f32 %v2553_v31, %v2441_v56 }
 0xc5e   : > { %v2556_v54 = vadd.f32 1.0, %v4070_v16  ;;  %v2570_v35 = vmul.f32 %v2554_v26, %v2442_v21 }
 0xc5f   : > { %v2571_v5 = vmul.f32 %v2555_v42, %v2443_v12 }
 0xc60   : > { %v2572_v59 = vmul.f32 %v2556_v54, %v2444_v46 }
 0xc61   : > { %v2581_v37 = vpack.c.bf16 %v2571_v5, %v2569_v18 }
 0xc62   : > { %v4072_v19 = vpop.eup %4071  ;;  %v2582_v10 = vpack.c.bf16 %v2572_v59, %v2570_v35 }
 0xc63   : > { %v4074_v58 = vpop.eup %4073  ;;  %v2557_v55 = vadd.f32 1.0, %v4072_v19 }
 0xc64   : > { %v4076_v50 = vpop.eup %4075  ;;  %2768 = vmatprep.mubr.bf16.mxu1 %v2582_v10  ;;  %v2558_v63 = vadd.f32 1.0, %v4074_v58 }
 0xc65   : > { %v4078_v53 = vpop.eup %4077  ;;  %2769 = vmatmul.mubr.bf16.vlgmr.msra.gmra.mrb[40].mxu1 %v2581_v37  ;;  %v2559_v33 = vadd.f32 1.0, %v4076_v50  ;;  %v2573_v62 = vmul.f32 %v2557_v55, %v2445_v25 }
 0xc66   : > { %v2560_v7 = vadd.f32 1.0, %v4078_v53  ;;  %v2574_v39 = vmul.f32 %v2558_v63, %v2446_v20 }
 0xc67   : > { %v2575_v14 = vmul.f32 %v2559_v33, %v2447_v45 }
 0xc68   : > { %v2576_v22 = vmul.f32 %v2560_v7, %v2448_v32 }
 0xc69   : > { %v2583_v61 = vpack.c.bf16 %v2575_v14, %v2573_v62 }
 0xc6a   : > { %v2584_v11 = vpack.c.bf16 %v2576_v22, %v2574_v39 }
 0xc6c   : > { %2776 = vmatprep.mubr.bf16.mxu1 %v2584_v11 }
 0xc6d   : > { %2777 = vmatmul.mubr.bf16.gmra.mrb[44].mxu1 %v2583_v61 }
 0xcac   : > { %v3312_v27 = vpop.f32.mrb[40].mxu0 }
 0xcad   : > { %v3313_v49 = vpop.f32.mrb[41].mxu0 }
 0xcae   : > { %v3314_v40 = vadd.f32 %v3313_v49, %v3312_v27  ;;  %v3315_v28 = vpop.f32.mrb[42].mxu0 }
 0xcaf   : > { %v3316_v0 = vpop.f32.mrb[43].mxu0 }
 0xcb0   : > { %v2755_v29 = vadd.f32 %v3314_v40, %v5689_v47  ;;  %v3317_v36 = vadd.f32 %v3316_v0, %v3315_v28 }
 0xcb2   : > { %v2785_v51 = vadd.f32 %v2755_v29, %v5467_v4  ;;  %v2758_v9 = vadd.f32 %v3317_v36, %v5689_v47 }
 0xcb4   : > { %2793 = vst [vmem:[%s5696_s2] sm:$0xff] %v2785_v51  ;;  %v2786_v23 = vadd.f32 %v2758_v9, %v5470_v3  ;;  %v3318_v30 = vpop.f32.mrb[44].mxu0 }
 0xcb5   : > { %v3319_v52 = vpop.f32.mrb[45].mxu0 }
 0xcb6   : > { %2794 = vst [vmem:[%s5696_s2 + $0x8] sm:$0xff] %v2786_v23  ;;  %v3320_v4 = vadd.f32 %v3319_v52, %v3318_v30  ;;  %v3321_v43 = vpop.f32.mrb[46].mxu0 }
 0xcb7   : > { %v3322_v6 = vpop.f32.mrb[47].mxu0 }
 0xcb8   : > { %v2763_v38 = vadd.f32 %v3320_v4, %v5689_v47  ;;  %v3323_v41 = vadd.f32 %v3322_v6, %v3321_v43 }
 0xcba   : > { %v2787_v44 = vadd.f32 %v2763_v38, %v5474_v13  ;;  %v2766_v48 = vadd.f32 %v3323_v41, %v5689_v47 }
 0xcbc   : > { %2795 = vst [vmem:[%s5696_s2 + $0x10] sm:$0xff] %v2787_v44  ;;  %v2788_v57 = vadd.f32 %v2766_v48, %v5478_v60 }
 0xcbe   : > { %2796 = vst [vmem:[%s5696_s2 + $0x18] sm:$0xff] %v2788_v57 }
 0xcbf   : > { %4354 = shalt.err (!%p4351_p11)
}
 0xcc0   : > { %s4355_s0 = scalar_lea.hbm %s5713_s18, 1024  ;;  %s4359_s19 = scalar_lea.hbm %s5897_s20, 2048 }
 0xcc1   : > { %p4356_p3 = scmp.ne.s32.totalorder %s5713_s18, %s4355_s0  ;;  %p4360_p6 = scmp.lt.u32.totalorder %s5713_s18, %s5897_s20 }
 0xcc2   : > { %p4361_p9 = scmp.lt.u32.totalorder %s4359_s19, %s4355_s0  ;;  %p4363_p1 = scmp.lt.u32.totalorder %s4355_s0, %s5713_s18 }
 0xcc3   : > { %p4357_p5 = pnand %p4356_p3, %p5898_p13 }
 0xcc4   : > { %p4362_p12 = por %p4361_p9, %p4360_p6 }
 0xcc5   : > { %p4358_p7 = pneg %p4357_p5 }
 0xcc6   : > { %p4364_p0 = por %p4363_p1, %p4362_p12 }
 0xcc8   : > { %p4365_p2 = pnand %p4364_p0, %p4358_p7 }
 0xcca   : > { %4368 = shalt.err (!%p4365_p2)
}
 0xccb   : > { %s5849_s3 = smov 128   ;;  %s4477_s17 = smov 8  }
 0xccc   : > { %3795 = dma.vmem_to_hbm [thread:$0]  (%p5898_p13), %s5716_s21, 1024, %s5713_s18, %s2807_s26, %s5849_s3, %s5849_s3, %s4477_s17  }
 0xccd   : > { %s2821_s5 = sshll.u32 %s5696_s2, 4  ;;  %s5899_s18 = sshll.u32 %s4595_s1, 10  ;;  %s5764_s5 = int_to_ptr.vmem [resolvable:$true] %s2821_s5 }
 0xcce   : > { %s5900_s0 = sld [smem:[#allocation38_spill]]  ;;  %s2802_s25 = scalar_lea.sflag [#allocation4], %s4875_s10 }
 0xccf   : > { %s4369_s19 = scalar_lea.vmem %s5764_s5, 1024  ;;  %s4478_s9 = smov [#allocation17]  }
 0xcd0   : > { %p4370_p8 = scmp.ne.s32.totalorder %s5764_s5, %s4369_s19  ;;  %s4373_s3 = sshll.u32 %s4478_s9, 4  ;;  %s4374_s3 = int_to_ptr.vmem [resolvable:$false] %s4373_s3 }
 0xcd1   : > { %s4375_s1 = scalar_lea.vmem %s4374_s3, 2048  ;;  %p4376_p11 = scmp.lt.s32.totalorder %s5764_s5, %s4374_s3 }
 0xcd2   : > { %p4371_p4 = pnand %p4370_p8, %p5898_p13  ;;  %p4377_p3 = scmp.lt.s32.totalorder %s4375_s1, %s4369_s19 }
 0xcd4   : > { %s5762_s11 = scalar_lea.hbm %s5900_s0, %s5899_s18  ;;  %p4372_p10 = pneg %p4371_p4 }
 0xcd5   : > { %p4378_p5 = por %p4377_p3, %p4376_p11 }
 0xcd7   : > { %p4379_p7 = pnand %p4378_p5, %p4372_p10 }
 0xd38   : > { %v3324_v3 = vpop.f32.mrb[40].mxu1 }
 0xd39   : > { %v3325_v13 = vpop.f32.mrb[41].mxu1 }
 0xd3a   : > { %v3326_v60 = vadd.f32 %v3325_v13, %v3324_v3  ;;  %v3327_v24 = vpop.f32.mrb[42].mxu1 }
 0xd3b   : > { %v3328_v17 = vpop.f32.mrb[43].mxu1 }
 0xd3c   : > { %v2771_v31 = vadd.f32 %v3326_v60, %v5689_v47  ;;  %v3329_v8 = vadd.f32 %v3328_v17, %v3327_v24 }
 0xd3e   : > { %v2789_v26 = vadd.f32 %v2771_v31, %v5483_v1  ;;  %v2774_v16 = vadd.f32 %v3329_v8, %v5689_v47 }
 0xd40   : > { %2797 = vst [vmem:[%s5696_s2 + $0x20] sm:$0xff] %v2789_v26  ;;  %v2790_v56 = vadd.f32 %v2774_v16, %v5486_v15  ;;  %v3330_v12 = vpop.f32.mrb[44].mxu1 }
 0xd41   : > { %v3331_v42 = vpop.f32.mrb[45].mxu1 }
 0xd42   : > { %2798 = vst [vmem:[%s5696_s2 + $0x28] sm:$0xff] %v2790_v56  ;;  %v3332_v21 = vadd.f32 %v3331_v42, %v3330_v12  ;;  %v3333_v46 = vpop.f32.mrb[46].mxu1 }
 0xd43   : > { %v3334_v54 = vpop.f32.mrb[47].mxu1 }
 0xd44   : > { %v2779_v18 = vadd.f32 %v3332_v21, %v5689_v47  ;;  %v3335_v5 = vadd.f32 %v3334_v54, %v3333_v46 }
 0xd46   : > { %v2791_v1 = vadd.f32 %v2779_v18, %v5493_v2  ;;  %v2782_v35 = vadd.f32 %v3335_v5, %v5689_v47 }
 0xd48   : > { %2799 = vst [vmem:[%s5696_s2 + $0x30] sm:$0xff] %v2791_v1  ;;  %v2792_v15 = vadd.f32 %v2782_v35, %v5500_v34 }
 0xd4a   : > { %2800 = vst [vmem:[%s5696_s2 + $0x38] sm:$0xff] %v2792_v15 }
 0xd4b   : > { %4382 = shalt.err (!%p4379_p7)
}
 0xd4c   : > { %s4383_s2 = scalar_lea.hbm %s5762_s11, 1024  ;;  %s4387_s26 = scalar_lea.hbm %s5900_s0, 2048 }
 0xd4d   : > { %p4384_p6 = scmp.ne.s32.totalorder %s5762_s11, %s4383_s2  ;;  %p4388_p1 = scmp.lt.u32.totalorder %s5762_s11, %s5900_s0 }
 0xd4e   : > { %p4389_p0 = scmp.lt.u32.totalorder %s4387_s26, %s4383_s2  ;;  %p4391_p8 = scmp.lt.u32.totalorder %s4383_s2, %s5762_s11 }
 0xd4f   : > { %p4385_p9 = pnand %p4384_p6, %p5898_p13 }
 0xd50   : > { %p4390_p2 = por %p4389_p0, %p4388_p1 }
 0xd51   : > { %p4386_p12 = pneg %p4385_p9 }
 0xd52   : > { %p4392_p4 = por %p4391_p8, %p4390_p2 }
 0xd54   : > { %p4393_p10 = pnand %p4392_p4, %p4386_p12 }
 0xd56   : > { %4396 = shalt.err (!%p4393_p10)
}
 0xd57   : > { %s5901_s19 = smov 128  }
 0xd58   : > { %3794 = dma.vmem_to_hbm [thread:$0]  (%p5898_p13), %s5764_s5, 1024, %s5762_s11, %s2802_s25, %s5901_s19, %s5901_s19, %s4477_s17  }
 0xd59 PF: > { %s2853_s1 = sand.u32 1, %s4443_s27   ;;  %p5902_p11 = scmp.ne.s32.totalorder %s5875_s24, 0 }
 0xd5a   : > { %p5903_p3 = scmp.ge.s32.totalorder %s4455_s30, 2  ;;  %s2854_s2 = scalar_lea.sflag [#allocation4], %s2853_s1 }
 0xd5c   : > { %p3828_p5 = pnand %p5903_p3, %p5902_p11 }
 0xd5e   : > { %4434 = dma.done.wait (!%p3828_p5), %s2854_s2, 1024  }
 0xd5f   : > { %4436 = vsyncadd (!%p3828_p5), %s2854_s2, 4294966272  ;;  %s2863_s22 = scalar_lea.sflag [#allocation19], %s2853_s1 }
 0xd60   : > { %4438 = dma.done.wait (!%p3828_p5), %s2863_s22, 1024  }
 0xd61   : > { %4440 = vsyncadd (!%p3828_p5), %s2863_s22, 4294966272  ;;  %p39_p13 = scmp.ge.s32.totalorder %s4796_s16, 4   ;;  %s5904_s27 = smov %s4447_s28 }
 0xd62   : > { %s5905_s28 = smov %s4451_s29  ;;  %s5906_s29 = smov %s4807_s14 }
 0xd63   : > { %s5907_s30 = smov %s4796_s16  ;;  %41 = sbr.rel (!%p39_p13) target bundleno = 25 (0x19), region = 186 }
 0xd6a   :  { %2868 = vsyncpa [#allocation3], 1 }
 0xd6b   :  { %2870 = vsyncpa [#allocation3 + $0x1], 1 }
 0xd6c   :  { %2871 = vsyncpa [#allocation6], 1 }
 0xd6d   :  { %2872 = vsyncpa [#allocation9], 1 }
 0xd6e   :  { %2873 = vsyncpa [#allocation12], 1 }
 0xd6f   :  { %2874 = vsyncpa [#allocation15], 1 }
 0xd70   :  { %2875 = vsyncpa [#allocation4], 1 }
 0xd71   :  { %2877 = vsyncpa [#allocation4 + $0x1], 1 }
 0xd72   :  { %2878 = vsyncpa [#allocation19], 1 }
 0xd73   :  { %2880 = vsyncpa [#allocation19 + $0x1], 1 }

</bundles_post_ra>
